<compile_context>
chip_gen: v7x
topology: tpu7x:2x2x1
jax: 0.10.0
libtpu: 0.0.40
codegen_flags: <defaults>
</compile_context>

<pallas_src>
import functools

import jax
import jax.numpy as jnp
import numpy as np
from jax import lax
from jax.experimental import pallas as pl
from jax.experimental.pallas import tpu as pltpu

NODE_DIM = 3
CH_OUT = 32          # conv_past output channels
H_GRU = 96           # dim_embedding_key
H_PAD = 128          # H_GRU zero-padded to a full lane tile
MLP_H1 = 512
MLP_H2 = 256


# --------------------------------------------------------------------------- kernel
def _decompose_kernel(
    xu_ref, f_ref,
    wconv_ref, bconv_ref,
    wi_ref, bi_ref, wh_ref, bnh_ref,
    w1f_ref, w1h_ref, b1_ref,
    xw2_ref, xb2_ref, xw3_ref, xb3_ref,
    yw2_ref, yb2_ref, yw3_ref, yb3_ref,
    xout_ref, yout_ref,
):
    dot = functools.partial(jnp.dot, preferred_element_type=jnp.float32)
    T, bn, _ = xu_ref.shape

    # ---- conv1d (as matmul over unfolded windows) + ReLU, all timesteps at once ----
    # (T, bn, 9) -> (T*bn, 9) collapses leading dims only (bn is a sublane multiple).
    xu = xu_ref[...].reshape(T * bn, 3 * NODE_DIM)
    x_emb = jnp.maximum(dot(xu, wconv_ref[...]) + bconv_ref[...], 0.0)     # (T*bn, 32)

    # ---- input-side GRU projections for every step (r|z|n fused, biases folded) ----
    gx = dot(x_emb, wi_ref[...]) + bi_ref[...]                             # (T*bn, 3*H_PAD)

    # ---- recurrence: a single fused hidden matmul per step on the critical path ----
    wh = wh_ref[...]
    bnh = bnh_ref[...]
    h = jnp.zeros((bn, H_PAD), jnp.float32)
    for t in range(T):                                  # static trip count -> unrolled
        gh = dot(h, wh)                                                    # (bn, 3*H_PAD)
        gxt = gx[t * bn:(t + 1) * bn]                                      # static slice
        r = jax.nn.sigmoid(gxt[:, :H_PAD] + gh[:, :H_PAD])
        z = jax.nn.sigmoid(gxt[:, H_PAD:2 * H_PAD] + gh[:, H_PAD:2 * H_PAD])
        n = jnp.tanh(gxt[:, 2 * H_PAD:] + r * (gh[:, 2 * H_PAD:] + bnh))
        h = (1.0 - z) * n + z * h

    # ---- decoders: fused x|y first layer, bf16 weights, f32 accumulation ----
    # input_feat = cat([f, state_past]) implemented as a split first layer
    # (feat @ W1 == f @ W1[:D] + h @ W1[D:]), avoiding an in-kernel lane concat.
    f_bf = f_ref[...].astype(jnp.bfloat16)
    h_bf = h.astype(jnp.bfloat16)
    h1 = jnp.maximum(dot(f_bf, w1f_ref[...]) + dot(h_bf, w1h_ref[...]) + b1_ref[...], 0.0)
    h1x = h1[:, :MLP_H1].astype(jnp.bfloat16)
    h1y = h1[:, MLP_H1:].astype(jnp.bfloat16)

    h2x = jnp.maximum(dot(h1x, xw2_ref[...]) + xb2_ref[...], 0.0)
    xout_ref[...] = dot(h2x.astype(jnp.bfloat16), xw3_ref[...]) + xb3_ref[...]

    h2y = jnp.maximum(dot(h1y, yw2_ref[...]) + yb2_ref[...], 0.0)
    yout_ref[...] = dot(h2y.astype(jnp.bfloat16), yw3_ref[...]) + yb3_ref[...]


# ------------------------------------------------------------------------- wrapper
def _round_up(x, m):
    return (x + m - 1) // m * m


def _pick_block_n(n):
    """Largest multiple-of-8 divisor of n that is <= 128, preferring grid >= 2 (v7x)."""
    best = None
    for bn in range(8, min(n, 128) + 1, 8):
        if n % bn == 0:
            if n // bn >= 2:
                best = bn
            elif best is None:
                best = bn
    return best if best is not None else n


def decompose_block_forward(x_true, x_hat, f, params, past_len, future_len, block_n=None):
    N, T, _ = x_true.shape
    D = f.shape[1]
    assert T == past_len
    if block_n is None:
        block_n = _pick_block_n(N)
    assert N % block_n == 0

    # ---- difference + im2col unfold in the wrapper (single streamed input) ----
    # row [t] = [xd[t-1,:], xd[t,:], xd[t+1,:]]  (matches Conv1d padding=1, kernel=3)
    xd = (x_true - x_hat).astype(jnp.float32)
    xpad = jnp.pad(xd, ((0, 0), (1, 1), (0, 0)))
    xu = jnp.concatenate([xpad[:, k:k + T, :] for k in range(3)], axis=-1)   # (N, T, 9)
    xu = jnp.transpose(xu, (1, 0, 2))                                        # (T, N, 9)

    row = lambda v: v.reshape(1, -1)

    # conv weight (out, in, k) -> (k*3 + in, out) so conv == xu @ w_unf
    w_unf = jnp.transpose(params["conv_w"], (2, 1, 0)).reshape(3 * NODE_DIM, CH_OUT)

    # ---- fused, lane-padded GRU weights ----
    pad_c = lambda w: jnp.pad(w, ((0, 0), (0, H_PAD - w.shape[1])))
    pad_b = lambda v: jnp.pad(v.reshape(1, -1), ((0, 0), (0, H_PAD - v.shape[0])))
    pad_hh = lambda w: jnp.pad(w, ((0, H_PAD - H_GRU), (0, H_PAD - H_GRU)))
    wi = jnp.concatenate([pad_c(params["w_ir"]), pad_c(params["w_iz"]), pad_c(params["w_in"])], axis=1)
    # NOTE: b_r/b_z fold b_i*+b_h*; sum the two PyTorch biases when loading real weights.
    bi = jnp.concatenate([pad_b(params["b_r"]), pad_b(params["b_z"]), pad_b(params["b_ni"])], axis=1)
    wh = jnp.concatenate([pad_hh(params["w_hr"]), pad_hh(params["w_hz"]), pad_hh(params["w_hn"])], axis=1)
    bnh = pad_b(params["b_nh"])

    # ---- decoder weights: fused x|y first layer, bf16, lane-padded outputs ----
    w1f_xy = jnp.concatenate([params["x_w1"][:D], params["y_w1"][:D]], axis=1).astype(jnp.bfloat16)
    w1h_xy = jnp.concatenate([
        jnp.pad(params["x_w1"][D:], ((0, H_PAD - H_GRU), (0, 0))),
        jnp.pad(params["y_w1"][D:], ((0, H_PAD - H_GRU), (0, 0)))], axis=1).astype(jnp.bfloat16)
    b1_xy = jnp.concatenate([params["x_b1"], params["y_b1"]]).reshape(1, -1)

    x_out_dim = past_len * NODE_DIM
    y_out_dim = future_len * NODE_DIM
    xo_pad = _round_up(x_out_dim, 128)
    yo_pad = _round_up(y_out_dim, 128)
    xw3p = jnp.pad(params["x_w3"], ((0, 0), (0, xo_pad - x_out_dim))).astype(jnp.bfloat16)
    xb3p = jnp.pad(params["x_b3"], (0, xo_pad - x_out_dim)).reshape(1, -1)
    yw3p = jnp.pad(params["y_w3"], ((0, 0), (0, yo_pad - y_out_dim))).astype(jnp.bfloat16)
    yb3p = jnp.pad(params["y_b3"], (0, yo_pad - y_out_dim)).reshape(1, -1)

    inputs = [
        xu, f.astype(jnp.float32),
        w_unf, row(params["conv_b"]),
        wi, bi, wh, bnh,
        w1f_xy, w1h_xy, b1_xy,
        params["x_w2"].astype(jnp.bfloat16), row(params["x_b2"]), xw3p, xb3p,
        params["y_w2"].astype(jnp.bfloat16), row(params["y_b2"]), yw3p, yb3p,
    ]

    def full_spec(a):
        nd = a.ndim
        return pl.BlockSpec(a.shape, lambda i, nd=nd: (0,) * nd)

    in_specs = [
        pl.BlockSpec((T, block_n, 3 * NODE_DIM), lambda i: (0, i, 0)),
        pl.BlockSpec((block_n, D), lambda i: (i, 0)),
    ] + [full_spec(a) for a in inputs[2:]]

    out_specs = [
        pl.BlockSpec((block_n, xo_pad), lambda i: (i, 0)),
        pl.BlockSpec((block_n, yo_pad), lambda i: (i, 0)),
    ]
    out_shape = [
        jax.ShapeDtypeStruct((N, xo_pad), jnp.float32),
        jax.ShapeDtypeStruct((N, yo_pad), jnp.float32),
    ]

    x_flat, y_flat = pl.pallas_call(
        _decompose_kernel,
        grid=(N // block_n,),
        in_specs=in_specs,
        out_specs=out_specs,
        out_shape=out_shape,
        compiler_params=pltpu.CompilerParams(
            dimension_semantics=("parallel",),
            vmem_limit_bytes=64 << 20,
        ),
    )(*inputs)

    x_hat_after = x_flat[:, :x_out_dim].reshape(N, past_len, NODE_DIM)
    y_hat = y_flat[:, :y_out_dim].reshape(N, future_len, NODE_DIM)
    return x_hat_after, y_hat


# ---------------------------------------------------------------- params & reference
def init_params(key, past_len, future_len, input_dim):
    ks = jax.random.split(key, 19)
    kaiming = lambda k, shape, fan_in: (
        jax.random.normal(k, shape, jnp.float32) * np.sqrt(2.0 / fan_in))

    def linear(kw, kb, fan_in, fan_out):
        bound = 1.0 / np.sqrt(fan_in)
        w = jax.random.uniform(kw, (fan_in, fan_out), jnp.float32, -bound, bound)
        b = jax.random.uniform(kb, (fan_out,), jnp.float32, -bound, bound)
        return w, b

    p = {}
    # conv_past: kaiming weight, zero bias (as in init_parameters)
    p["conv_w"] = kaiming(ks[0], (CH_OUT, NODE_DIM, 3), NODE_DIM * 3)   # torch (out, in, k)
    p["conv_b"] = jnp.zeros((CH_OUT,), jnp.float32)
    # GRU (stored x @ W convention), zero biases (as in init_parameters)
    p["w_ir"] = kaiming(ks[1], (CH_OUT, H_GRU), CH_OUT)
    p["w_iz"] = kaiming(ks[2], (CH_OUT, H_GRU), CH_OUT)
    p["w_in"] = kaiming(ks[3], (CH_OUT, H_GRU), CH_OUT)
    p["w_hr"] = kaiming(ks[4], (H_GRU, H_GRU), H_GRU)
    p["w_hz"] = kaiming(ks[5], (H_GRU, H_GRU), H_GRU)
    p["w_hn"] = kaiming(ks[6], (H_GRU, H_GRU), H_GRU)
    p["b_r"] = jnp.zeros((H_GRU,), jnp.float32)    # b_ir + b_hr (both zero-initialized)
    p["b_z"] = jnp.zeros((H_GRU,), jnp.float32)
    p["b_ni"] = jnp.zeros((H_GRU,), jnp.float32)
    p["b_nh"] = jnp.zeros((H_GRU,), jnp.float32)

    din = H_GRU + input_dim
    p["x_w1"], p["x_b1"] = linear(ks[7], ks[8], din, MLP_H1)
    p["x_w2"], p["x_b2"] = linear(ks[9], ks[10], MLP_H1, MLP_H2)
    p["x_w3"], p["x_b3"] = linear(ks[11], ks[12], MLP_H2, past_len * NODE_DIM)
    p["y_w1"], p["y_b1"] = linear(ks[13], ks[14], din, MLP_H1)
    p["y_w2"], p["y_b2"] = linear(ks[15], ks[16], MLP_H1, MLP_H2)
    p["y_w3"], p["y_b3"] = linear(ks[17], ks[18], MLP_H2, future_len * NODE_DIM)
    return p


def reference_forward(x_true, x_hat, f, p, past_len, future_len):
    """Plain-JAX mirror of the PyTorch forward (for correctness checking)."""
    N, T, _ = x_true.shape
    xm = jnp.transpose(x_true - x_hat, (0, 2, 1))                       # (N, 3, T)  NCH
    y = lax.conv_general_dilated(xm, p["conv_w"], (1,), [(1, 1)],
                                 dimension_numbers=("NCH", "OIH", "NCH"))
    y = y + p["conv_b"][None, :, None]
    pe = jnp.maximum(jnp.transpose(y, (0, 2, 1)), 0.0)                  # (N, T, 32)
    h = jnp.zeros((N, H_GRU), jnp.float32)
    for t in range(T):
        x_t = pe[:, t, :]
        r = jax.nn.sigmoid(x_t @ p["w_ir"] + h @ p["w_hr"] + p["b_r"])
        z = jax.nn.sigmoid(x_t @ p["w_iz"] + h @ p["w_hz"] + p["b_z"])
        n = jnp.tanh(x_t @ p["w_in"] + p["b_ni"] + r * (h @ p["w_hn"] + p["b_nh"]))
        h = (1.0 - z) * n + z * h
    feat = jnp.concatenate([f, h], axis=1)

    def mlp(pref):
        h1 = jnp.maximum(feat @ p[pref + "_w1"] + p[pref + "_b1"], 0.0)
        h2 = jnp.maximum(h1 @ p[pref + "_w2"] + p[pref + "_b2"], 0.0)
        return h2 @ p[pref + "_w3"] + p[pref + "_b3"]

    return (mlp("x").reshape(N, past_len, NODE_DIM),
            mlp("y").reshape(N, future_len, NODE_DIM))


# ------------------------------------------------------------------------------ main
if __name__ == "__main__":
    N, PAST_LEN, FUTURE_LEN, INPUT_DIM = 16, 8, 12, 32

    key = jax.random.PRNGKey(0)
    k_xt, k_xh, k_f, k_p = jax.random.split(key, 4)
    x_true = jax.random.normal(k_xt, (N, PAST_LEN, NODE_DIM), jnp.float32)
    x_hat = jax.random.normal(k_xh, (N, PAST_LEN, NODE_DIM), jnp.float32)
    f = jax.random.normal(k_f, (N, INPUT_DIM), jnp.float32)
    params = init_params(k_p, PAST_LEN, FUTURE_LEN, INPUT_DIM)

    x_after, y_hat = decompose_block_forward(x_true, x_hat, f, params,
                                             PAST_LEN, FUTURE_LEN)
    jax.block_until_ready((x_after, y_hat))

    with jax.default_matmul_precision("highest"):
        x_ref, y_ref = reference_forward(x_true, x_hat, f, params, PAST_LEN, FUTURE_LEN)

    assert x_after.shape == (N, PAST_LEN, NODE_DIM)
    assert y_hat.shape == (N, FUTURE_LEN, NODE_DIM)
    # Decoder weights are bf16 inside the kernel (f32 accumulation), so compare at
    # bf16-level tolerance against the high-precision f32 reference.
    np.testing.assert_allclose(np.asarray(x_after), np.asarray(x_ref), rtol=2e-2, atol=2e-2)
    np.testing.assert_allclose(np.asarray(y_hat), np.asarray(y_ref), rtol=2e-2, atol=2e-2)

    print("KERNEL_OK")
</pallas_src>

<mosaic_0001>
module attributes {stable_mosaic.version = 11 : i64} {
  func.func @_decompose_kernel(%arg0: i32, %arg1: memref<8x8x9xf32, #tpu.memory_space<vmem>>, %arg2: memref<8x32xf32, #tpu.memory_space<vmem>>, %arg3: memref<9x32xf32, #tpu.memory_space<vmem>>, %arg4: memref<1x32xf32, #tpu.memory_space<vmem>>, %arg5: memref<32x384xf32, #tpu.memory_space<vmem>>, %arg6: memref<1x384xf32, #tpu.memory_space<vmem>>, %arg7: memref<128x384xf32, #tpu.memory_space<vmem>>, %arg8: memref<1x128xf32, #tpu.memory_space<vmem>>, %arg9: memref<32x1024xbf16, #tpu.memory_space<vmem>>, %arg10: memref<128x1024xbf16, #tpu.memory_space<vmem>>, %arg11: memref<1x1024xf32, #tpu.memory_space<vmem>>, %arg12: memref<512x256xbf16, #tpu.memory_space<vmem>>, %arg13: memref<1x256xf32, #tpu.memory_space<vmem>>, %arg14: memref<256x128xbf16, #tpu.memory_space<vmem>>, %arg15: memref<1x128xf32, #tpu.memory_space<vmem>>, %arg16: memref<512x256xbf16, #tpu.memory_space<vmem>>, %arg17: memref<1x256xf32, #tpu.memory_space<vmem>>, %arg18: memref<256x128xbf16, #tpu.memory_space<vmem>>, %arg19: memref<1x128xf32, #tpu.memory_space<vmem>>, %arg20: memref<8x128xf32, #tpu.memory_space<vmem>>, %arg21: memref<8x128xf32, #tpu.memory_space<vmem>>) attributes {dimension_semantics = [#tpu.dimension_semantics<parallel>], iteration_bounds = array<i64: 2>, scalar_prefetch = 0 : i64, scratch_operands = 0 : i64, tpu.core_type = #tpu.core_type<tc>, window_params = [{transform_indices = @transform_0, window_bounds = array<i64: 8, 8, 9>}, {transform_indices = @transform_1, window_bounds = array<i64: 8, 32>}, {pipeline_mode = #tpu.pipeline_mode<synchronous>, transform_indices = @transform_2, window_bounds = array<i64: 9, 32>}, {pipeline_mode = #tpu.pipeline_mode<synchronous>, transform_indices = @transform_3, window_bounds = array<i64: 1, 32>}, {pipeline_mode = #tpu.pipeline_mode<synchronous>, transform_indices = @transform_4, window_bounds = array<i64: 32, 384>}, {pipeline_mode = #tpu.pipeline_mode<synchronous>, transform_indices = @transform_5, window_bounds = array<i64: 1, 384>}, {pipeline_mode = #tpu.pipeline_mode<synchronous>, transform_indices = @transform_6, window_bounds = array<i64: 128, 384>}, {pipeline_mode = #tpu.pipeline_mode<synchronous>, transform_indices = @transform_7, window_bounds = array<i64: 1, 128>}, {pipeline_mode = #tpu.pipeline_mode<synchronous>, transform_indices = @transform_8, window_bounds = array<i64: 32, 1024>}, {pipeline_mode = #tpu.pipeline_mode<synchronous>, transform_indices = @transform_9, window_bounds = array<i64: 128, 1024>}, {pipeline_mode = #tpu.pipeline_mode<synchronous>, transform_indices = @transform_10, window_bounds = array<i64: 1, 1024>}, {pipeline_mode = #tpu.pipeline_mode<synchronous>, transform_indices = @transform_11, window_bounds = array<i64: 512, 256>}, {pipeline_mode = #tpu.pipeline_mode<synchronous>, transform_indices = @transform_12, window_bounds = array<i64: 1, 256>}, {pipeline_mode = #tpu.pipeline_mode<synchronous>, transform_indices = @transform_13, window_bounds = array<i64: 256, 128>}, {pipeline_mode = #tpu.pipeline_mode<synchronous>, transform_indices = @transform_14, window_bounds = array<i64: 1, 128>}, {pipeline_mode = #tpu.pipeline_mode<synchronous>, transform_indices = @transform_15, window_bounds = array<i64: 512, 256>}, {pipeline_mode = #tpu.pipeline_mode<synchronous>, transform_indices = @transform_16, window_bounds = array<i64: 1, 256>}, {pipeline_mode = #tpu.pipeline_mode<synchronous>, transform_indices = @transform_17, window_bounds = array<i64: 256, 128>}, {pipeline_mode = #tpu.pipeline_mode<synchronous>, transform_indices = @transform_18, window_bounds = array<i64: 1, 128>}, {transform_indices = @transform_19, window_bounds = array<i64: 8, 128>}, {transform_indices = @transform_20, window_bounds = array<i64: 8, 128>}]} {
    %c0 = arith.constant 0 : index
    %c0_0 = arith.constant 0 : index
    %c0_1 = arith.constant 0 : index
    %0 = vector.load %arg1[%c0, %c0_0, %c0_1] : memref<8x8x9xf32, #tpu.memory_space<vmem>>, vector<8x8x9xf32>
    %1 = vector.shape_cast %0 : vector<8x8x9xf32> to vector<64x9xf32>
    %c0_2 = arith.constant 0 : index
    %c0_3 = arith.constant 0 : index
    %2 = vector.load %arg3[%c0_2, %c0_3] : memref<9x32xf32, #tpu.memory_space<vmem>>, vector<9x32xf32>
    %cst = arith.constant dense<0.000000e+00> : vector<64x32xf32>
    %3 = tpu.matmul %1, %2, %cst {dimension_numbers = #tpu.dot_dimension_numbers<[1], [0], [0], [1], [0, 0, 1, 1], [], []>} : vector<64x9xf32>, vector<9x32xf32>, vector<64x32xf32> -> vector<64x32xf32>
    %c0_4 = arith.constant 0 : index
    %c0_5 = arith.constant 0 : index
    %4 = vector.load %arg4[%c0_4, %c0_5] : memref<1x32xf32, #tpu.memory_space<vmem>>, vector<1x32xf32>
    %5 = vector.broadcast %4 : vector<1x32xf32> to vector<64x32xf32>
    %6 = arith.addf %3, %5 : vector<64x32xf32>
    %cst_6 = arith.constant 0.000000e+00 : f32
    %7 = vector.broadcast %cst_6 : f32 to vector<64x32xf32>
    %8 = arith.maximumf %6, %7 : vector<64x32xf32>
    %c0_7 = arith.constant 0 : index
    %c0_8 = arith.constant 0 : index
    %9 = vector.load %arg5[%c0_7, %c0_8] : memref<32x384xf32, #tpu.memory_space<vmem>>, vector<32x384xf32>
    %cst_9 = arith.constant dense<0.000000e+00> : vector<64x384xf32>
    %10 = tpu.matmul %8, %9, %cst_9 {dimension_numbers = #tpu.dot_dimension_numbers<[1], [0], [0], [1], [0, 0, 1, 1], [], []>} : vector<64x32xf32>, vector<32x384xf32>, vector<64x384xf32> -> vector<64x384xf32>
    %c0_10 = arith.constant 0 : index
    %c0_11 = arith.constant 0 : index
    %11 = vector.load %arg6[%c0_10, %c0_11] : memref<1x384xf32, #tpu.memory_space<vmem>>, vector<1x384xf32>
    %12 = vector.broadcast %11 : vector<1x384xf32> to vector<64x384xf32>
    %13 = arith.addf %10, %12 : vector<64x384xf32>
    %c0_12 = arith.constant 0 : index
    %c0_13 = arith.constant 0 : index
    %14 = vector.load %arg7[%c0_12, %c0_13] : memref<128x384xf32, #tpu.memory_space<vmem>>, vector<128x384xf32>
    %c0_14 = arith.constant 0 : index
    %c0_15 = arith.constant 0 : index
    %15 = vector.load %arg8[%c0_14, %c0_15] : memref<1x128xf32, #tpu.memory_space<vmem>>, vector<1x128xf32>
    %cst_16 = arith.constant 0.000000e+00 : f32
    %16 = vector.broadcast %cst_16 : f32 to vector<8x128xf32>
    %cst_17 = arith.constant dense<0.000000e+00> : vector<8x384xf32>
    %17 = tpu.matmul %16, %14, %cst_17 {dimension_numbers = #tpu.dot_dimension_numbers<[1], [0], [0], [1], [0, 0, 1, 1], [], []>} : vector<8x128xf32>, vector<128x384xf32>, vector<8x384xf32> -> vector<8x384xf32>
    %18 = vector.extract_strided_slice %13 {offsets = [0, 0], sizes = [8, 384], strides = [1, 1]} : vector<64x384xf32> to vector<8x384xf32>
    %19 = vector.extract_strided_slice %18 {offsets = [0, 0], sizes = [8, 128], strides = [1, 1]} : vector<8x384xf32> to vector<8x128xf32>
    %20 = vector.extract_strided_slice %17 {offsets = [0, 0], sizes = [8, 128], strides = [1, 1]} : vector<8x384xf32> to vector<8x128xf32>
    %21 = arith.addf %19, %20 : vector<8x128xf32>
    %22 = arith.negf %21 : vector<8x128xf32>
    %23 = math.exp %22 : vector<8x128xf32>
    %cst_18 = arith.constant 1.000000e+00 : f32
    %24 = vector.broadcast %cst_18 : f32 to vector<8x128xf32>
    %25 = arith.addf %24, %23 : vector<8x128xf32>
    %26 = arith.divf %24, %25 : vector<8x128xf32>
    %27 = vector.extract_strided_slice %18 {offsets = [0, 128], sizes = [8, 128], strides = [1, 1]} : vector<8x384xf32> to vector<8x128xf32>
    %28 = vector.extract_strided_slice %17 {offsets = [0, 128], sizes = [8, 128], strides = [1, 1]} : vector<8x384xf32> to vector<8x128xf32>
    %29 = arith.addf %27, %28 : vector<8x128xf32>
    %30 = arith.negf %29 : vector<8x128xf32>
    %31 = math.exp %30 : vector<8x128xf32>
    %cst_19 = arith.constant 1.000000e+00 : f32
    %32 = vector.broadcast %cst_19 : f32 to vector<8x128xf32>
    %33 = arith.addf %32, %31 : vector<8x128xf32>
    %34 = arith.divf %32, %33 : vector<8x128xf32>
    %35 = vector.extract_strided_slice %18 {offsets = [0, 256], sizes = [8, 128], strides = [1, 1]} : vector<8x384xf32> to vector<8x128xf32>
    %36 = vector.extract_strided_slice %17 {offsets = [0, 256], sizes = [8, 128], strides = [1, 1]} : vector<8x384xf32> to vector<8x128xf32>
    %37 = vector.broadcast %15 : vector<1x128xf32> to vector<8x128xf32>
    %38 = arith.addf %36, %37 : vector<8x128xf32>
    %39 = arith.mulf %26, %38 : vector<8x128xf32>
    %40 = arith.addf %35, %39 : vector<8x128xf32>
    %41 = math.tanh %40 : vector<8x128xf32>
    %cst_20 = arith.constant 1.000000e+00 : f32
    %42 = vector.broadcast %cst_20 : f32 to vector<8x128xf32>
    %43 = arith.subf %42, %34 : vector<8x128xf32>
    %44 = arith.mulf %43, %41 : vector<8x128xf32>
    %45 = arith.mulf %34, %16 : vector<8x128xf32>
    %46 = arith.addf %44, %45 : vector<8x128xf32>
    %cst_21 = arith.constant dense<0.000000e+00> : vector<8x384xf32>
    %47 = tpu.matmul %46, %14, %cst_21 {dimension_numbers = #tpu.dot_dimension_numbers<[1], [0], [0], [1], [0, 0, 1, 1], [], []>} : vector<8x128xf32>, vector<128x384xf32>, vector<8x384xf32> -> vector<8x384xf32>
    %48 = vector.extract_strided_slice %13 {offsets = [8, 0], sizes = [8, 384], strides = [1, 1]} : vector<64x384xf32> to vector<8x384xf32>
    %49 = vector.extract_strided_slice %48 {offsets = [0, 0], sizes = [8, 128], strides = [1, 1]} : vector<8x384xf32> to vector<8x128xf32>
    %50 = vector.extract_strided_slice %47 {offsets = [0, 0], sizes = [8, 128], strides = [1, 1]} : vector<8x384xf32> to vector<8x128xf32>
    %51 = arith.addf %49, %50 : vector<8x128xf32>
    %52 = arith.negf %51 : vector<8x128xf32>
    %53 = math.exp %52 : vector<8x128xf32>
    %cst_22 = arith.constant 1.000000e+00 : f32
    %54 = vector.broadcast %cst_22 : f32 to vector<8x128xf32>
    %55 = arith.addf %54, %53 : vector<8x128xf32>
    %56 = arith.divf %54, %55 : vector<8x128xf32>
    %57 = vector.extract_strided_slice %48 {offsets = [0, 128], sizes = [8, 128], strides = [1, 1]} : vector<8x384xf32> to vector<8x128xf32>
    %58 = vector.extract_strided_slice %47 {offsets = [0, 128], sizes = [8, 128], strides = [1, 1]} : vector<8x384xf32> to vector<8x128xf32>
    %59 = arith.addf %57, %58 : vector<8x128xf32>
    %60 = arith.negf %59 : vector<8x128xf32>
    %61 = math.exp %60 : vector<8x128xf32>
    %cst_23 = arith.constant 1.000000e+00 : f32
    %62 = vector.broadcast %cst_23 : f32 to vector<8x128xf32>
    %63 = arith.addf %62, %61 : vector<8x128xf32>
    %64 = arith.divf %62, %63 : vector<8x128xf32>
    %65 = vector.extract_strided_slice %48 {offsets = [0, 256], sizes = [8, 128], strides = [1, 1]} : vector<8x384xf32> to vector<8x128xf32>
    %66 = vector.extract_strided_slice %47 {offsets = [0, 256], sizes = [8, 128], strides = [1, 1]} : vector<8x384xf32> to vector<8x128xf32>
    %67 = vector.broadcast %15 : vector<1x128xf32> to vector<8x128xf32>
    %68 = arith.addf %66, %67 : vector<8x128xf32>
    %69 = arith.mulf %56, %68 : vector<8x128xf32>
    %70 = arith.addf %65, %69 : vector<8x128xf32>
    %71 = math.tanh %70 : vector<8x128xf32>
    %cst_24 = arith.constant 1.000000e+00 : f32
    %72 = vector.broadcast %cst_24 : f32 to vector<8x128xf32>
    %73 = arith.subf %72, %64 : vector<8x128xf32>
    %74 = arith.mulf %73, %71 : vector<8x128xf32>
    %75 = arith.mulf %64, %46 : vector<8x128xf32>
    %76 = arith.addf %74, %75 : vector<8x128xf32>
    %cst_25 = arith.constant dense<0.000000e+00> : vector<8x384xf32>
    %77 = tpu.matmul %76, %14, %cst_25 {dimension_numbers = #tpu.dot_dimension_numbers<[1], [0], [0], [1], [0, 0, 1, 1], [], []>} : vector<8x128xf32>, vector<128x384xf32>, vector<8x384xf32> -> vector<8x384xf32>
    %78 = vector.extract_strided_slice %13 {offsets = [16, 0], sizes = [8, 384], strides = [1, 1]} : vector<64x384xf32> to vector<8x384xf32>
    %79 = vector.extract_strided_slice %78 {offsets = [0, 0], sizes = [8, 128], strides = [1, 1]} : vector<8x384xf32> to vector<8x128xf32>
    %80 = vector.extract_strided_slice %77 {offsets = [0, 0], sizes = [8, 128], strides = [1, 1]} : vector<8x384xf32> to vector<8x128xf32>
    %81 = arith.addf %79, %80 : vector<8x128xf32>
    %82 = arith.negf %81 : vector<8x128xf32>
    %83 = math.exp %82 : vector<8x128xf32>
    %cst_26 = arith.constant 1.000000e+00 : f32
    %84 = vector.broadcast %cst_26 : f32 to vector<8x128xf32>
    %85 = arith.addf %84, %83 : vector<8x128xf32>
    %86 = arith.divf %84, %85 : vector<8x128xf32>
    %87 = vector.extract_strided_slice %78 {offsets = [0, 128], sizes = [8, 128], strides = [1, 1]} : vector<8x384xf32> to vector<8x128xf32>
    %88 = vector.extract_strided_slice %77 {offsets = [0, 128], sizes = [8, 128], strides = [1, 1]} : vector<8x384xf32> to vector<8x128xf32>
    %89 = arith.addf %87, %88 : vector<8x128xf32>
    %90 = arith.negf %89 : vector<8x128xf32>
    %91 = math.exp %90 : vector<8x128xf32>
    %cst_27 = arith.constant 1.000000e+00 : f32
    %92 = vector.broadcast %cst_27 : f32 to vector<8x128xf32>
    %93 = arith.addf %92, %91 : vector<8x128xf32>
    %94 = arith.divf %92, %93 : vector<8x128xf32>
    %95 = vector.extract_strided_slice %78 {offsets = [0, 256], sizes = [8, 128], strides = [1, 1]} : vector<8x384xf32> to vector<8x128xf32>
    %96 = vector.extract_strided_slice %77 {offsets = [0, 256], sizes = [8, 128], strides = [1, 1]} : vector<8x384xf32> to vector<8x128xf32>
    %97 = vector.broadcast %15 : vector<1x128xf32> to vector<8x128xf32>
    %98 = arith.addf %96, %97 : vector<8x128xf32>
    %99 = arith.mulf %86, %98 : vector<8x128xf32>
    %100 = arith.addf %95, %99 : vector<8x128xf32>
    %101 = math.tanh %100 : vector<8x128xf32>
    %cst_28 = arith.constant 1.000000e+00 : f32
    %102 = vector.broadcast %cst_28 : f32 to vector<8x128xf32>
    %103 = arith.subf %102, %94 : vector<8x128xf32>
    %104 = arith.mulf %103, %101 : vector<8x128xf32>
    %105 = arith.mulf %94, %76 : vector<8x128xf32>
    %106 = arith.addf %104, %105 : vector<8x128xf32>
    %cst_29 = arith.constant dense<0.000000e+00> : vector<8x384xf32>
    %107 = tpu.matmul %106, %14, %cst_29 {dimension_numbers = #tpu.dot_dimension_numbers<[1], [0], [0], [1], [0, 0, 1, 1], [], []>} : vector<8x128xf32>, vector<128x384xf32>, vector<8x384xf32> -> vector<8x384xf32>
    %108 = vector.extract_strided_slice %13 {offsets = [24, 0], sizes = [8, 384], strides = [1, 1]} : vector<64x384xf32> to vector<8x384xf32>
    %109 = vector.extract_strided_slice %108 {offsets = [0, 0], sizes = [8, 128], strides = [1, 1]} : vector<8x384xf32> to vector<8x128xf32>
    %110 = vector.extract_strided_slice %107 {offsets = [0, 0], sizes = [8, 128], strides = [1, 1]} : vector<8x384xf32> to vector<8x128xf32>
    %111 = arith.addf %109, %110 : vector<8x128xf32>
    %112 = arith.negf %111 : vector<8x128xf32>
    %113 = math.exp %112 : vector<8x128xf32>
    %cst_30 = arith.constant 1.000000e+00 : f32
    %114 = vector.broadcast %cst_30 : f32 to vector<8x128xf32>
    %115 = arith.addf %114, %113 : vector<8x128xf32>
    %116 = arith.divf %114, %115 : vector<8x128xf32>
    %117 = vector.extract_strided_slice %108 {offsets = [0, 128], sizes = [8, 128], strides = [1, 1]} : vector<8x384xf32> to vector<8x128xf32>
    %118 = vector.extract_strided_slice %107 {offsets = [0, 128], sizes = [8, 128], strides = [1, 1]} : vector<8x384xf32> to vector<8x128xf32>
    %119 = arith.addf %117, %118 : vector<8x128xf32>
    %120 = arith.negf %119 : vector<8x128xf32>
    %121 = math.exp %120 : vector<8x128xf32>
    %cst_31 = arith.constant 1.000000e+00 : f32
    %122 = vector.broadcast %cst_31 : f32 to vector<8x128xf32>
    %123 = arith.addf %122, %121 : vector<8x128xf32>
    %124 = arith.divf %122, %123 : vector<8x128xf32>
    %125 = vector.extract_strided_slice %108 {offsets = [0, 256], sizes = [8, 128], strides = [1, 1]} : vector<8x384xf32> to vector<8x128xf32>
    %126 = vector.extract_strided_slice %107 {offsets = [0, 256], sizes = [8, 128], strides = [1, 1]} : vector<8x384xf32> to vector<8x128xf32>
    %127 = vector.broadcast %15 : vector<1x128xf32> to vector<8x128xf32>
    %128 = arith.addf %126, %127 : vector<8x128xf32>
    %129 = arith.mulf %116, %128 : vector<8x128xf32>
    %130 = arith.addf %125, %129 : vector<8x128xf32>
    %131 = math.tanh %130 : vector<8x128xf32>
    %cst_32 = arith.constant 1.000000e+00 : f32
    %132 = vector.broadcast %cst_32 : f32 to vector<8x128xf32>
    %133 = arith.subf %132, %124 : vector<8x128xf32>
    %134 = arith.mulf %133, %131 : vector<8x128xf32>
    %135 = arith.mulf %124, %106 : vector<8x128xf32>
    %136 = arith.addf %134, %135 : vector<8x128xf32>
    %cst_33 = arith.constant dense<0.000000e+00> : vector<8x384xf32>
    %137 = tpu.matmul %136, %14, %cst_33 {dimension_numbers = #tpu.dot_dimension_numbers<[1], [0], [0], [1], [0, 0, 1, 1], [], []>} : vector<8x128xf32>, vector<128x384xf32>, vector<8x384xf32> -> vector<8x384xf32>
    %138 = vector.extract_strided_slice %13 {offsets = [32, 0], sizes = [8, 384], strides = [1, 1]} : vector<64x384xf32> to vector<8x384xf32>
    %139 = vector.extract_strided_slice %138 {offsets = [0, 0], sizes = [8, 128], strides = [1, 1]} : vector<8x384xf32> to vector<8x128xf32>
    %140 = vector.extract_strided_slice %137 {offsets = [0, 0], sizes = [8, 128], strides = [1, 1]} : vector<8x384xf32> to vector<8x128xf32>
    %141 = arith.addf %139, %140 : vector<8x128xf32>
    %142 = arith.negf %141 : vector<8x128xf32>
    %143 = math.exp %142 : vector<8x128xf32>
    %cst_34 = arith.constant 1.000000e+00 : f32
    %144 = vector.broadcast %cst_34 : f32 to vector<8x128xf32>
    %145 = arith.addf %144, %143 : vector<8x128xf32>
    %146 = arith.divf %144, %145 : vector<8x128xf32>
    %147 = vector.extract_strided_slice %138 {offsets = [0, 128], sizes = [8, 128], strides = [1, 1]} : vector<8x384xf32> to vector<8x128xf32>
    %148 = vector.extract_strided_slice %137 {offsets = [0, 128], sizes = [8, 128], strides = [1, 1]} : vector<8x384xf32> to vector<8x128xf32>
    %149 = arith.addf %147, %148 : vector<8x128xf32>
    %150 = arith.negf %149 : vector<8x128xf32>
    %151 = math.exp %150 : vector<8x128xf32>
    %cst_35 = arith.constant 1.000000e+00 : f32
    %152 = vector.broadcast %cst_35 : f32 to vector<8x128xf32>
    %153 = arith.addf %152, %151 : vector<8x128xf32>
    %154 = arith.divf %152, %153 : vector<8x128xf32>
    %155 = vector.extract_strided_slice %138 {offsets = [0, 256], sizes = [8, 128], strides = [1, 1]} : vector<8x384xf32> to vector<8x128xf32>
    %156 = vector.extract_strided_slice %137 {offsets = [0, 256], sizes = [8, 128], strides = [1, 1]} : vector<8x384xf32> to vector<8x128xf32>
    %157 = vector.broadcast %15 : vector<1x128xf32> to vector<8x128xf32>
    %158 = arith.addf %156, %157 : vector<8x128xf32>
    %159 = arith.mulf %146, %158 : vector<8x128xf32>
    %160 = arith.addf %155, %159 : vector<8x128xf32>
    %161 = math.tanh %160 : vector<8x128xf32>
    %cst_36 = arith.constant 1.000000e+00 : f32
    %162 = vector.broadcast %cst_36 : f32 to vector<8x128xf32>
    %163 = arith.subf %162, %154 : vector<8x128xf32>
    %164 = arith.mulf %163, %161 : vector<8x128xf32>
    %165 = arith.mulf %154, %136 : vector<8x128xf32>
    %166 = arith.addf %164, %165 : vector<8x128xf32>
    %cst_37 = arith.constant dense<0.000000e+00> : vector<8x384xf32>
    %167 = tpu.matmul %166, %14, %cst_37 {dimension_numbers = #tpu.dot_dimension_numbers<[1], [0], [0], [1], [0, 0, 1, 1], [], []>} : vector<8x128xf32>, vector<128x384xf32>, vector<8x384xf32> -> vector<8x384xf32>
    %168 = vector.extract_strided_slice %13 {offsets = [40, 0], sizes = [8, 384], strides = [1, 1]} : vector<64x384xf32> to vector<8x384xf32>
    %169 = vector.extract_strided_slice %168 {offsets = [0, 0], sizes = [8, 128], strides = [1, 1]} : vector<8x384xf32> to vector<8x128xf32>
    %170 = vector.extract_strided_slice %167 {offsets = [0, 0], sizes = [8, 128], strides = [1, 1]} : vector<8x384xf32> to vector<8x128xf32>
    %171 = arith.addf %169, %170 : vector<8x128xf32>
    %172 = arith.negf %171 : vector<8x128xf32>
    %173 = math.exp %172 : vector<8x128xf32>
    %cst_38 = arith.constant 1.000000e+00 : f32
    %174 = vector.broadcast %cst_38 : f32 to vector<8x128xf32>
    %175 = arith.addf %174, %173 : vector<8x128xf32>
    %176 = arith.divf %174, %175 : vector<8x128xf32>
    %177 = vector.extract_strided_slice %168 {offsets = [0, 128], sizes = [8, 128], strides = [1, 1]} : vector<8x384xf32> to vector<8x128xf32>
    %178 = vector.extract_strided_slice %167 {offsets = [0, 128], sizes = [8, 128], strides = [1, 1]} : vector<8x384xf32> to vector<8x128xf32>
    %179 = arith.addf %177, %178 : vector<8x128xf32>
    %180 = arith.negf %179 : vector<8x128xf32>
    %181 = math.exp %180 : vector<8x128xf32>
    %cst_39 = arith.constant 1.000000e+00 : f32
    %182 = vector.broadcast %cst_39 : f32 to vector<8x128xf32>
    %183 = arith.addf %182, %181 : vector<8x128xf32>
    %184 = arith.divf %182, %183 : vector<8x128xf32>
    %185 = vector.extract_strided_slice %168 {offsets = [0, 256], sizes = [8, 128], strides = [1, 1]} : vector<8x384xf32> to vector<8x128xf32>
    %186 = vector.extract_strided_slice %167 {offsets = [0, 256], sizes = [8, 128], strides = [1, 1]} : vector<8x384xf32> to vector<8x128xf32>
    %187 = vector.broadcast %15 : vector<1x128xf32> to vector<8x128xf32>
    %188 = arith.addf %186, %187 : vector<8x128xf32>
    %189 = arith.mulf %176, %188 : vector<8x128xf32>
    %190 = arith.addf %185, %189 : vector<8x128xf32>
    %191 = math.tanh %190 : vector<8x128xf32>
    %cst_40 = arith.constant 1.000000e+00 : f32
    %192 = vector.broadcast %cst_40 : f32 to vector<8x128xf32>
    %193 = arith.subf %192, %184 : vector<8x128xf32>
    %194 = arith.mulf %193, %191 : vector<8x128xf32>
    %195 = arith.mulf %184, %166 : vector<8x128xf32>
    %196 = arith.addf %194, %195 : vector<8x128xf32>
    %cst_41 = arith.constant dense<0.000000e+00> : vector<8x384xf32>
    %197 = tpu.matmul %196, %14, %cst_41 {dimension_numbers = #tpu.dot_dimension_numbers<[1], [0], [0], [1], [0, 0, 1, 1], [], []>} : vector<8x128xf32>, vector<128x384xf32>, vector<8x384xf32> -> vector<8x384xf32>
    %198 = vector.extract_strided_slice %13 {offsets = [48, 0], sizes = [8, 384], strides = [1, 1]} : vector<64x384xf32> to vector<8x384xf32>
    %199 = vector.extract_strided_slice %198 {offsets = [0, 0], sizes = [8, 128], strides = [1, 1]} : vector<8x384xf32> to vector<8x128xf32>
    %200 = vector.extract_strided_slice %197 {offsets = [0, 0], sizes = [8, 128], strides = [1, 1]} : vector<8x384xf32> to vector<8x128xf32>
    %201 = arith.addf %199, %200 : vector<8x128xf32>
    %202 = arith.negf %201 : vector<8x128xf32>
    %203 = math.exp %202 : vector<8x128xf32>
    %cst_42 = arith.constant 1.000000e+00 : f32
    %204 = vector.broadcast %cst_42 : f32 to vector<8x128xf32>
    %205 = arith.addf %204, %203 : vector<8x128xf32>
    %206 = arith.divf %204, %205 : vector<8x128xf32>
    %207 = vector.extract_strided_slice %198 {offsets = [0, 128], sizes = [8, 128], strides = [1, 1]} : vector<8x384xf32> to vector<8x128xf32>
    %208 = vector.extract_strided_slice %197 {offsets = [0, 128], sizes = [8, 128], strides = [1, 1]} : vector<8x384xf32> to vector<8x128xf32>
    %209 = arith.addf %207, %208 : vector<8x128xf32>
    %210 = arith.negf %209 : vector<8x128xf32>
    %211 = math.exp %210 : vector<8x128xf32>
    %cst_43 = arith.constant 1.000000e+00 : f32
    %212 = vector.broadcast %cst_43 : f32 to vector<8x128xf32>
    %213 = arith.addf %212, %211 : vector<8x128xf32>
    %214 = arith.divf %212, %213 : vector<8x128xf32>
    %215 = vector.extract_strided_slice %198 {offsets = [0, 256], sizes = [8, 128], strides = [1, 1]} : vector<8x384xf32> to vector<8x128xf32>
    %216 = vector.extract_strided_slice %197 {offsets = [0, 256], sizes = [8, 128], strides = [1, 1]} : vector<8x384xf32> to vector<8x128xf32>
    %217 = vector.broadcast %15 : vector<1x128xf32> to vector<8x128xf32>
    %218 = arith.addf %216, %217 : vector<8x128xf32>
    %219 = arith.mulf %206, %218 : vector<8x128xf32>
    %220 = arith.addf %215, %219 : vector<8x128xf32>
    %221 = math.tanh %220 : vector<8x128xf32>
    %cst_44 = arith.constant 1.000000e+00 : f32
    %222 = vector.broadcast %cst_44 : f32 to vector<8x128xf32>
    %223 = arith.subf %222, %214 : vector<8x128xf32>
    %224 = arith.mulf %223, %221 : vector<8x128xf32>
    %225 = arith.mulf %214, %196 : vector<8x128xf32>
    %226 = arith.addf %224, %225 : vector<8x128xf32>
    %cst_45 = arith.constant dense<0.000000e+00> : vector<8x384xf32>
    %227 = tpu.matmul %226, %14, %cst_45 {dimension_numbers = #tpu.dot_dimension_numbers<[1], [0], [0], [1], [0, 0, 1, 1], [], []>} : vector<8x128xf32>, vector<128x384xf32>, vector<8x384xf32> -> vector<8x384xf32>
    %228 = vector.extract_strided_slice %13 {offsets = [56, 0], sizes = [8, 384], strides = [1, 1]} : vector<64x384xf32> to vector<8x384xf32>
    %229 = vector.extract_strided_slice %228 {offsets = [0, 0], sizes = [8, 128], strides = [1, 1]} : vector<8x384xf32> to vector<8x128xf32>
    %230 = vector.extract_strided_slice %227 {offsets = [0, 0], sizes = [8, 128], strides = [1, 1]} : vector<8x384xf32> to vector<8x128xf32>
    %231 = arith.addf %229, %230 : vector<8x128xf32>
    %232 = arith.negf %231 : vector<8x128xf32>
    %233 = math.exp %232 : vector<8x128xf32>
    %cst_46 = arith.constant 1.000000e+00 : f32
    %234 = vector.broadcast %cst_46 : f32 to vector<8x128xf32>
    %235 = arith.addf %234, %233 : vector<8x128xf32>
    %236 = arith.divf %234, %235 : vector<8x128xf32>
    %237 = vector.extract_strided_slice %228 {offsets = [0, 128], sizes = [8, 128], strides = [1, 1]} : vector<8x384xf32> to vector<8x128xf32>
    %238 = vector.extract_strided_slice %227 {offsets = [0, 128], sizes = [8, 128], strides = [1, 1]} : vector<8x384xf32> to vector<8x128xf32>
    %239 = arith.addf %237, %238 : vector<8x128xf32>
    %240 = arith.negf %239 : vector<8x128xf32>
    %241 = math.exp %240 : vector<8x128xf32>
    %cst_47 = arith.constant 1.000000e+00 : f32
    %242 = vector.broadcast %cst_47 : f32 to vector<8x128xf32>
    %243 = arith.addf %242, %241 : vector<8x128xf32>
    %244 = arith.divf %242, %243 : vector<8x128xf32>
    %245 = vector.extract_strided_slice %228 {offsets = [0, 256], sizes = [8, 128], strides = [1, 1]} : vector<8x384xf32> to vector<8x128xf32>
    %246 = vector.extract_strided_slice %227 {offsets = [0, 256], sizes = [8, 128], strides = [1, 1]} : vector<8x384xf32> to vector<8x128xf32>
    %247 = vector.broadcast %15 : vector<1x128xf32> to vector<8x128xf32>
    %248 = arith.addf %246, %247 : vector<8x128xf32>
    %249 = arith.mulf %236, %248 : vector<8x128xf32>
    %250 = arith.addf %245, %249 : vector<8x128xf32>
    %251 = math.tanh %250 : vector<8x128xf32>
    %cst_48 = arith.constant 1.000000e+00 : f32
    %252 = vector.broadcast %cst_48 : f32 to vector<8x128xf32>
    %253 = arith.subf %252, %244 : vector<8x128xf32>
    %254 = arith.mulf %253, %251 : vector<8x128xf32>
    %255 = arith.mulf %244, %226 : vector<8x128xf32>
    %256 = arith.addf %254, %255 : vector<8x128xf32>
    %c0_49 = arith.constant 0 : index
    %c0_50 = arith.constant 0 : index
    %257 = vector.load %arg2[%c0_49, %c0_50] : memref<8x32xf32, #tpu.memory_space<vmem>>, vector<8x32xf32>
    %258 = arith.truncf %257 : vector<8x32xf32> to vector<8x32xbf16>
    %259 = arith.truncf %256 : vector<8x128xf32> to vector<8x128xbf16>
    %c0_51 = arith.constant 0 : index
    %c0_52 = arith.constant 0 : index
    %260 = vector.load %arg9[%c0_51, %c0_52] : memref<32x1024xbf16, #tpu.memory_space<vmem>>, vector<32x1024xbf16>
    %cst_53 = arith.constant dense<0.000000e+00> : vector<8x1024xf32>
    %261 = tpu.matmul %258, %260, %cst_53 {dimension_numbers = #tpu.dot_dimension_numbers<[1], [0], [0], [1], [0, 0, 1, 1], [], []>} : vector<8x32xbf16>, vector<32x1024xbf16>, vector<8x1024xf32> -> vector<8x1024xf32>
    %c0_54 = arith.constant 0 : index
    %c0_55 = arith.constant 0 : index
    %262 = vector.load %arg10[%c0_54, %c0_55] : memref<128x1024xbf16, #tpu.memory_space<vmem>>, vector<128x1024xbf16>
    %cst_56 = arith.constant dense<0.000000e+00> : vector<8x1024xf32>
    %263 = tpu.matmul %259, %262, %cst_56 {dimension_numbers = #tpu.dot_dimension_numbers<[1], [0], [0], [1], [0, 0, 1, 1], [], []>} : vector<8x128xbf16>, vector<128x1024xbf16>, vector<8x1024xf32> -> vector<8x1024xf32>
    %264 = arith.addf %261, %263 : vector<8x1024xf32>
    %c0_57 = arith.constant 0 : index
    %c0_58 = arith.constant 0 : index
    %265 = vector.load %arg11[%c0_57, %c0_58] : memref<1x1024xf32, #tpu.memory_space<vmem>>, vector<1x1024xf32>
    %266 = vector.broadcast %265 : vector<1x1024xf32> to vector<8x1024xf32>
    %267 = arith.addf %264, %266 : vector<8x1024xf32>
    %cst_59 = arith.constant 0.000000e+00 : f32
    %268 = vector.broadcast %cst_59 : f32 to vector<8x1024xf32>
    %269 = arith.maximumf %267, %268 : vector<8x1024xf32>
    %270 = vector.extract_strided_slice %269 {offsets = [0, 0], sizes = [8, 512], strides = [1, 1]} : vector<8x1024xf32> to vector<8x512xf32>
    %271 = arith.truncf %270 : vector<8x512xf32> to vector<8x512xbf16>
    %272 = vector.extract_strided_slice %269 {offsets = [0, 512], sizes = [8, 512], strides = [1, 1]} : vector<8x1024xf32> to vector<8x512xf32>
    %273 = arith.truncf %272 : vector<8x512xf32> to vector<8x512xbf16>
    %c0_60 = arith.constant 0 : index
    %c0_61 = arith.constant 0 : index
    %274 = vector.load %arg12[%c0_60, %c0_61] : memref<512x256xbf16, #tpu.memory_space<vmem>>, vector<512x256xbf16>
    %cst_62 = arith.constant dense<0.000000e+00> : vector<8x256xf32>
    %275 = tpu.matmul %271, %274, %cst_62 {dimension_numbers = #tpu.dot_dimension_numbers<[1], [0], [0], [1], [0, 0, 1, 1], [], []>} : vector<8x512xbf16>, vector<512x256xbf16>, vector<8x256xf32> -> vector<8x256xf32>
    %c0_63 = arith.constant 0 : index
    %c0_64 = arith.constant 0 : index
    %276 = vector.load %arg13[%c0_63, %c0_64] : memref<1x256xf32, #tpu.memory_space<vmem>>, vector<1x256xf32>
    %277 = vector.broadcast %276 : vector<1x256xf32> to vector<8x256xf32>
    %278 = arith.addf %275, %277 : vector<8x256xf32>
    %cst_65 = arith.constant 0.000000e+00 : f32
    %279 = vector.broadcast %cst_65 : f32 to vector<8x256xf32>
    %280 = arith.maximumf %278, %279 : vector<8x256xf32>
    %281 = arith.truncf %280 : vector<8x256xf32> to vector<8x256xbf16>
    %c0_66 = arith.constant 0 : index
    %c0_67 = arith.constant 0 : index
    %282 = vector.load %arg14[%c0_66, %c0_67] : memref<256x128xbf16, #tpu.memory_space<vmem>>, vector<256x128xbf16>
    %cst_68 = arith.constant dense<0.000000e+00> : vector<8x128xf32>
    %283 = tpu.matmul %281, %282, %cst_68 {dimension_numbers = #tpu.dot_dimension_numbers<[1], [0], [0], [1], [0, 0, 1, 1], [], []>} : vector<8x256xbf16>, vector<256x128xbf16>, vector<8x128xf32> -> vector<8x128xf32>
    %c0_69 = arith.constant 0 : index
    %c0_70 = arith.constant 0 : index
    %284 = vector.load %arg15[%c0_69, %c0_70] : memref<1x128xf32, #tpu.memory_space<vmem>>, vector<1x128xf32>
    %285 = vector.broadcast %284 : vector<1x128xf32> to vector<8x128xf32>
    %286 = arith.addf %283, %285 : vector<8x128xf32>
    %c0_71 = arith.constant 0 : index
    %c0_72 = arith.constant 0 : index
    %287 = vector.load %arg20[%c0_71, %c0_72] : memref<8x128xf32, #tpu.memory_space<vmem>>, vector<8x128xf32>
    tpu.vector_store %arg20[%c0_71, %c0_72], %286 {strides = array<i32>} : memref<8x128xf32, #tpu.memory_space<vmem>>, vector<8x128xf32>,
    %c0_73 = arith.constant 0 : index
    %c0_74 = arith.constant 0 : index
    %288 = vector.load %arg16[%c0_73, %c0_74] : memref<512x256xbf16, #tpu.memory_space<vmem>>, vector<512x256xbf16>
    %cst_75 = arith.constant dense<0.000000e+00> : vector<8x256xf32>
    %289 = tpu.matmul %273, %288, %cst_75 {dimension_numbers = #tpu.dot_dimension_numbers<[1], [0], [0], [1], [0, 0, 1, 1], [], []>} : vector<8x512xbf16>, vector<512x256xbf16>, vector<8x256xf32> -> vector<8x256xf32>
    %c0_76 = arith.constant 0 : index
    %c0_77 = arith.constant 0 : index
    %290 = vector.load %arg17[%c0_76, %c0_77] : memref<1x256xf32, #tpu.memory_space<vmem>>, vector<1x256xf32>
    %291 = vector.broadcast %290 : vector<1x256xf32> to vector<8x256xf32>
    %292 = arith.addf %289, %291 : vector<8x256xf32>
    %cst_78 = arith.constant 0.000000e+00 : f32
    %293 = vector.broadcast %cst_78 : f32 to vector<8x256xf32>
    %294 = arith.maximumf %292, %293 : vector<8x256xf32>
    %295 = arith.truncf %294 : vector<8x256xf32> to vector<8x256xbf16>
    %c0_79 = arith.constant 0 : index
    %c0_80 = arith.constant 0 : index
    %296 = vector.load %arg18[%c0_79, %c0_80] : memref<256x128xbf16, #tpu.memory_space<vmem>>, vector<256x128xbf16>
    %cst_81 = arith.constant dense<0.000000e+00> : vector<8x128xf32>
    %297 = tpu.matmul %295, %296, %cst_81 {dimension_numbers = #tpu.dot_dimension_numbers<[1], [0], [0], [1], [0, 0, 1, 1], [], []>} : vector<8x256xbf16>, vector<256x128xbf16>, vector<8x128xf32> -> vector<8x128xf32>
    %c0_82 = arith.constant 0 : index
    %c0_83 = arith.constant 0 : index
    %298 = vector.load %arg19[%c0_82, %c0_83] : memref<1x128xf32, #tpu.memory_space<vmem>>, vector<1x128xf32>
    %299 = vector.broadcast %298 : vector<1x128xf32> to vector<8x128xf32>
    %300 = arith.addf %297, %299 : vector<8x128xf32>
    %c0_84 = arith.constant 0 : index
    %c0_85 = arith.constant 0 : index
    %301 = vector.load %arg21[%c0_84, %c0_85] : memref<8x128xf32, #tpu.memory_space<vmem>>, vector<8x128xf32>
    tpu.vector_store %arg21[%c0_84, %c0_85], %300 {strides = array<i32>} : memref<8x128xf32, #tpu.memory_space<vmem>>, vector<8x128xf32>,
    return
  }
  func.func @transform_0(%arg0: i32) -> (i32, i32, i32) {
    %c0_i32 = arith.constant 0 : i32
    %c0_i32_0 = arith.constant 0 : i32
    %c0_i32_1 = arith.constant 0 : i32
    return %c0_i32, %arg0, %c0_i32_0 : i32, i32, i32
  }
  func.func @transform_1(%arg0: i32) -> (i32, i32) {
    %c0_i32 = arith.constant 0 : i32
    %c0_i32_0 = arith.constant 0 : i32
    return %arg0, %c0_i32 : i32, i32
  }
  func.func @transform_2(%arg0: i32) -> (i32, i32) {
    %c0_i32 = arith.constant 0 : i32
    %c0_i32_0 = arith.constant 0 : i32
    %c0_i32_1 = arith.constant 0 : i32
    return %c0_i32, %c0_i32_0 : i32, i32
  }
  func.func @transform_3(%arg0: i32) -> (i32, i32) {
    %c0_i32 = arith.constant 0 : i32
    %c0_i32_0 = arith.constant 0 : i32
    %c0_i32_1 = arith.constant 0 : i32
    return %c0_i32, %c0_i32_0 : i32, i32
  }
  func.func @transform_4(%arg0: i32) -> (i32, i32) {
    %c0_i32 = arith.constant 0 : i32
    %c0_i32_0 = arith.constant 0 : i32
    %c0_i32_1 = arith.constant 0 : i32
    return %c0_i32, %c0_i32_0 : i32, i32
  }
  func.func @transform_5(%arg0: i32) -> (i32, i32) {
    %c0_i32 = arith.constant 0 : i32
    %c0_i32_0 = arith.constant 0 : i32
    %c0_i32_1 = arith.constant 0 : i32
    return %c0_i32, %c0_i32_0 : i32, i32
  }
  func.func @transform_6(%arg0: i32) -> (i32, i32) {
    %c0_i32 = arith.constant 0 : i32
    %c0_i32_0 = arith.constant 0 : i32
    %c0_i32_1 = arith.constant 0 : i32
    return %c0_i32, %c0_i32_0 : i32, i32
  }
  func.func @transform_7(%arg0: i32) -> (i32, i32) {
    %c0_i32 = arith.constant 0 : i32
    %c0_i32_0 = arith.constant 0 : i32
    %c0_i32_1 = arith.constant 0 : i32
    return %c0_i32, %c0_i32_0 : i32, i32
  }
  func.func @transform_8(%arg0: i32) -> (i32, i32) {
    %c0_i32 = arith.constant 0 : i32
    %c0_i32_0 = arith.constant 0 : i32
    %c0_i32_1 = arith.constant 0 : i32
    return %c0_i32, %c0_i32_0 : i32, i32
  }
  func.func @transform_9(%arg0: i32) -> (i32, i32) {
    %c0_i32 = arith.constant 0 : i32
    %c0_i32_0 = arith.constant 0 : i32
    %c0_i32_1 = arith.constant 0 : i32
    return %c0_i32, %c0_i32_0 : i32, i32
  }
  func.func @transform_10(%arg0: i32) -> (i32, i32) {
    %c0_i32 = arith.constant 0 : i32
    %c0_i32_0 = arith.constant 0 : i32
    %c0_i32_1 = arith.constant 0 : i32
    return %c0_i32, %c0_i32_0 : i32, i32
  }
  func.func @transform_11(%arg0: i32) -> (i32, i32) {
    %c0_i32 = arith.constant 0 : i32
    %c0_i32_0 = arith.constant 0 : i32
    %c0_i32_1 = arith.constant 0 : i32
    return %c0_i32, %c0_i32_0 : i32, i32
  }
  func.func @transform_12(%arg0: i32) -> (i32, i32) {
    %c0_i32 = arith.constant 0 : i32
    %c0_i32_0 = arith.constant 0 : i32
    %c0_i32_1 = arith.constant 0 : i32
    return %c0_i32, %c0_i32_0 : i32, i32
  }
  func.func @transform_13(%arg0: i32) -> (i32, i32) {
    %c0_i32 = arith.constant 0 : i32
    %c0_i32_0 = arith.constant 0 : i32
    %c0_i32_1 = arith.constant 0 : i32
    return %c0_i32, %c0_i32_0 : i32, i32
  }
  func.func @transform_14(%arg0: i32) -> (i32, i32) {
    %c0_i32 = arith.constant 0 : i32
    %c0_i32_0 = arith.constant 0 : i32
    %c0_i32_1 = arith.constant 0 : i32
    return %c0_i32, %c0_i32_0 : i32, i32
  }
  func.func @transform_15(%arg0: i32) -> (i32, i32) {
    %c0_i32 = arith.constant 0 : i32
    %c0_i32_0 = arith.constant 0 : i32
    %c0_i32_1 = arith.constant 0 : i32
    return %c0_i32, %c0_i32_0 : i32, i32
  }
  func.func @transform_16(%arg0: i32) -> (i32, i32) {
    %c0_i32 = arith.constant 0 : i32
    %c0_i32_0 = arith.constant 0 : i32
    %c0_i32_1 = arith.constant 0 : i32
    return %c0_i32, %c0_i32_0 : i32, i32
  }
  func.func @transform_17(%arg0: i32) -> (i32, i32) {
    %c0_i32 = arith.constant 0 : i32
    %c0_i32_0 = arith.constant 0 : i32
    %c0_i32_1 = arith.constant 0 : i32
    return %c0_i32, %c0_i32_0 : i32, i32
  }
  func.func @transform_18(%arg0: i32) -> (i32, i32) {
    %c0_i32 = arith.constant 0 : i32
    %c0_i32_0 = arith.constant 0 : i32
    %c0_i32_1 = arith.constant 0 : i32
    return %c0_i32, %c0_i32_0 : i32, i32
  }
  func.func @transform_19(%arg0: i32) -> (i32, i32) {
    %c0_i32 = arith.constant 0 : i32
    %c0_i32_0 = arith.constant 0 : i32
    return %arg0, %c0_i32 : i32, i32
  }
  func.func @transform_20(%arg0: i32) -> (i32, i32) {
    %c0_i32 = arith.constant 0 : i32
    %c0_i32_0 = arith.constant 0 : i32
    return %arg0, %c0_i32 : i32, i32
  }
}

</mosaic_0001>

<bundles_post_ra>
// kernel: tpu_custom_call.1
= control target key start
LH: loop header
LB: loop body
LE: loop exit
PB: predicated region body
PF: predicated region fallthrough
CT: control target
= control target key end

     0   :  { %s9163_s0 = inlined_call_operand.hbm [shape: f32[8,16,9], index: 0, kind: input, shape index: {}]   ;;  %s9164_s1 = inlined_call_operand.hbm [shape: f32[16,32], index: 1, kind: input, shape index: {}]   ;;  %s9165_s2 = inlined_call_operand.hbm [shape: f32[9,32], index: 2, kind: input, shape index: {}]   ;;  %s9166_s3 = inlined_call_operand.hbm [shape: f32[1,32], index: 3, kind: input, shape index: {}]   ;;  %s9167_s4 = inlined_call_operand.hbm [shape: f32[32,384], index: 4, kind: input, shape index: {}]   ;;  %s9168_s5 = inlined_call_operand.hbm [shape: f32[1,384], index: 5, kind: input, shape index: {}]   ;;  %s9169_s6 = inlined_call_operand.hbm [shape: f32[128,384], index: 6, kind: input, shape index: {}]   ;;  %s9170_s7 = inlined_call_operand.hbm [shape: f32[1,128], index: 7, kind: input, shape index: {}]   ;;  %s9171_s8 = inlined_call_operand.hbm [shape: bf16[32,1024], index: 8, kind: input, shape index: {}]   ;;  %s9172_s9 = inlined_call_operand.hbm [shape: bf16[128,1024], index: 9, kind: input, shape index: {}]   ;;  %s9173_s10 = inlined_call_operand.hbm [shape: f32[1,1024], index: 10, kind: input, shape index: {}]   ;;  %s9174_s11 = inlined_call_operand.hbm [shape: bf16[512,256], index: 11, kind: input, shape index: {}]   ;;  %s9175_s12 = inlined_call_operand.hbm [shape: f32[1,256], index: 12, kind: input, shape index: {}]   ;;  %s9176_s13 = inlined_call_operand.hbm [shape: bf16[256,128], index: 13, kind: input, shape index: {}]   ;;  %s9177_s14 = inlined_call_operand.hbm [shape: f32[1,128], index: 14, kind: input, shape index: {}]   ;;  %s9178_s15 = inlined_call_operand.hbm [shape: bf16[512,256], index: 15, kind: input, shape index: {}]   ;;  %s9179_s16 = inlined_call_operand.hbm [shape: f32[1,256], index: 16, kind: input, shape index: {}]   ;;  %s9180_s17 = inlined_call_operand.hbm [shape: bf16[256,128], index: 17, kind: input, shape index: {}]   ;;  %s9181_s18 = inlined_call_operand.hbm [shape: f32[1,128], index: 18, kind: input, shape index: {}]   ;;  %s9182_s19 = inlined_call_operand.hbm [shape: f32[16,128], index: 19, kind: output, shape index: {0}]   ;;  %s9183_s20 = inlined_call_operand.hbm [shape: f32[16,128], index: 20, kind: output, shape index: {1}]  }
   0x1   :  { %9214 = sst [smem:[#allocation54_spill]] %s9163_s0 }
   0x2   :  { %9215 = sst [smem:[#allocation55_spill]] %s9164_s1 }
   0x3   :  { %9216 = sst [smem:[#allocation56_spill]] %s9165_s2 }
   0x4   :  { %9217 = sst [smem:[#allocation57_spill]] %s9166_s3 }
   0x5   :  { %9218 = sst [smem:[#allocation58_spill]] %s9167_s4 }
   0x6   :  { %9219 = sst [smem:[#allocation59_spill]] %s9168_s5 }
   0x7   :  { %9220 = sst [smem:[#allocation60_spill]] %s9169_s6 }
   0x8   :  { %9221 = sst [smem:[#allocation61_spill]] %s9170_s7 }
   0x9   :  { %9222 = sst [smem:[#allocation62_spill]] %s9171_s8 }
   0xa   :  { %9223 = sst [smem:[#allocation63_spill]] %s9172_s9 }
   0xb   :  { %9224 = sst [smem:[#allocation64_spill]] %s9173_s10 }
   0xc   :  { %9225 = sst [smem:[#allocation65_spill]] %s9174_s11 }
   0xd   :  { %9226 = sst [smem:[#allocation66_spill]] %s9175_s12 }
   0xe   :  { %9227 = sst [smem:[#allocation67_spill]] %s9176_s13 }
   0xf   :  { %9228 = sst [smem:[#allocation68_spill]] %s9177_s14 }
  0x10   :  { %9229 = sst [smem:[#allocation69_spill]] %s9179_s16 }
  0x11   :  { %9230 = sst [smem:[#allocation70_spill]] %s9181_s18 }
  0x12   :  { %9231 = sst [smem:[#allocation71_spill]] %s9182_s19 }
  0x13   :  { %9232 = sst [smem:[#allocation72_spill]] %s9183_s20 }
  0x14   :  { %26 = vsyncpa [#allocation3], 0 }
  0x15   :  { %28 = vsyncpa [#allocation3 + $0x1], 0 }
  0x16   :  { %29 = vsyncpa [#allocation6], 0 }
  0x17   :  { %31 = vsyncpa [#allocation6 + $0x1], 0 }
  0x18   :  { %32 = vsyncpa [#allocation9], 0 }
  0x19   :  { %33 = vsyncpa [#allocation12], 0 }
  0x1a   :  { %34 = vsyncpa [#allocation15], 0 }
  0x1b   :  { %35 = vsyncpa [#allocation18], 0 }
  0x1c   :  { %36 = vsyncpa [#allocation21], 0 }
  0x1d   :  { %37 = vsyncpa [#allocation24], 0 }
  0x1e   :  { %38 = vsyncpa [#allocation27], 0 }
  0x1f   :  { %39 = vsyncpa [#allocation30], 0 }
  0x20   :  { %40 = vsyncpa [#allocation4], 0 }
  0x21   :  { %42 = vsyncpa [#allocation4 + $0x1], 0 }
  0x22   :  { %43 = vsyncpa [#allocation34], 0 }
  0x23   :  { %45 = vsyncpa [#allocation34 + $0x1], 0  ;;  %s7965_s1 = smov 0   ;;  %s7967_s22 = smov 0  }
  0x24   :  { %s7969_s23 = smov 0   ;;  %s7971_s24 = smov 0  }
  0x25 LB: > { %9233 = sst [smem:[#allocation48_spill]] %s7811_s1  ;;  %s7825_s2 = smov [#allocation7]   ;;  %s7823_s24 = sphi %s7971_s24, %s9309_s24   ;;  %s7819_s23 = sphi %s7969_s23, %s9308_s23   ;;  %s7815_s22 = sphi %s7967_s22, %s9307_s22   ;;  %s7811_s1 = sphi %s7965_s1, %s9306_s1  }
  0x26   : > { %9234 = sst [smem:[#allocation49_spill]] %s7815_s22  ;;  %s529_s25 = sshll.u32 %s7825_s2, 4  ;;  %s7991_s25 = int_to_ptr.vmem [resolvable:$true] %s529_s25 }
  0x27   : > { %9235 = sst [smem:[#allocation50_spill]] %s7819_s23  ;;  %s7986_s3 = sadd.s32 4294967295, %s7823_s24  }
  0x28   : > { %9236 = sst [smem:[#allocation51_spill]] %s7823_s24  ;;  %p5231_p0 = scmp.ge.s32.totalorder %s7823_s24, 1 }
  0x29   : > { %9237 = sst [smem:[#allocation52_spill]] %s7986_s3  ;;  %p9201_p1 = scmp.eq.s32.totalorder %s7986_s3, 0 }
  0x2a   : > { %p517_p2 = scmp.lt.s32.totalorder %s7823_s24, 3  ;;  %s7826_s27 = smov [#allocation8]  }
  0x2b   : > { %s543_s28 = sshll.u32 %s7826_s27, 4  ;;  %s7827_s29 = smov [#allocation11]   ;;  %s8006_s28 = int_to_ptr.vmem [resolvable:$true] %s543_s28 }
  0x2c   : > { %p7993_p3 = pnand %p5231_p0, %p517_p2  ;;  %s567_s30 = sshll.u32 %s7827_s29, 4  ;;  %s8008_s30 = int_to_ptr.vmem [resolvable:$true] %s567_s30 }
  0x2d   : > { %s9241_s2 = sld [smem:[#allocation56_spill]] }
  0x2e   : > { %s9238_s26 = scalar_select %p7993_p3, 1, 0 }
  0x2f   : > { %p6679_p5 = pneg %p7993_p3 }
  0x30   : > { %9239 = sst [smem:[#allocation53_spill]] %s9238_s26 }
  0x31   : > { %p8002_p6 = pnand %p6679_p5, %p9201_p1 }
  0x33   : > { %s7149_s20 = scalar_lea.hbm %s9241_s2, 256  ;;  %p8018_p8 = pneg %p8002_p6 }
  0x34   : > { %p7150_p7 = scmp.ne.s32.totalorder %s9241_s2, %s7149_s20  ;;  %p7156_p11 = scmp.lt.u32.totalorder %s7149_s20, %s9241_s2 }
  0x36   : > { %p7152_p9 = pnand %p8018_p8, %p7150_p7 }
  0x38   : > { %p7153_p10 = pneg %p7152_p9 }
  0x3a   : > { %p7158_p12 = pnand %p7156_p11, %p7153_p10 }
  0x3c   : > { %7161 = shalt.err (!%p7158_p12)
}
  0x3d   : > { %s7162_s19 = scalar_lea.vmem %s7991_s25, 256  ;;  %p7170_p5 = scmp.lt.s32.totalorder %s7991_s25, %s7991_s25 }
  0x3e   : > { %p7163_p13 = scmp.ne.s32.totalorder %s7991_s25, %s7162_s19  ;;  %p7171_p4 = scmp.lt.s32.totalorder %s7162_s19, %s7162_s19 }
  0x40   : > { %p7165_p0 = pnand %p7163_p13, %p8018_p8  ;;  %p7172_p7 = por %p7171_p4, %p7170_p5 }
  0x42   : > { %p7166_p2 = pneg %p7165_p0 }
  0x44   : > { %p7173_p9 = pnand %p7172_p7, %p7166_p2 }
  0x46   : > { %7176 = shalt.err (!%p7173_p9)
}
  0x47   : > { %s9205_s26 = smov 128   ;;  %s9207_s20 = smov 8  }
  0x48   : > { %6682 = dma.hbm_to_vmem [thread:$0]  (!%p8002_p6), %s9241_s2, 256, %s7991_s25, [#allocation6], %s9205_s26, %s9205_s26, %s9207_s20  }
  0x49   : > { %s9243_s1 = sld [smem:[#allocation57_spill]] }
  0x4f   : > { %s9244_s18 = smov %s9243_s1  ;;  %s7177_s19 = scalar_lea.hbm %s9243_s1, 16 }
  0x50   : > { %p7178_p4 = scmp.ne.s32.totalorder %s9244_s18, %s7177_s19  ;;  %p7184_p12 = scmp.lt.u32.totalorder %s7177_s19, %s9244_s18 }
  0x52   : > { %p7180_p10 = pnand %p7178_p4, %p8018_p8 }
  0x54   : > { %p7181_p11 = pneg %p7180_p10 }
  0x56   : > { %p7186_p13 = pnand %p7184_p12, %p7181_p11 }
  0x58   : > { %7189 = shalt.err (!%p7186_p13)
}
  0x59   : > { %s7190_s25 = scalar_lea.vmem %s8006_s28, 16  ;;  %s7197_s1 = scalar_lea.vmem %s8006_s28, 32 }
  0x5a   : > { %p7191_p0 = scmp.ne.s32.totalorder %s8006_s28, %s7190_s25  ;;  %p7198_p7 = scmp.lt.s32.totalorder %s8006_s28, %s8006_s28 }
  0x5b   : > { %p7199_p9 = scmp.lt.s32.totalorder %s7197_s1, %s7190_s25 }
  0x5c   : > { %p7193_p2 = pnand %p7191_p0, %p8018_p8 }
  0x5d   : > { %p7200_p4 = por %p7199_p9, %p7198_p7 }
  0x5e   : > { %p7194_p5 = pneg %p7193_p2 }
  0x60   : > { %p7201_p10 = pnand %p7200_p4, %p7194_p5 }
  0x62   : > { %7204 = shalt.err (!%p7201_p10)
}
  0x63   : > { %6685 = dma.hbm_to_vmem [thread:$0]  (!%p8002_p6), %s9244_s18, 16, %s8006_s28, [#allocation9]  }
  0x64   : > { %s9245_s5 = sld [smem:[#allocation59_spill]] }
  0x6a   : > { %s7205_s3 = scalar_lea.hbm %s9245_s5, 48 }
  0x6b   : > { %p7206_p11 = scmp.ne.s32.totalorder %s9245_s5, %s7205_s3  ;;  %p7212_p0 = scmp.lt.u32.totalorder %s7205_s3, %s9245_s5 }
  0x6d   : > { %p7208_p12 = pnand %p7206_p11, %p8018_p8 }
  0x6f   : > { %p7209_p13 = pneg %p7208_p12 }
  0x71   : > { %p7214_p2 = pnand %p7212_p0, %p7209_p13 }
  0x73   : > { %7217 = shalt.err (!%p7214_p2)
}
  0x74   : > { %s7218_s28 = scalar_lea.vmem %s8008_s30, 48  ;;  %s7225_s25 = scalar_lea.vmem %s8008_s30, 64 }
  0x75   : > { %p7219_p5 = scmp.ne.s32.totalorder %s8008_s30, %s7218_s28  ;;  %p7226_p4 = scmp.lt.s32.totalorder %s8008_s30, %s8008_s30 }
  0x76   : > { %p7227_p10 = scmp.lt.s32.totalorder %s7225_s25, %s7218_s28 }
  0x77   : > { %p7221_p7 = pnand %p7219_p5, %p8018_p8 }
  0x78   : > { %p7228_p11 = por %p7227_p10, %p7226_p4 }
  0x79   : > { %p7222_p9 = pneg %p7221_p7 }
  0x7b   : > { %p7229_p12 = pnand %p7228_p11, %p7222_p9 }
  0x7d   : > { %7232 = shalt.err (!%p7229_p12)
}
  0x7e   : > { %6691 = dma.hbm_to_vmem [thread:$0]  (!%p8002_p6), %s9245_s5, 48, %s8008_s30, [#allocation12]  }
  0x7f   : > { %s7830_s22 = smov [#allocation14]   ;;  %s9246_s7 = sld [smem:[#allocation61_spill]] }
  0x80   : > { %s591_s23 = sshll.u32 %s7830_s22, 4  ;;  %s592_s23 = int_to_ptr.vmem [resolvable:$true] %s591_s23 }
  0x85   : > { %s7233_s0 = scalar_lea.hbm %s9246_s7, 16 }
  0x86   : > { %p7234_p13 = scmp.ne.s32.totalorder %s9246_s7, %s7233_s0  ;;  %p7240_p5 = scmp.lt.u32.totalorder %s7233_s0, %s9246_s7 }
  0x88   : > { %p7236_p0 = pnand %p7234_p13, %p8018_p8 }
  0x8a   : > { %p7237_p2 = pneg %p7236_p0 }
  0x8c   : > { %p7242_p7 = pnand %p7240_p5, %p7237_p2 }
  0x8e   : > { %7245 = shalt.err (!%p7242_p7)
}
  0x8f   : > { %s7246_s30 = scalar_lea.vmem %s592_s23, 16  ;;  %s7253_s25 = scalar_lea.vmem %s592_s23, 32 }
  0x90   : > { %p7247_p9 = scmp.ne.s32.totalorder %s592_s23, %s7246_s30  ;;  %p7254_p11 = scmp.lt.s32.totalorder %s592_s23, %s592_s23 }
  0x91   : > { %p7255_p12 = scmp.lt.s32.totalorder %s7253_s25, %s7246_s30 }
  0x92   : > { %p7249_p4 = pnand %p7247_p9, %p8018_p8 }
  0x93   : > { %p7256_p1 = por %p7255_p12, %p7254_p11 }
  0x94   : > { %p7250_p10 = pneg %p7249_p4 }
  0x96   : > { %p7257_p3 = pnand %p7256_p1, %p7250_p10 }
  0x98   : > { %7260 = shalt.err (!%p7257_p3)
}
  0x99   : > { %6697 = dma.hbm_to_vmem [thread:$0]  (!%p8002_p6), %s9246_s7, 16, %s592_s23, [#allocation15]  }
  0x9a   : > { %s7831_s22 = smov [#allocation17]   ;;  %s7832_s3 = smov [#allocation20]  }
  0x9b   : > { %s614_s24 = sshll.u32 %s7831_s22, 4  ;;  %s638_s0 = sshll.u32 %s7832_s3, 4  ;;  %s615_s24 = int_to_ptr.vmem [resolvable:$true] %s614_s24  ;;  %s8108_s0 = int_to_ptr.vmem [resolvable:$true] %s638_s0 }
  0x9c   : > { %s9247_s9 = sld [smem:[#allocation63_spill]] }
  0xa2   : > { %s7261_s19 = scalar_lea.hbm %s9247_s9, 8192 }
  0xa3   : > { %p7262_p1 = scmp.ne.s32.totalorder %s9247_s9, %s7261_s19  ;;  %p7268_p0 = scmp.lt.u32.totalorder %s7261_s19, %s9247_s9 }
  0xa5   : > { %p7264_p3 = pnand %p7262_p1, %p8018_p8 }
  0xa7   : > { %p7265_p13 = pneg %p7264_p3 }
  0xa9   : > { %p7270_p2 = pnand %p7268_p0, %p7265_p13 }
  0xab   : > { %7273 = shalt.err (!%p7270_p2)
}
  0xac   : > { %s7274_s1 = scalar_lea.vmem %s615_s24, 8192  ;;  %p7282_p4 = scmp.lt.s32.totalorder %s615_s24, %s615_s24 }
  0xad   : > { %p7275_p5 = scmp.ne.s32.totalorder %s615_s24, %s7274_s1  ;;  %p7283_p10 = scmp.lt.s32.totalorder %s7274_s1, %s7274_s1 }
  0xaf   : > { %p7277_p7 = pnand %p7275_p5, %p8018_p8  ;;  %p7284_p11 = por %p7283_p10, %p7282_p4 }
  0xb1   : > { %p7278_p9 = pneg %p7277_p7 }
  0xb3   : > { %p7285_p12 = pnand %p7284_p11, %p7278_p9 }
  0xb5   : > { %7288 = shalt.err (!%p7285_p12)
}
  0xb6   : > { %s9203_s16 = smov 512   ;;  %s9204_s22 = smov 32  }
  0xb7   : > { %6703 = dma.hbm_to_vmem [thread:$0]  (!%p8002_p6), %s9247_s9, 8192, %s615_s24, [#allocation18], %s9203_s16, %s9203_s16, %s9204_s22  }
  0xb8   : > { %s9248_s11 = sld [smem:[#allocation65_spill]] }
  0xbe   : > { %s7289_s28 = scalar_lea.hbm %s9248_s11, 8192 }
  0xbf   : > { %p7290_p1 = scmp.ne.s32.totalorder %s9248_s11, %s7289_s28  ;;  %p7296_p0 = scmp.lt.u32.totalorder %s7289_s28, %s9248_s11 }
  0xc1   : > { %p7292_p3 = pnand %p7290_p1, %p8018_p8 }
  0xc3   : > { %p7293_p13 = pneg %p7292_p3 }
  0xc5   : > { %p7298_p2 = pnand %p7296_p0, %p7293_p13 }
  0xc7   : > { %7301 = shalt.err (!%p7298_p2)
}
  0xc8   : > { %s7302_s24 = scalar_lea.vmem %s8108_s0, 8192  ;;  %p7310_p4 = scmp.lt.s32.totalorder %s8108_s0, %s8108_s0 }
  0xc9   : > { %p7303_p5 = scmp.ne.s32.totalorder %s8108_s0, %s7302_s24  ;;  %p7311_p10 = scmp.lt.s32.totalorder %s7302_s24, %s7302_s24 }
  0xcb   : > { %p7305_p7 = pnand %p7303_p5, %p8018_p8  ;;  %p7312_p11 = por %p7311_p10, %p7310_p4 }
  0xcd   : > { %p7306_p9 = pneg %p7305_p7 }
  0xcf   : > { %p7313_p12 = pnand %p7312_p11, %p7306_p9 }
  0xd1   : > { %7316 = shalt.err (!%p7313_p12)
}
  0xd2   : > { %6709 = dma.hbm_to_vmem [thread:$0]  (!%p8002_p6), %s9248_s11, 8192, %s8108_s0, [#allocation21], %s9205_s26, %s9205_s26, %s9207_s20  }
  0xd3   : > { %s7835_s29 = smov [#allocation23]   ;;  %s9249_s13 = sld [smem:[#allocation67_spill]] }
  0xd4   : > { %s662_s19 = sshll.u32 %s7835_s29, 4  ;;  %s663_s19 = int_to_ptr.vmem [resolvable:$true] %s662_s19 }
  0xd9   : > { %s7317_s25 = scalar_lea.hbm %s9249_s13, 2048 }
  0xda   : > { %p7318_p1 = scmp.ne.s32.totalorder %s9249_s13, %s7317_s25  ;;  %p7324_p0 = scmp.lt.u32.totalorder %s7317_s25, %s9249_s13 }
  0xdc   : > { %p7320_p3 = pnand %p7318_p1, %p8018_p8 }
  0xde   : > { %p7321_p13 = pneg %p7320_p3 }
  0xe0   : > { %p7326_p2 = pnand %p7324_p0, %p7321_p13 }
  0xe2   : > { %7329 = shalt.err (!%p7326_p2)
}
  0xe3   : > { %s7330_s0 = scalar_lea.vmem %s663_s19, 2048  ;;  %p7338_p4 = scmp.lt.s32.totalorder %s663_s19, %s663_s19 }
  0xe4   : > { %p7331_p5 = scmp.ne.s32.totalorder %s663_s19, %s7330_s0  ;;  %p7339_p10 = scmp.lt.s32.totalorder %s7330_s0, %s7330_s0 }
  0xe6   : > { %p7333_p7 = pnand %p7331_p5, %p8018_p8  ;;  %p7340_p11 = por %p7339_p10, %p7338_p4 }
  0xe8   : > { %p7334_p9 = pneg %p7333_p7 }
  0xea   : > { %p7341_p12 = pnand %p7340_p11, %p7334_p9 }
  0xec   : > { %7344 = shalt.err (!%p7341_p12)
}
  0xed   : > { %s7836_s3 = smov 64   ;;  %s7837_s21 = smov 4  }
  0xee   : > { %6715 = dma.hbm_to_vmem [thread:$0]  (!%p8002_p6), %s9249_s13, 2048, %s663_s19, [#allocation24], %s7836_s3, %s7836_s3, %s7837_s21  }
  0xef   : > { %s7838_s28 = smov [#allocation26]   ;;  %s7839_s25 = smov [#allocation29]  }
  0xf0   : > { %s686_s30 = sshll.u32 %s7838_s28, 4  ;;  %s710_s23 = sshll.u32 %s7839_s25, 4  ;;  %s687_s30 = int_to_ptr.vmem [resolvable:$true] %s686_s30  ;;  %s711_s23 = int_to_ptr.vmem [resolvable:$true] %s710_s23 }
  0xf1   : > { %s7345_s0 = scalar_lea.hbm %s9178_s15, 8192 }
  0xf2   : > { %p7346_p1 = scmp.ne.s32.totalorder %s9178_s15, %s7345_s0  ;;  %p7352_p0 = scmp.lt.u32.totalorder %s7345_s0, %s9178_s15 }
  0xf4   : > { %p7348_p3 = pnand %p7346_p1, %p8018_p8 }
  0xf6   : > { %p7349_p13 = pneg %p7348_p3 }
  0xf8   : > { %p7354_p2 = pnand %p7352_p0, %p7349_p13 }
  0xfa   : > { %7357 = shalt.err (!%p7354_p2)
}
  0xfb   : > { %s7358_s19 = scalar_lea.vmem %s687_s30, 8192  ;;  %p7366_p4 = scmp.lt.s32.totalorder %s687_s30, %s687_s30 }
  0xfc   : > { %p7359_p5 = scmp.ne.s32.totalorder %s687_s30, %s7358_s19  ;;  %p7367_p10 = scmp.lt.s32.totalorder %s7358_s19, %s7358_s19 }
  0xfe   : > { %p7361_p7 = pnand %p7359_p5, %p8018_p8  ;;  %p7368_p11 = por %p7367_p10, %p7366_p4 }
 0x100   : > { %p7362_p9 = pneg %p7361_p7 }
 0x102   : > { %p7369_p12 = pnand %p7368_p11, %p7362_p9 }
 0x104   : > { %7372 = shalt.err (!%p7369_p12)
}
 0x105   : > { %s9250_s26 = smov 8   ;;  %s9251_s22 = smov 128  }
 0x106   : > { %6721 = dma.hbm_to_vmem [thread:$0]  (!%p8002_p6), %s9178_s15, 8192, %s687_s30, [#allocation27], %s9251_s22, %s9251_s22, %s9250_s26  }
 0x107   : > { %s7373_s28 = scalar_lea.hbm %s9180_s17, 2048 }
 0x108   : > { %p7374_p1 = scmp.ne.s32.totalorder %s9180_s17, %s7373_s28  ;;  %p7380_p0 = scmp.lt.u32.totalorder %s7373_s28, %s9180_s17 }
 0x10a   : > { %p7376_p3 = pnand %p7374_p1, %p8018_p8 }
 0x10c   : > { %p7377_p13 = pneg %p7376_p3 }
 0x10e   : > { %p7382_p2 = pnand %p7380_p0, %p7377_p13 }
 0x110   : > { %7385 = shalt.err (!%p7382_p2)
}
 0x111   : > { %s7386_s19 = scalar_lea.vmem %s711_s23, 2048  ;;  %p7394_p4 = scmp.lt.s32.totalorder %s711_s23, %s711_s23 }
 0x112   : > { %p7387_p5 = scmp.ne.s32.totalorder %s711_s23, %s7386_s19  ;;  %p7395_p10 = scmp.lt.s32.totalorder %s7386_s19, %s7386_s19 }
 0x114   : > { %p7389_p7 = pnand %p7387_p5, %p8018_p8  ;;  %p7396_p11 = por %p7395_p10, %p7394_p4 }
 0x116   : > { %p7390_p9 = pneg %p7389_p7 }
 0x118   : > { %p7397_p12 = pnand %p7396_p11, %p7390_p9 }
 0x11a   : > { %7400 = shalt.err (!%p7397_p12)
}
 0x11b   : > { %6727 = dma.hbm_to_vmem [thread:$0]  (!%p8002_p6), %s9180_s17, 2048, %s711_s23, [#allocation30], %s7836_s3, %s7836_s3, %s7837_s21  }
 0x11c   : > { %s7840_s20 = smov [#allocation10]   ;;  %s9252_s25 = sld [smem:[#allocation58_spill]] }
 0x11d   : > { %s553_s16 = sshll.u32 %s7840_s20, 4  ;;  %s554_s16 = int_to_ptr.vmem [resolvable:$true] %s553_s16 }
 0x122   : > { %s7401_s1 = scalar_lea.hbm %s9252_s25, 1536 }
 0x123   : > { %p7402_p1 = scmp.ne.s32.totalorder %s9252_s25, %s7401_s1  ;;  %p7408_p0 = scmp.lt.u32.totalorder %s7401_s1, %s9252_s25 }
 0x125   : > { %p7404_p3 = pnand %p7402_p1, %p8018_p8 }
 0x127   : > { %p7405_p13 = pneg %p7404_p3 }
 0x129   : > { %p7410_p2 = pnand %p7408_p0, %p7405_p13 }
 0x12b   : > { %7413 = shalt.err (!%p7410_p2)
}
 0x12c   : > { %s7414_s3 = scalar_lea.vmem %s554_s16, 1536  ;;  %p7422_p4 = scmp.lt.s32.totalorder %s554_s16, %s554_s16 }
 0x12d   : > { %p7415_p5 = scmp.ne.s32.totalorder %s554_s16, %s7414_s3  ;;  %p7423_p10 = scmp.lt.s32.totalorder %s7414_s3, %s7414_s3 }
 0x12f   : > { %p7417_p7 = pnand %p7415_p5, %p8018_p8  ;;  %p7424_p11 = por %p7423_p10, %p7422_p4 }
 0x131   : > { %p7418_p9 = pneg %p7417_p7 }
 0x133   : > { %p7425_p12 = pnand %p7424_p11, %p7418_p9 }
 0x135   : > { %7428 = shalt.err (!%p7425_p12)
}
 0x136   : > { %s7841_s21 = smov 384   ;;  %s7842_s23 = smov 24  }
 0x137   : > { %6688 = dma.hbm_to_vmem [thread:$0]  (!%p8002_p6), %s9252_s25, 1536, %s554_s16, [#allocation9], %s7841_s21, %s7841_s21, %s7842_s23  }
 0x138   : > { %s7843_s2 = smov [#allocation13]   ;;  %s7844_s29 = smov [#allocation16]  }
 0x139   : > { %s577_s20 = sshll.u32 %s7843_s2, 4  ;;  %s601_s28 = sshll.u32 %s7844_s29, 4  ;;  %s578_s20 = int_to_ptr.vmem [resolvable:$true] %s577_s20  ;;  %s8238_s28 = int_to_ptr.vmem [resolvable:$true] %s601_s28 }
 0x13a   : > { %s9253_s6 = sld [smem:[#allocation60_spill]] }
 0x140   : > { %s7429_s0 = scalar_lea.hbm %s9253_s6, 6144 }
 0x141   : > { %p7430_p1 = scmp.ne.s32.totalorder %s9253_s6, %s7429_s0  ;;  %p7436_p0 = scmp.lt.u32.totalorder %s7429_s0, %s9253_s6 }
 0x143   : > { %p7432_p3 = pnand %p7430_p1, %p8018_p8 }
 0x145   : > { %p7433_p13 = pneg %p7432_p3 }
 0x147   : > { %p7438_p2 = pnand %p7436_p0, %p7433_p13 }
 0x149   : > { %7441 = shalt.err (!%p7438_p2)
}
 0x14a   : > { %s7442_s30 = scalar_lea.vmem %s578_s20, 6144  ;;  %p7450_p4 = scmp.lt.s32.totalorder %s578_s20, %s578_s20 }
 0x14b   : > { %p7443_p5 = scmp.ne.s32.totalorder %s578_s20, %s7442_s30  ;;  %p7451_p10 = scmp.lt.s32.totalorder %s7442_s30, %s7442_s30 }
 0x14d   : > { %p7445_p7 = pnand %p7443_p5, %p8018_p8  ;;  %p7452_p11 = por %p7451_p10, %p7450_p4 }
 0x14f   : > { %p7446_p9 = pneg %p7445_p7 }
 0x151   : > { %p7453_p12 = pnand %p7452_p11, %p7446_p9 }
 0x153   : > { %7456 = shalt.err (!%p7453_p12)
}
 0x154   : > { %6694 = dma.hbm_to_vmem [thread:$0]  (!%p8002_p6), %s9253_s6, 6144, %s578_s20, [#allocation12], %s7841_s21, %s7841_s21, %s7842_s23  }
 0x155   : > { %s9254_s8 = sld [smem:[#allocation62_spill]] }
 0x15b   : > { %s7457_s0 = scalar_lea.hbm %s9254_s8, 2048 }
 0x15c   : > { %p7458_p1 = scmp.ne.s32.totalorder %s9254_s8, %s7457_s0  ;;  %p7464_p0 = scmp.lt.u32.totalorder %s7457_s0, %s9254_s8 }
 0x15e   : > { %p7460_p3 = pnand %p7458_p1, %p8018_p8 }
 0x160   : > { %p7461_p13 = pneg %p7460_p3 }
 0x162   : > { %p7466_p2 = pnand %p7464_p0, %p7461_p13 }
 0x164   : > { %7469 = shalt.err (!%p7466_p2)
}
 0x165   : > { %s7470_s21 = scalar_lea.vmem %s8238_s28, 2048  ;;  %p7478_p4 = scmp.lt.s32.totalorder %s8238_s28, %s8238_s28 }
 0x166   : > { %p7471_p5 = scmp.ne.s32.totalorder %s8238_s28, %s7470_s21  ;;  %p7479_p10 = scmp.lt.s32.totalorder %s7470_s21, %s7470_s21 }
 0x168   : > { %p7473_p7 = pnand %p7471_p5, %p8018_p8  ;;  %p7480_p11 = por %p7479_p10, %p7478_p4 }
 0x16a   : > { %p7474_p9 = pneg %p7473_p7 }
 0x16c   : > { %p7481_p12 = pnand %p7480_p11, %p7474_p9 }
 0x16e   : > { %7484 = shalt.err (!%p7481_p12)
}
 0x16f   : > { %s9255_s23 = smov 32   ;;  %s9256_s20 = smov 512  }
 0x170   : > { %6700 = dma.hbm_to_vmem [thread:$0]  (!%p8002_p6), %s9254_s8, 2048, %s8238_s28, [#allocation15], %s9256_s20, %s9256_s20, %s9255_s23  }
 0x171   : > { %s7845_s29 = smov [#allocation19]   ;;  %s7846_s24 = smov [#allocation22]  }
 0x172   : > { %s628_s1 = sshll.u32 %s7845_s29, 4  ;;  %s652_s0 = sshll.u32 %s7846_s24, 4  ;;  %s629_s1 = int_to_ptr.vmem [resolvable:$true] %s628_s1  ;;  %s8284_s0 = int_to_ptr.vmem [resolvable:$true] %s652_s0 }
 0x173   : > { %s9257_s10 = sld [smem:[#allocation64_spill]] }
 0x179   : > { %s7485_s5 = scalar_lea.hbm %s9257_s10, 128 }
 0x17a   : > { %p7486_p1 = scmp.ne.s32.totalorder %s9257_s10, %s7485_s5  ;;  %p7492_p0 = scmp.lt.u32.totalorder %s7485_s5, %s9257_s10 }
 0x17c   : > { %p7488_p3 = pnand %p7486_p1, %p8018_p8 }
 0x17e   : > { %p7489_p13 = pneg %p7488_p3 }
 0x180   : > { %p7494_p2 = pnand %p7492_p0, %p7489_p13 }
 0x182   : > { %7497 = shalt.err (!%p7494_p2)
}
 0x183   : > { %s7498_s23 = scalar_lea.vmem %s629_s1, 128  ;;  %p7506_p4 = scmp.lt.s32.totalorder %s629_s1, %s629_s1 }
 0x184   : > { %p7499_p5 = scmp.ne.s32.totalorder %s629_s1, %s7498_s23  ;;  %p7507_p10 = scmp.lt.s32.totalorder %s7498_s23, %s7498_s23 }
 0x186   : > { %p7501_p7 = pnand %p7499_p5, %p8018_p8  ;;  %p7508_p11 = por %p7507_p10, %p7506_p4 }
 0x188   : > { %p7502_p9 = pneg %p7501_p7 }
 0x18a   : > { %p7509_p12 = pnand %p7508_p11, %p7502_p9 }
 0x18c   : > { %7512 = shalt.err (!%p7509_p12)
}
 0x18d   : > { %6706 = dma.hbm_to_vmem [thread:$0]  (!%p8002_p6), %s9257_s10, 128, %s629_s1, [#allocation18]  }
 0x18e   : > { %s9258_s12 = sld [smem:[#allocation66_spill]] }
 0x194   : > { %s7513_s19 = scalar_lea.hbm %s9258_s12, 32 }
 0x195   : > { %p7514_p1 = scmp.ne.s32.totalorder %s9258_s12, %s7513_s19  ;;  %p7520_p0 = scmp.lt.u32.totalorder %s7513_s19, %s9258_s12 }
 0x197   : > { %p7516_p3 = pnand %p7514_p1, %p8018_p8 }
 0x199   : > { %p7517_p13 = pneg %p7516_p3 }
 0x19b   : > { %p7522_p2 = pnand %p7520_p0, %p7517_p13 }
 0x19d   : > { %7525 = shalt.err (!%p7522_p2)
}
 0x19e   : > { %s7526_s1 = scalar_lea.vmem %s8284_s0, 32  ;;  %p7534_p4 = scmp.lt.s32.totalorder %s8284_s0, %s8284_s0 }
 0x19f   : > { %p7527_p5 = scmp.ne.s32.totalorder %s8284_s0, %s7526_s1  ;;  %p7535_p10 = scmp.lt.s32.totalorder %s7526_s1, %s7526_s1 }
 0x1a1   : > { %p7529_p7 = pnand %p7527_p5, %p8018_p8  ;;  %p7536_p11 = por %p7535_p10, %p7534_p4 }
 0x1a3   : > { %p7530_p9 = pneg %p7529_p7 }
 0x1a5   : > { %p7537_p12 = pnand %p7536_p11, %p7530_p9 }
 0x1a7   : > { %7540 = shalt.err (!%p7537_p12)
}
 0x1a8   : > { %6712 = dma.hbm_to_vmem [thread:$0]  (!%p8002_p6), %s9258_s12, 32, %s8284_s0, [#allocation21]  }
 0x1a9   : > { %s7847_s23 = smov [#allocation25]   ;;  %s7848_s2 = smov [#allocation28]  }
 0x1aa   : > { %s676_s20 = sshll.u32 %s7847_s23, 4  ;;  %s700_s29 = sshll.u32 %s7848_s2, 4  ;;  %s677_s20 = int_to_ptr.vmem [resolvable:$true] %s676_s20  ;;  %s8327_s29 = int_to_ptr.vmem [resolvable:$true] %s700_s29 }
 0x1ab   : > { %s9259_s14 = sld [smem:[#allocation68_spill]] }
 0x1b1   : > { %s7541_s3 = scalar_lea.hbm %s9259_s14, 16 }
 0x1b2   : > { %p7542_p1 = scmp.ne.s32.totalorder %s9259_s14, %s7541_s3  ;;  %p7548_p0 = scmp.lt.u32.totalorder %s7541_s3, %s9259_s14 }
 0x1b4   : > { %p7544_p3 = pnand %p7542_p1, %p8018_p8 }
 0x1b6   : > { %p7545_p13 = pneg %p7544_p3 }
 0x1b8   : > { %p7550_p2 = pnand %p7548_p0, %p7545_p13 }
 0x1ba   : > { %7553 = shalt.err (!%p7550_p2)
}
 0x1bb   : > { %s7554_s1 = scalar_lea.vmem %s677_s20, 16  ;;  %s7561_s30 = scalar_lea.vmem %s677_s20, 32 }
 0x1bc   : > { %p7555_p5 = scmp.ne.s32.totalorder %s677_s20, %s7554_s1  ;;  %p7562_p4 = scmp.lt.s32.totalorder %s677_s20, %s677_s20 }
 0x1bd   : > { %p7563_p10 = scmp.lt.s32.totalorder %s7561_s30, %s7554_s1 }
 0x1be   : > { %p7557_p7 = pnand %p7555_p5, %p8018_p8 }
 0x1bf   : > { %p7564_p11 = por %p7563_p10, %p7562_p4 }
 0x1c0   : > { %p7558_p9 = pneg %p7557_p7 }
 0x1c2   : > { %p7565_p12 = pnand %p7564_p11, %p7558_p9 }
 0x1c4   : > { %7568 = shalt.err (!%p7565_p12)
}
 0x1c5   : > { %6718 = dma.hbm_to_vmem [thread:$0]  (!%p8002_p6), %s9259_s14, 16, %s677_s20, [#allocation24]  }
 0x1c6   : > { %s9260_s19 = sld [smem:[#allocation69_spill]] }
 0x1cc   : > { %s7569_s3 = scalar_lea.hbm %s9260_s19, 32 }
 0x1cd   : > { %p7570_p1 = scmp.ne.s32.totalorder %s9260_s19, %s7569_s3  ;;  %p7576_p0 = scmp.lt.u32.totalorder %s7569_s3, %s9260_s19 }
 0x1cf   : > { %p7572_p3 = pnand %p7570_p1, %p8018_p8 }
 0x1d1   : > { %p7573_p13 = pneg %p7572_p3 }
 0x1d3   : > { %p7578_p2 = pnand %p7576_p0, %p7573_p13 }
 0x1d5   : > { %7581 = shalt.err (!%p7578_p2)
}
 0x1d6   : > { %s7582_s20 = scalar_lea.vmem %s8327_s29, 32  ;;  %p7590_p4 = scmp.lt.s32.totalorder %s8327_s29, %s8327_s29 }
 0x1d7   : > { %p7583_p5 = scmp.ne.s32.totalorder %s8327_s29, %s7582_s20  ;;  %p7591_p10 = scmp.lt.s32.totalorder %s7582_s20, %s7582_s20 }
 0x1d9   : > { %p7585_p7 = pnand %p7583_p5, %p8018_p8  ;;  %p7592_p11 = por %p7591_p10, %p7590_p4 }
 0x1db   : > { %p7586_p9 = pneg %p7585_p7 }
 0x1dd   : > { %p7593_p12 = pnand %p7592_p11, %p7586_p9 }
 0x1df   : > { %7596 = shalt.err (!%p7593_p12)
}
 0x1e0   : > { %6724 = dma.hbm_to_vmem [thread:$0]  (!%p8002_p6), %s9260_s19, 32, %s8327_s29, [#allocation27]  }
 0x1e1   : > { %s7849_s28 = smov [#allocation31]   ;;  %s9261_s3 = sld [smem:[#allocation70_spill]] }
 0x1e2   : > { %s724_s23 = sshll.u32 %s7849_s28, 4  ;;  %s725_s23 = int_to_ptr.vmem [resolvable:$true] %s724_s23 }
 0x1e7   : > { %s7597_s5 = scalar_lea.hbm %s9261_s3, 16 }
 0x1e8   : > { %p7598_p1 = scmp.ne.s32.totalorder %s9261_s3, %s7597_s5  ;;  %p7604_p0 = scmp.lt.u32.totalorder %s7597_s5, %s9261_s3 }
 0x1ea   : > { %p7600_p3 = pnand %p7598_p1, %p8018_p8 }
 0x1ec   : > { %p7601_p13 = pneg %p7600_p3 }
 0x1ee   : > { %p7606_p2 = pnand %p7604_p0, %p7601_p13 }
 0x1f0   : > { %7609 = shalt.err (!%p7606_p2)
}
 0x1f1   : > { %s7610_s29 = scalar_lea.vmem %s725_s23, 16  ;;  %s7617_s1 = scalar_lea.vmem %s725_s23, 32 }
 0x1f2   : > { %p7611_p5 = scmp.ne.s32.totalorder %s725_s23, %s7610_s29  ;;  %p7618_p4 = scmp.lt.s32.totalorder %s725_s23, %s725_s23 }
 0x1f3   : > { %p7619_p10 = scmp.lt.s32.totalorder %s7617_s1, %s7610_s29 }
 0x1f4   : > { %p7613_p7 = pnand %p7611_p5, %p8018_p8 }
 0x1f5   : > { %p7620_p11 = por %p7619_p10, %p7618_p4 }
 0x1f6   : > { %p7614_p9 = pneg %p7613_p7 }
 0x1f8   : > { %p7621_p12 = pnand %p7620_p11, %p7614_p9 }
 0x1fa   : > { %7624 = shalt.err (!%p7621_p12)
}
 0x1fb   : > { %s9262_s2 = sld [smem:[#allocation51_spill]]  ;;  %s9263_s24 = sld [smem:[#allocation50_spill]] }
 0x1fc   : > { %s9264_s5 = sld [smem:[#allocation49_spill]]  ;;  %s9265_s27 = sld [smem:[#allocation48_spill]] }
 0x1fd   : > { %s9266_s16 = sld [smem:[#allocation52_spill]] }
 0x1fe   : > { %6730 = dma.hbm_to_vmem [thread:$0]  (!%p8002_p6), %s9261_s3, 16, %s725_s23, [#allocation30]  }
 0x201   : > { %s5230_s21 = sadd.s32 4294967294, %s9262_s2   ;;  %s8390_s4 = sadd.s32 1, %s9262_s2  }
 0x202   : > { %s58_s0 = sadd.s32 1, %s9263_s24  ;;  %s55_s20 = ssub.s32 %s9262_s2, %s8390_s4 }
 0x203   : > { %p65_p8 = scmp.ne.s32.totalorder %s9263_s24, %s9264_s5  ;;  %p56_p1 = scmp.eq.s32.totalorder %s55_s20, 0 }
 0x204   : > { %p66_p3 = scmp.eq.s32.totalorder %s9262_s2, 0  ;;  %p71_p13 = scmp.ne.s32.totalorder %s9264_s5, %s9265_s27 }
 0x205   : > { %p478_p0 = scmp.eq.s32.totalorder %s9266_s16, 1  ;;  %p9267_p5 = scmp.eq.s32.totalorder %s9266_s16, 0 }
 0x206   : > { %s8402_s29 = scalar_select %p56_p1, %s9263_s24, %s58_s0  }
 0x207   : > { %p67_p2 = por %p66_p3, %p65_p8  ;;  %p8406_p6 = por %p9267_p5, %p71_p13 }
 0x208   : > { %p8410_p7 = por %p478_p0, %p65_p8  ;;  %p484_p9 = scmp.eq.s32.totalorder %s5230_s21, 1 }
 0x209   : > { %s9268_s23 = scalar_select %p8406_p6, 1, 0 }
 0x20a   : > { %s9269_s1 = scalar_select %p8410_p7, 1, 0 }
 0x20b   : > { %p6762_p4 = scmp.lt.s32.totalorder %s9262_s2, 2  ;;  %s8416_s30 = sand.u32 1, %s9263_s24  }
 0x20c   : > { %p8418_p10 = por %p484_p9, %p71_p13  ;;  %s5250_s5 = sshll.u32 %s8416_s30, 6 }
 0x20d   : > { %s9211_s27 = sshll.u32 %s9262_s2, 7  ;;  %s9271_s20 = sld [smem:[#allocation54_spill]] }
 0x20e   : > { %s9270_s28 = scalar_select %p8418_p10, 1, 0 }
 0x20f   : > { %s739_s24 = scalar_lea.vmem [#allocation2], %s5250_s5  ;;  %p8431_p11 = pnand %p6762_p4, %p67_p2 }
 0x210   : > { %s745_s21 = sshll.u32 %s739_s24, 4  ;;  %s736_s8 = scalar_lea.sflag [#allocation3], %s8416_s30  ;;  %s8435_s21 = int_to_ptr.vmem [resolvable:$true] %s745_s21 }
 0x211   : > { %p7627_p8 = pneg %p8431_p11 }
 0x213   : > { %s8429_s3 = scalar_lea.hbm %s9271_s20, %s9211_s27  ;;  %s7630_s0 = scalar_lea.hbm %s9271_s20, 2048 }
 0x214   : > { %s7625_s9 = scalar_lea.hbm %s8429_s3, 1024  ;;  %p7631_p13 = scmp.lt.u32.totalorder %s8429_s3, %s9271_s20 }
 0x215   : > { %p7626_p12 = scmp.ne.s32.totalorder %s8429_s3, %s7625_s9  ;;  %p7632_p0 = scmp.lt.u32.totalorder %s7630_s0, %s7625_s9 }
 0x216   : > { %p7634_p5 = scmp.lt.u32.totalorder %s7625_s9, %s8429_s3 }
 0x217   : > { %p7628_p1 = pnand %p7627_p8, %p7626_p12  ;;  %p7633_p2 = por %p7632_p0, %p7631_p13 }
 0x219   : > { %p7629_p3 = pneg %p7628_p1  ;;  %p7635_p9 = por %p7634_p5, %p7633_p2 }
 0x21b   : > { %p7636_p4 = pnand %p7635_p9, %p7629_p3 }
 0x21d   : > { %7639 = shalt.err (!%p7636_p4)
}
 0x21e   : > { %s7640_s7 = scalar_lea.vmem %s8435_s21, 1024  ;;  %s7850_s5 = smov [#allocation2]  }
 0x21f   : > { %p7641_p12 = scmp.ne.s32.totalorder %s8435_s21, %s7640_s7  ;;  %s7645_s16 = sshll.u32 %s7850_s5, 4  ;;  %s7646_s16 = int_to_ptr.vmem [resolvable:$false] %s7645_s16 }
 0x220   : > { %s7647_s27 = scalar_lea.vmem %s7646_s16, 2048  ;;  %p7648_p7 = scmp.lt.s32.totalorder %s8435_s21, %s7646_s16 }
 0x221   : > { %p7643_p1 = pnand %p7641_p12, %p7627_p8  ;;  %p7649_p13 = scmp.lt.s32.totalorder %s7647_s27, %s7640_s7 }
 0x223   : > { %p7644_p10 = pneg %p7643_p1  ;;  %p7650_p0 = por %p7649_p13, %p7648_p7 }
 0x225   : > { %p7651_p2 = pnand %p7650_p0, %p7644_p10 }
 0x227   : > { %7654 = shalt.err (!%p7651_p2)
}
 0x228   : > { %s7851_s9 = smov 256   ;;  %s5252_s0 = sshll.u32 %s8416_s30, 3 }
 0x229   : > { %6734 = dma.hbm_to_vmem [thread:$0]  (!%p8431_p11), %s8429_s3, 1024, %s8435_s21, %s736_s8, %s7851_s9, %s9251_s22, %s9250_s26  }
 0x22a   : > { %s9273_s24 = sshll.u32 %s9262_s2, 7  ;;  %s9274_s16 = sld [smem:[#allocation55_spill]] }
 0x22b   : > { %s759_s10 = scalar_lea.vmem [#allocation5], %s5252_s0  ;;  %s9275_s12 = sand.u32 1, %s9262_s2  }
 0x22c   : > { %s766_s11 = sshll.u32 %s759_s10, 4  ;;  %s756_s13 = scalar_lea.sflag [#allocation6], %s9275_s12  ;;  %s767_s11 = int_to_ptr.vmem [resolvable:$true] %s766_s11 }
 0x230   : > { %s8474_s27 = scalar_lea.hbm %s9274_s16, %s9273_s24  ;;  %s7660_s22 = scalar_lea.hbm %s9274_s16, 256 }
 0x231   : > { %s7655_s14 = scalar_lea.hbm %s8474_s27, 128  ;;  %p7661_p5 = scmp.lt.u32.totalorder %s8474_s27, %s9274_s16 }
 0x232   : > { %p7656_p7 = scmp.ne.s32.totalorder %s8474_s27, %s7655_s14  ;;  %p7662_p9 = scmp.lt.u32.totalorder %s7660_s22, %s7655_s14 }
 0x233   : > { %p7664_p12 = scmp.lt.u32.totalorder %s7655_s14, %s8474_s27 }
 0x234   : > { %p7658_p10 = pnand %p7656_p7, %p7627_p8  ;;  %p7663_p4 = por %p7662_p9, %p7661_p5 }
 0x236   : > { %p7659_p3 = pneg %p7658_p10  ;;  %p7665_p1 = por %p7664_p12, %p7663_p4 }
 0x238   : > { %p7666_p13 = pnand %p7665_p1, %p7659_p3 }
 0x23a   : > { %7669 = shalt.err (!%p7666_p13)
}
 0x23b   : > { %s7670_s10 = scalar_lea.vmem %s767_s11, 128  ;;  %s7852_s12 = smov [#allocation5]  }
 0x23c   : > { %p7671_p0 = scmp.ne.s32.totalorder %s767_s11, %s7670_s10  ;;  %s7675_s2 = sshll.u32 %s7852_s12, 4  ;;  %s7676_s2 = int_to_ptr.vmem [resolvable:$false] %s7675_s2 }
 0x23d   : > { %s7677_s21 = scalar_lea.vmem %s7676_s2, 256  ;;  %p7678_p10 = scmp.lt.s32.totalorder %s767_s11, %s7676_s2 }
 0x23e   : > { %p7673_p2 = pnand %p7671_p0, %p7627_p8  ;;  %p7679_p6 = scmp.lt.s32.totalorder %s7677_s21, %s7670_s10 }
 0x240   : > { %p7674_p7 = pneg %p7673_p2  ;;  %p7680_p5 = por %p7679_p6, %p7678_p10 }
 0x242   : > { %p7681_p9 = pnand %p7680_p5, %p7674_p7 }
 0x244   : > { %7684 = shalt.err (!%p7681_p9)
}
 0x245   : > { %6737 = dma.hbm_to_vmem [thread:$0]  (!%p8431_p11), %s8474_s27, 128, %s767_s11, %s756_s13  }
 0x246   : > { %s9276_s14 = sld [smem:[#allocation53_spill]] }
 0x24c   : > { %p9277_p3 = scmp.ne.s32.totalorder %s9276_s14, 0 }
 0x24d   : > { %s9278_s9 = sld [smem:[#allocation49_spill]] (!%p9277_p3)  ;;  %p9279_p6 = scmp.ne.s32.totalorder (!%p9277_p3), %s9268_s23, 0 }
 0x24e   : > { %775 = sbr.rel (%p9277_p3) target bundleno = 4091 (0xffb), region = 96 }
 0x253   : > { %s8500_s0 = sand.u32 (!%p9277_p3), 1, %s9278_s9  }
 0x254   : > { %s5255_s24 = sshll.u32 (!%p9277_p3), %s8500_s0, 6  ;;  %s778_s7 = scalar_lea.sflag (!%p9277_p3), [#allocation3], %s8500_s0 }
 0x255   : > { %s8504_s5 = scalar_lea.vmem [#allocation2], %s5255_s24 }
 0x256   : > { %7758 = dma.done.wait (%p9279_p6), %s778_s7, 1024  }
 0x257   : > { %7760 = vsyncadd (%p9279_p6), %s778_s7, 4294966272  ;;  %s9280_s6 = sld [smem:[#allocation52_spill]]  ;;  %s8512_s13 = sshll.u32 %s8500_s0, 3 }
 0x258   : > { %s790_s8 = scalar_lea.vmem [#allocation5], %s8512_s13 }
 0x25d   : > { %s786_s11 = sand.u32 1, %s9280_s6  }
 0x25e   : > { %s787_s27 = scalar_lea.sflag [#allocation6], %s786_s11 }
 0x25f   : > { %7762 = dma.done.wait (%p9279_p6), %s787_s27, 128  }
 0x260   : > { %7764 = vsyncadd (%p9279_p6), %s787_s27, 4294967168  ;;  %p9281_p11 = scmp.eq.s32.totalorder %s9280_s6, 0 }
 0x262   : > { %7766 = dma.done.wait (%p9281_p11), [#allocation6], 256   ;;  %p9282_p8 = pmov %p9281_p11 }
 0x264   : > { %7768 = vsyncadd (%p9282_p8), [#allocation6], 4294967040  ;;  %p9283_p4 = pmov %p9282_p8 }
 0x266   : > { %7770 = dma.done.wait (%p9283_p4), [#allocation9], 1552   ;;  %p9284_p12 = pmov %p9283_p4 }
 0x267   : > { %p9285_p1 = pmov %p9283_p4 }
 0x268   : > { %7772 = vsyncadd (%p9284_p12), [#allocation9], 4294965744 }
 0x269   : > { %7774 = dma.done.wait (%p9285_p1), [#allocation12], 6192   ;;  %p9286_p13 = pmov %p9285_p1 }
 0x26a   : > { %p9287_p0 = pmov %p9285_p1 }
 0x26b   : > { %7776 = vsyncadd (%p9286_p13), [#allocation12], 4294961104 }
 0x26c   : > { %7778 = dma.done.wait (%p9287_p0), [#allocation15], 2064   ;;  %p9288_p2 = pmov %p9287_p0 }
 0x26d   : > { %p9289_p7 = pmov %p9287_p0 }
 0x26e   : > { %7780 = vsyncadd (%p9288_p2), [#allocation15], 4294965232 }
 0x26f   : > { %7782 = dma.done.wait (%p9289_p7), [#allocation18], 8320   ;;  %p9290_p10 = pmov %p9287_p0 }
 0x270   : > { %p9291_p5 = pmov %p9287_p0 }
 0x271   : > { %7784 = vsyncadd (%p9290_p10), [#allocation18], 4294958976 }
 0x272   : > { %7786 = dma.done.wait (%p9291_p5), [#allocation21], 8224   ;;  %p9292_p9 = pmov %p9287_p0 }
 0x273   : > { %p9293_p3 = pmov %p9287_p0 }
 0x274   : > { %7788 = vsyncadd (%p9292_p9), [#allocation21], 4294959072 }
 0x275   : > { %7790 = dma.done.wait (%p9293_p3), [#allocation24], 2064   ;;  %p9294_p6 = pmov %p9287_p0 }
 0x276   : > { %p9295_p11 = pmov %p9287_p0 }
 0x277   : > { %7792 = vsyncadd (%p9294_p6), [#allocation24], 4294965232 }
 0x278   : > { %7794 = dma.done.wait (%p9295_p11), [#allocation27], 8224   ;;  %p9296_p8 = pmov %p9287_p0 }
 0x279   : > { %p9297_p4 = pmov %p9287_p0 }
 0x27a   : > { %7796 = vsyncadd (%p9296_p8), [#allocation27], 4294959072 }
 0x27b   : > { %7798 = dma.done.wait (%p9297_p4), [#allocation30], 2064   ;;  %p9298_p12 = pmov %p9287_p0 }
 0x27c   : > { %vm968_vm0 = vcmask 1040384   ;;  %vm943_vm1 = vcmask 72704   ;;  %vm7853_vm2 = vmmov 1   ;;  %v934_v0 = vld [vmem:[#allocation7] sm:$0xff]  ;;  %v935_v1 = vld [vmem:[#allocation7 + $0x8] sm:$0x1] }
 0x27d   : > { %7800 = vsyncadd (%p9298_p12), [#allocation30], 4294965232  ;;  %v926_v2 = vld [vmem:[%s8504_s5] sm:$0xff]  ;;  %v6089_v3 = vpack.c.bf16 %v935_v1, %v934_v0  ;;  %v927_v4 = vld [vmem:[%s8504_s5 + $0x8] sm:$0xff]  ;;  %v7854_v32 = vmov 0.0   ;;  %v7855_v33 = vmov 0.0|0.0  }
 0x27e   : > { %vm6090_vm3 = vmpackc.low %vm968_vm0, %vm7853_vm2  ;;  %5777 = vmatprep.mubr.msk.f32.mxu0 %vm943_vm1, %v926_v2  ;;  %v928_v5 = vld [vmem:[%s8504_s5 + $0x10] sm:$0xff]  ;;  %v1089_v7 = vld [vmem:[#allocation10 + $0x20] sm:$0xff]  ;;  %1203 = vmatprep.mubr.f32.mxu1 %v7854_v32  ;;  %vm1114_vm4 = vcmask 261120   ;;  %vm7856_vm5 = vmmov 0   ;;  %s917_s23 = scalar_lea.vmem [#allocation32], %s8512_s13  ;;  %s5567_s26 = sshll.u32 %s9280_s6, 7 }
 0x27f   : > { %6091 = vmatprep.subr.msk.bf16.mxu0 %vm6090_vm3, %v6089_v3  ;;  %v1086_v6 = vld [vmem:[#allocation10 + $0x8] sm:$0xff]  ;;  %v1085_v9 = vld [vmem:[#allocation10] sm:$0xff]  ;;  %v1088_v10 = vld [vmem:[#allocation10 + $0x18] sm:$0xff]  ;;  %s9299_s30 = sld [smem:[#allocation71_spill]]  ;;  %s4931_s12 = sshll.u32 %s917_s23, 4  ;;  %s4932_s12 = int_to_ptr.vmem [resolvable:$true] %s4931_s12 }
 0x280   : > { %6094 = vmatpush3.bf16.msk.msra.mxu0 %vm6090_vm3, %v6089_v3  ;;  %v6095_v8 = vpack.c.bf16 %v1089_v7, %v1086_v6  ;;  %v1087_v11 = vld [vmem:[#allocation10 + $0x10] sm:$0xff]  ;;  %v6097_v12 = vpack.c.bf16 %v1088_v10, %v1085_v9  ;;  %v1090_v13 = vld [vmem:[#allocation10 + $0x28] sm:$0xff]  ;;  %v930_v16 = vld [vmem:[%s8504_s5 + $0x20] sm:$0xff]  ;;  %s4913_s2 = scalar_lea.sflag [#allocation4], %s8500_s0  ;;  %s7685_s21 = scalar_lea.vmem %s4932_s12, 128 }
 0x281   : > { %v929_v14 = vld [vmem:[%s8504_s5 + $0x18] sm:$0xff]  ;;  %v6103_v15 = vpack.c.bf16 %v1090_v13, %v1087_v11  ;;  %v931_v17 = vld [vmem:[%s8504_s5 + $0x28] sm:$0xff]  ;;  %v932_v18 = vld [vmem:[%s8504_s5 + $0x30] sm:$0xff]  ;;  %p7686_p1 = scmp.ne.s32.totalorder %s4932_s12, %s7685_s21  ;;  %p9300_p13 = scmp.ne.s32.totalorder %s9269_s1, 0 }
 0x282   : > { %6096 = vmatprep.subr.bf16.mxu1 %v6095_v8  ;;  %v933_v19 = vld [vmem:[%s8504_s5 + $0x38] sm:$0xff]  ;;  %v1094_v24 = vld [vmem:[#allocation10 + $0x48] sm:$0xff]  ;;  %v1093_v26 = vld [vmem:[#allocation10 + $0x40] sm:$0xff]  ;;  %s7858_s14 = smov [#allocation32]  }
 0x283   : > { %5778 = vmatmul.mubr.msk.f32.vlgmr.msra.gmra.mrb[0].mxu0 %vm943_vm1, %v927_v4  ;;  %6098 = vmatpush1.bf16.msra.mxu1 %v6097_v12  ;;  %v1092_v20 = vld [vmem:[#allocation10 + $0x38] sm:$0xff]  ;;  %v1095_v21 = vld [vmem:[#allocation10 + $0x50] sm:$0xff]  ;;  %v1361_v30 = vld [vmem:[#allocation13 + $0x20] sm:$0xff]  ;;  %p7687_p0 = pnand %p7686_p1, %p9300_p13  ;;  %s7689_s9 = sshll.u32 %s7858_s14, 4  ;;  %s7690_s9 = int_to_ptr.vmem [resolvable:$false] %s7689_s9 }
 0x284   : > { %5780 = vmatprep.mubr.msk.f32.mxu0 %vm943_vm1, %v928_v5  ;;  %6104 = vmatprep.subr.bf16.mxu0 %v6103_v15  ;;  %v6099_v22 = vpack.c.bf16 %v1095_v21, %v1092_v20  ;;  %v1091_v23 = vld [vmem:[#allocation10 + $0x30] sm:$0xff]  ;;  %v1096_v27 = vld [vmem:[#allocation10 + $0x58] sm:$0xff]  ;;  %v1357_v36 = vld [vmem:[#allocation13] sm:$0xff]  ;;  %s7691_s24 = scalar_lea.vmem %s7690_s9, 256  ;;  %p7692_p7 = scmp.lt.s32.totalorder %s4932_s12, %s7690_s9 }
 0x285   : > { %6106 = vmatpush3.bf16.msra.mxu0 %v6103_v15  ;;  %v6101_v25 = vpack.c.bf16 %v1094_v24, %v1091_v23  ;;  %v6107_v28 = vpack.c.bf16 %v1096_v27, %v1093_v26  ;;  %v1358_v29 = vld [vmem:[#allocation13 + $0x8] sm:$0xff]  ;;  %v8576_v34 = vld [vmem:[#allocation8] ss:$0 sm:$0xff]  ;;  %v1367_v41 = vld [vmem:[#allocation13 + $0x50] sm:$0xff]  ;;  %s9093_s10 = scalar_lea.hbm %s9299_s30, %s5567_s26  ;;  %p7688_p2 = pneg %p7687_p0 }
 0x286   : > { %6100 = vmatprep.subr.bf16.mxu1 %v6099_v22  ;;  %v8571_v31 = vpack.c.bf16 %v1361_v30, %v1358_v29  ;;  %v1360_v37 = vld [vmem:[#allocation13 + $0x18] sm:$0xff]  ;;  %v1359_v43 = vld [vmem:[#allocation13 + $0x10] sm:$0xff]  ;;  %v1362_v44 = vld [vmem:[#allocation13 + $0x28] sm:$0xff]  ;;  %p7693_p10 = scmp.lt.s32.totalorder %s7691_s24, %s7685_s21 }
 0x287   : > { %5781 = vmatmul.mubr.msk.f32.gmra.mrb[2].mxu0 %vm943_vm1, %v929_v14  ;;  %6102 = vmatpush1.bf16.msra.mxu1 %v6101_v25  ;;  %v1364_v40 = vld [vmem:[#allocation13 + $0x38] sm:$0xff]  ;;  %v8580_v45 = vpack.c.bf16 %v1360_v37, %v1357_v36  ;;  %v1363_v49 = vld [vmem:[#allocation13 + $0x30] sm:$0xff]  ;;  %v1366_v50 = vld [vmem:[#allocation13 + $0x48] sm:$0xff]  ;;  %v8587_v56 = vpack.c.bf16 %v1362_v44, %v1359_v43 }
 0x288   : > { %5783 = vmatprep.mubr.msk.f32.mxu0 %vm943_vm1, %v930_v16  ;;  %6108 = vmatprep.subr.bf16.mxu0 %v6107_v28  ;;  %v8582_v48 = vpack.c.bf16 %v1367_v41, %v1364_v40  ;;  %v1370_v54 = vld [vmem:[#allocation13 + $0x68] sm:$0xff]  ;;  %v1373_v55 = vld [vmem:[#allocation13 + $0x80] sm:$0xff]  ;;  %v8595_v59 = vpack.c.bf16 %v1366_v50, %v1363_v49  ;;  %v1372_v0 = vld [vmem:[#allocation13 + $0x78] sm:$0xff]  ;;  %p7694_p5 = por %p7693_p10, %p7692_p7 }
 0x289   : > { %6110 = vmatpush3.bf16.msra.mxu0 %v6107_v28  ;;  %6112 = vmatprep.subr.bf16.mxu1 %v8571_v31  ;;  %v8599_v62 = vpack.c.bf16 %v1373_v55, %v1370_v54  ;;  %v1369_v63 = vld [vmem:[#allocation13 + $0x60] sm:$0xff]  ;;  %v1376_v3 = vld [vmem:[#allocation13 + $0x98] sm:$0xff]  ;;  %v1379_v4 = vld [vmem:[#allocation13 + $0xb0] sm:$0xff] }
 0x28a   : > { %6143 = vmatprep.subr.bf16.mxu0 %v7855_v33  ;;  %v1365_v6 = vld [vmem:[#allocation13 + $0x40] sm:$0xff]  ;;  %v1368_v7 = vld [vmem:[#allocation13 + $0x58] sm:$0xff]  ;;  %v8610_v8 = vpack.c.bf16 %v1372_v0, %v1369_v63  ;;  %v8615_v11 = vpack.c.bf16 %v1379_v4, %v1376_v3  ;;  %v1375_v12 = vld [vmem:[#allocation13 + $0x90] sm:$0xff]  ;;  %p7695_p9 = pnand %p7694_p5, %p7688_p2 }
 0x28b   : > { %5784 = vmatmul.mubr.msk.f32.gmra.mrb[4].mxu0 %vm943_vm1, %v931_v17  ;;  %v1378_v13 = vld [vmem:[#allocation13 + $0xa8] sm:$0xff]  ;;  %v1371_v22 = vld [vmem:[#allocation13 + $0x70] sm:$0xff]  ;;  %v1381_v27 = vld [vmem:[#allocation13 + $0xc0] sm:$0xff] }
 0x28c   : > { %5786 = vmatprep.mubr.msk.f32.mxu0 %vm943_vm1, %v932_v18  ;;  %v1382_v17 = vld [vmem:[#allocation13 + $0xc8] sm:$0xff]  ;;  %v1385_v18 = vld [vmem:[#allocation13 + $0xe0] sm:$0xff]  ;;  %v8630_v21 = vpack.c.bf16 %v1378_v13, %v1375_v12  ;;  %v1384_v28 = vld [vmem:[#allocation13 + $0xd8] sm:$0xff] }
 0x28d   : > { %v1374_v23 = vld [vmem:[#allocation13 + $0x88] sm:$0xff]  ;;  %v8638_v26 = vpack.c.bf16 %v1385_v18, %v1382_v17  ;;  %v1388_v29 = vld [vmem:[#allocation13 + $0xf8] sm:$0xff]  ;;  %v1391_v30 = vld [vmem:[#allocation13 + $0x110] sm:$0xff] }
 0x28e   : > { %v1377_v36 = vld [vmem:[#allocation13 + $0xa0] sm:$0xff]  ;;  %v1380_v37 = vld [vmem:[#allocation13 + $0xb8] sm:$0xff]  ;;  %v1390_v40 = vld [vmem:[#allocation13 + $0x108] sm:$0xff] }
 0x28f   : > { %5787 = vmatmul.mubr.msk.f32.gmra.mrb[6].mxu0 %vm943_vm1, %v933_v19  ;;  %v8621_v19 = vpack.c.bf16 %v1368_v7, %v1365_v6  ;;  %v1394_v41 = vld [vmem:[#allocation13 + $0x128] sm:$0xff]  ;;  %v8660_v43 = vpack.c.bf16 %v1380_v37, %v1377_v36  ;;  %v1393_v50 = vld [vmem:[#allocation13 + $0x120] sm:$0xff]  ;;  %v1404_v6 = vld [vmem:[#allocation13 + $0x178] sm:$0xff] }
 0x290   : > { %v1402_v63 = vld [vmem:[#allocation13 + $0x168] sm:$0xff]  ;;  %v1097_v13 = vld [vmem:[#allocation11] sm:$0x7] }
 0x291   : > { %v1398_v3 = vld [vmem:[#allocation13 + $0x148] sm:$0xff] }
 0x356   : > { %v5779_v35 = vpop.f32.mrb[0].mxu0 }
 0x357   : > { %v1044_v38 = vadd.f32 %v5779_v35, %v8576_v34  ;;  %v1038_v39 = vpop.f32.mrb[1].mxu0  ;;  %v8647_v35 = vpack.c.bf16 %v1384_v28, %v1381_v27 }
 0x358   : > { %v1039_v42 = vadd.f32 %v8576_v34, %v1038_v39  ;;  %v1387_v39 = vld [vmem:[#allocation13 + $0xf0] sm:$0xff] }
 0x359   : > { %v1078_v51 = vmax.f32 %v1044_v38, 0.0  ;;  %v8650_v38 = vpack.c.bf16 %v1391_v30, %v1388_v29  ;;  %v8664_v44 = vpack.c.bf16 %v1390_v40, %v1387_v39 }
 0x35a   : > { %v1077_v46 = vmax.f32 %v1039_v42, 0.0  ;;  %v5782_v47 = vpop.f32.mrb[2].mxu0  ;;  %v1397_v42 = vld [vmem:[#allocation13 + $0x140] sm:$0xff] }
 0x35b   : > { %v8585_v52 = vadd.f32 %v5782_v47, %v8576_v34  ;;  %v1048_v53 = vpop.f32.mrb[3].mxu0  ;;  %v1386_v47 = vld [vmem:[#allocation13 + $0xe8] sm:$0xff]  ;;  %v8667_v49 = vpack.c.bf16 %v1397_v42, %v1394_v41 }
 0x35c   : > { %v1049_v57 = vadd.f32 %v8576_v34, %v1048_v53  ;;  %5286 = vmatmul.mubr.msk.f32.vlgmr.msra.gmra.mrb[0].mxu1 %vm1114_vm4, %v1077_v46  ;;  %5797 = vmatprep.mubr.msk.f32.mxu0 %vm1114_vm4, %v1077_v46  ;;  %v1383_v46 = vld [vmem:[#allocation13 + $0xd0] sm:$0xff] }
 0x35d   : > { %v1080_v58 = vmax.f32 %v8585_v52, 0.0  ;;  %5798 = vmatmul.mubr.msk.f32.vlgmr.msra.gmra.mrb[8].mxu0 %vm1114_vm4, %v1078_v51  ;;  %6114 = vmatpush1.bf16.msra.mxu1 %v8580_v45  ;;  %v1400_v52 = vld [vmem:[#allocation13 + $0x158] sm:$0xff]  ;;  %v1403_v53 = vld [vmem:[#allocation13 + $0x170] sm:$0xff]  ;;  %v8674_v54 = vpack.c.bf16 %v1386_v47, %v1383_v46 }
 0x35e   : > { %v1079_v60 = vmax.f32 %v1049_v57, 0.0  ;;  %1209 = vmatprep.mubr.f32.mxu1 %v7854_v32  ;;  %6116 = vmatprep.subr.bf16.mxu1 %v8582_v48  ;;  %v5785_v61 = vpop.f32.mrb[4].mxu0  ;;  %v1389_v57 = vld [vmem:[#allocation13 + $0x100] sm:$0xff] }
 0x35f   : > { %v8602_v1 = vadd.f32 %v5785_v61, %v8576_v34  ;;  %v1058_v2 = vpop.f32.mrb[5].mxu0  ;;  %6145 = vmatpush3.bf16.msra.mxu0 %v8587_v56  ;;  %v1399_v61 = vld [vmem:[#allocation13 + $0x150] sm:$0xff] }
 0x360   : > { %5287 = vmatmul.mubr.msk.f32.gmra.mrb[2].mxu1 %vm1114_vm4, %v1078_v51  ;;  %5800 = vmatprep.mubr.msk.f32.mxu0 %vm1114_vm4, %v1079_v60  ;;  %v1059_v5 = vadd.f32 %v8576_v34, %v1058_v2  ;;  %v1396_v51 = vld [vmem:[#allocation13 + $0x138] sm:$0xff]  ;;  %v1395_v2 = vld [vmem:[#allocation13 + $0x130] sm:$0xff] }
 0x361   : > { %6118 = vmatpush1.bf16.msra.mxu1 %v8595_v59  ;;  %5801 = vmatmul.mubr.msk.f32.gmra.mrb[10].mxu0 %vm1114_vm4, %v1080_v58  ;;  %v1082_v9 = vmax.f32 %v8602_v1, 0.0  ;;  %v8678_v55 = vpack.c.bf16 %v1396_v51, %v1393_v50  ;;  %v8690_v1 = vpack.c.bf16 %v1402_v63, %v1399_v61  ;;  %v8698_v4 = vpack.c.bf16 %v1398_v3, %v1395_v2  ;;  %v8780_v3 = vld [vmem:[#allocation14] ss:$0 sm:$0xff] }
 0x362   : > { %1215 = vmatprep.mubr.f32.mxu1 %v7854_v32  ;;  %v1081_v10 = vmax.f32 %v1059_v5, 0.0  ;;  %6120 = vmatprep.subr.bf16.mxu1 %v8599_v62  ;;  %v5788_v14 = vpop.f32.mrb[6].mxu0  ;;  %v1401_v5 = vld [vmem:[#allocation13 + $0x160] sm:$0xff] }
 0x363   : > { %v8618_v15 = vadd.f32 %v5788_v14, %v8576_v34  ;;  %v1068_v16 = vpop.f32.mrb[7].mxu0  ;;  %6146 = vmatprep.subr.bf16.mxu0 %v7855_v33  ;;  %v8706_v7 = vpack.c.bf16 %v1404_v6, %v1401_v5 }
 0x364   : > { %5288 = vmatmul.mubr.msk.f32.gmra.mrb[4].mxu1 %vm1114_vm4, %v1079_v60  ;;  %5803 = vmatprep.mubr.msk.f32.mxu0 %vm1114_vm4, %v1081_v10  ;;  %v8626_v20 = vadd.f32 %v8576_v34, %v1068_v16  ;;  %v8643_v34 = vpack.c.bf16 %v1374_v23, %v1371_v22  ;;  %v8681_v60 = vpack.c.bf16 %v1403_v53, %v1400_v52 }
 0x365   : > { %6122 = vmatpush1.bf16.msra.mxu1 %v8610_v8  ;;  %1221 = vmatprep.mubr.f32.mxu1 %v7854_v32  ;;  %v1084_v24 = vmax.f32 %v8618_v15, 0.0 }
 0x366   : > { %6124 = vmatprep.subr.bf16.mxu1 %v8615_v11  ;;  %5804 = vmatmul.mubr.msk.f32.gmra.mrb[12].mxu0 %vm1114_vm4, %v1082_v9  ;;  %v1083_v25 = vmax.f32 %v8626_v20, 0.0 }
 0x367   : > { %6148 = vmatpush3.bf16.msra.mxu0 %v8621_v19 }
 0x368   : > { %5289 = vmatmul.mubr.msk.f32.gmra.mrb[6].mxu1 %vm1114_vm4, %v1080_v58  ;;  %5806 = vmatprep.mubr.msk.f32.mxu0 %vm1114_vm4, %v1083_v25  ;;  %v1392_v58 = vld [vmem:[#allocation13 + $0x118] sm:$0xff] }
 0x369   : > { %6126 = vmatpush1.bf16.msra.mxu1 %v8630_v21  ;;  %1227 = vmatprep.mubr.f32.mxu1 %v7854_v32  ;;  %v8686_v0 = vpack.c.bf16 %v1392_v58, %v1389_v57 }
 0x36a   : > { %6128 = vmatprep.subr.bf16.mxu1 %v8638_v26  ;;  %5807 = vmatmul.mubr.msk.f32.gmra.mrb[14].mxu0 %vm1114_vm4, %v1084_v24 }
 0x36b   : > { %6149 = vmatprep.subr.bf16.mxu0 %v7855_v33  ;;  %5841 = vmatprep.mubr.msk.f32.mxu0 %vm7856_vm5, %v7854_v32 }
 0x36c   : > { %5290 = vmatmul.mubr.msk.f32.gmra.mrb[8].mxu1 %vm1114_vm4, %v1081_v10  ;;  %6151 = vmatpush3.bf16.msra.mxu0 %v8643_v34 }
 0x36d   : > { %6130 = vmatpush1.bf16.msra.mxu1 %v8647_v35  ;;  %1233 = vmatprep.mubr.f32.mxu1 %v7854_v32 }
 0x36e   : > { %6132 = vmatprep.subr.bf16.mxu1 %v8650_v38  ;;  %6152 = vmatprep.subr.bf16.mxu0 %v7855_v33 }
 0x370   : > { %5291 = vmatmul.mubr.msk.f32.gmra.mrb[10].mxu1 %vm1114_vm4, %v1082_v9  ;;  %6154 = vmatpush3.bf16.msra.mxu0 %v8660_v43  ;;  %v1099_v9 = vlaneseq }
 0x371   : > { %6134 = vmatpush1.bf16.msra.mxu1 %v8664_v44  ;;  %1239 = vmatprep.mubr.f32.mxu1 %v7854_v32 }
 0x372   : > { %6136 = vmatprep.subr.bf16.mxu1 %v8667_v49  ;;  %6155 = vmatprep.subr.bf16.mxu0 %v7855_v33  ;;  %v8747_v10 = vshrl.u32 %v1099_v9, 7 }
 0x374   : > { %5292 = vmatmul.mubr.msk.f32.gmra.mrb[12].mxu1 %vm1114_vm4, %v1083_v25  ;;  %6157 = vmatpush3.bf16.msra.mxu0 %v8674_v54  ;;  %v1109_v12 = vsub.s32 2, %v8747_v10  ;;  %v8767_v39 = vsub.s32 0, %v8747_v10  ;;  %v8770_v40 = vsub.s32 1, %v8747_v10 }
 0x375   : > { %6138 = vmatpush1.bf16.msra.mxu1 %v8678_v55  ;;  %1245 = vmatprep.mubr.f32.mxu1 %v7854_v32 }
 0x376   : > { %6140 = vmatprep.subr.bf16.mxu1 %v8681_v60  ;;  %6158 = vmatprep.subr.bf16.mxu0 %v7855_v33  ;;  %v1110_v14 = vrot.slane %v1097_v13, %v1109_v12  ;;  %v8773_v41 = vrot.slane %v1097_v13, %v8767_v39  ;;  %v8776_v46 = vrot.slane %v1097_v13, %v8770_v40 }
 0x378   : > { %5293 = vmatmul.mubr.msk.f32.gmra.mrb[14].mxu1 %vm1114_vm4, %v1084_v24  ;;  %6160 = vmatpush3.bf16.msra.mxu0 %v8686_v0 }
 0x379   : > { %6142 = vmatpush1.bf16.msra.mxu1 %v8690_v1  ;;  %1470 = vmatprep.mubr.f32.mxu1 %v7854_v32 }
 0x37a   : > { %6161 = vmatprep.subr.bf16.mxu0 %v7855_v33  ;;  %6168 = vmatprep.subr.bf16.mxu1 %v8571_v31 }
 0x37c   : > { %1471 = vmatmul.mubr.f32.vlgmr.msra.gmra.mrb[0].mxu1 %v7854_v32  ;;  %6163 = vmatpush3.bf16.msra.mxu0 %v8698_v4 }
 0x37d   : > { %6164 = vmatprep.subr.bf16.mxu0 %v7855_v33  ;;  %6170 = vmatpush1.bf16.msra.mxu1 %v8580_v45 }
 0x37e   : > { %6172 = vmatprep.subr.bf16.mxu1 %v8582_v48  ;;  %1639 = vmatprep.mubr.f32.mxu1 %v7854_v32 }
 0x380   : > { %6166 = vmatpush3.bf16.msra.mxu0 %v8706_v7 }
 0x381   : > { %6199 = vmatprep.subr.bf16.mxu0 %v7855_v33  ;;  %6174 = vmatpush1.bf16.msra.mxu1 %v8595_v59 }
 0x382   : > { %6176 = vmatprep.subr.bf16.mxu1 %v8599_v62 }
 0x383   : > { %5842 = vmatmul.mubr.f32.vlgmr.msra.gmra.mrb[16].mxu0 %v7854_v32 }
 0x384   : > { %6201 = vmatpush3.bf16.msra.mxu0 %v8587_v56  ;;  %5876 = vmatprep.mubr.msk.f32.mxu0 %vm7856_vm5, %v7854_v32 }
 0x385   : > { %6202 = vmatprep.subr.bf16.mxu0 %v7855_v33  ;;  %6178 = vmatpush1.bf16.msra.mxu1 %v8610_v8 }
 0x386   : > { %6180 = vmatprep.subr.bf16.mxu1 %v8615_v11 }
 0x388   : > { %6204 = vmatpush3.bf16.msra.mxu0 %v8621_v19 }
 0x389   : > { %6205 = vmatprep.subr.bf16.mxu0 %v7855_v33  ;;  %6182 = vmatpush1.bf16.msra.mxu1 %v8630_v21 }
 0x38a   : > { %6184 = vmatprep.subr.bf16.mxu1 %v8638_v26 }
 0x38c   : > { %6207 = vmatpush3.bf16.msra.mxu0 %v8643_v34 }
 0x38d   : > { %6208 = vmatprep.subr.bf16.mxu0 %v7855_v33  ;;  %6186 = vmatpush1.bf16.msra.mxu1 %v8647_v35 }
 0x38e   : > { %6188 = vmatprep.subr.bf16.mxu1 %v8650_v38 }
 0x390   : > { %6210 = vmatpush3.bf16.msra.mxu0 %v8660_v43 }
 0x391   : > { %6211 = vmatprep.subr.bf16.mxu0 %v7855_v33  ;;  %6190 = vmatpush1.bf16.msra.mxu1 %v8664_v44 }
 0x392   : > { %6192 = vmatprep.subr.bf16.mxu1 %v8667_v49 }
 0x394   : > { %6213 = vmatpush3.bf16.msra.mxu0 %v8674_v54 }
 0x395   : > { %6214 = vmatprep.subr.bf16.mxu0 %v7855_v33  ;;  %6194 = vmatpush1.bf16.msra.mxu1 %v8678_v55 }
 0x396   : > { %6196 = vmatprep.subr.bf16.mxu1 %v8681_v60 }
 0x398   : > { %6216 = vmatpush3.bf16.msra.mxu0 %v8686_v0 }
 0x399   : > { %6217 = vmatprep.subr.bf16.mxu0 %v7855_v33  ;;  %6198 = vmatpush1.bf16.msra.mxu1 %v8690_v1 }
 0x39a   : > { %6224 = vmatprep.subr.bf16.mxu1 %v8571_v31 }
 0x39c   : > { %6219 = vmatpush3.bf16.msra.mxu0 %v8698_v4 }
 0x39d   : > { %6220 = vmatprep.subr.bf16.mxu0 %v7855_v33 }
 0x3a0   : > { %6222 = vmatpush3.bf16.msra.mxu0 %v8706_v7 }
 0x3a1   : > { %6255 = vmatprep.subr.bf16.mxu0 %v7855_v33 }
 0x430   : > { %v5799_v15 = vpop.f32.mrb[8].mxu0 }
 0x431   : > { %v8752_v16 = vadd.f32 %v5799_v15, %v1110_v14  ;;  %v1318_v17 = vpop.f32.mrb[9].mxu0 }
 0x432   : > { %v1319_v13 = vadd.f32 %v1318_v17, %v1110_v14 }
 0x434   : > { %v5802_v18 = vpop.f32.mrb[10].mxu0 }
 0x435   : > { %v8754_v20 = vadd.f32 %v5802_v18, %v1110_v14  ;;  %v1328_v22 = vpop.f32.mrb[11].mxu0 }
 0x436   : > { %v8756_v23 = vadd.f32 %v1328_v22, %v1110_v14 }
 0x439   : > { %v5805_v24 = vpop.f32.mrb[12].mxu0 }
 0x43a   : > { %v8758_v25 = vadd.f32 %v5805_v24, %v1110_v14  ;;  %v1338_v27 = vpop.f32.mrb[13].mxu0 }
 0x43b   : > { %v8760_v28 = vadd.f32 %v1338_v27, %v1110_v14 }
 0x43d   : > { %v5808_v29 = vpop.f32.mrb[14].mxu0 }
 0x43e   : > { %v8762_v30 = vadd.f32 %v5808_v29, %v1110_v14  ;;  %v1348_v36 = vpop.f32.mrb[15].mxu0 }
 0x43f   : > { %v8764_v37 = vadd.f32 %v1348_v36, %v1110_v14 }
 0x44f   : > { %v1472_v42 = vpop.f32.mrb[0].mxu1 }
 0x450   : > { %v6559_v47 = vadd.f32 %v1472_v42, %v8773_v41  ;;  %v1474_v50 = vpop.f32.mrb[1].mxu1 }
 0x451   : > { %v6560_v52 = vadd.f32 %v1474_v50, %v8776_v46 }
 0x452   : > { %v5302_v51 = vmul.f32 -1.442695, %v6559_v47 }
 0x453   : > { %v5303_v57 = vmul.f32 -1.442695, %v6560_v52 }
 0x454   : > { %7068 = vpow2.f32 %v5302_v51 }
 0x455   : > { %7070 = vpow2.f32 %v5303_v57 }
 0x456   : > { %v1543_v53 = vpop.f32.mrb[16].mxu0 }
 0x457   : > { %v5843_v58 = vpop.f32.mrb[17].mxu0  ;;  %v1567_v6 = vadd.f32 %v8780_v3, %v1543_v53 }
 0x45e   : > { %v7069_v61 = vpop.eup %7068 }
 0x45f   : > { %v1551_v63 = vadd.f32 1.0, %v7069_v61  ;;  %v7071_v2 = vpop.eup %7070 }
 0x460   : > { %v1558_v5 = vadd.f32 1.0, %v7071_v2 }
 0x461   : > { %7072 = vrcp.f32 %v1551_v63 }
 0x462   : > { %7074 = vrcp.f32 %v1558_v5 }
 0x46b   : > { %v7073_v9 = vpop.eup %7072 }
 0x46c   : > { %v1568_v15 = vmul.f32 %v7073_v9, %v1567_v6  ;;  %v7075_v22 = vpop.eup %7074 }
 0x46d   : > { %v1571_v24 = vsub.f32 1.0, %v7075_v22  ;;  %v1573_v36 = vmul.f32 0.0, %v7075_v22 }
 0x46e   : > { %v1569_v18 = vadd.f32 %v1568_v15, %v1319_v13 }
 0x470   : > { %7076 = vtanh.f32 %v1569_v18 }
 0x47a   : > { %v7077_v27 = vpop.eup %7076 }
 0x47b   : > { %v1572_v29 = vmul.f32 %v7077_v27, %v1571_v24 }
 0x47d   : > { %v1574_v42 = vadd.f32 %v1573_v36, %v1572_v29 }
 0x47f   : > { %1640 = vmatmul.mubr.f32.vlgmr.msra.gmra.mrb[2].mxu1 %v1574_v42  ;;  %5877 = vmatmul.mubr.f32.vlgmr.msra.gmra.mrb[18].mxu0 %v1574_v42 }
 0x480   : > { %6226 = vmatpush1.bf16.msra.mxu1 %v8580_v45  ;;  %6257 = vmatpush3.bf16.msra.mxu0 %v8587_v56 }
 0x481   : > { %6228 = vmatprep.subr.bf16.mxu1 %v8582_v48  ;;  %6258 = vmatprep.subr.bf16.mxu0 %v7855_v33 }
 0x482   : > { %1802 = vmatprep.mubr.f32.mxu1 %v7854_v32  ;;  %5911 = vmatprep.mubr.msk.f32.mxu0 %vm7856_vm5, %v7854_v32 }
 0x484   : > { %6230 = vmatpush1.bf16.msra.mxu1 %v8595_v59  ;;  %6260 = vmatpush3.bf16.msra.mxu0 %v8621_v19 }
 0x485   : > { %6232 = vmatprep.subr.bf16.mxu1 %v8599_v62  ;;  %6261 = vmatprep.subr.bf16.mxu0 %v7855_v33 }
 0x488   : > { %6234 = vmatpush1.bf16.msra.mxu1 %v8610_v8  ;;  %6263 = vmatpush3.bf16.msra.mxu0 %v8643_v34 }
 0x489   : > { %6236 = vmatprep.subr.bf16.mxu1 %v8615_v11  ;;  %6264 = vmatprep.subr.bf16.mxu0 %v7855_v33 }
 0x48c   : > { %6238 = vmatpush1.bf16.msra.mxu1 %v8630_v21  ;;  %6266 = vmatpush3.bf16.msra.mxu0 %v8660_v43 }
 0x48d   : > { %6240 = vmatprep.subr.bf16.mxu1 %v8638_v26  ;;  %6267 = vmatprep.subr.bf16.mxu0 %v7855_v33 }
 0x490   : > { %6242 = vmatpush1.bf16.msra.mxu1 %v8647_v35  ;;  %6269 = vmatpush3.bf16.msra.mxu0 %v8674_v54 }
 0x491   : > { %6244 = vmatprep.subr.bf16.mxu1 %v8650_v38  ;;  %6270 = vmatprep.subr.bf16.mxu0 %v7855_v33 }
 0x494   : > { %6246 = vmatpush1.bf16.msra.mxu1 %v8664_v44  ;;  %6272 = vmatpush3.bf16.msra.mxu0 %v8686_v0 }
 0x495   : > { %6248 = vmatprep.subr.bf16.mxu1 %v8667_v49  ;;  %6273 = vmatprep.subr.bf16.mxu0 %v7855_v33 }
 0x498   : > { %6250 = vmatpush1.bf16.msra.mxu1 %v8678_v55  ;;  %6275 = vmatpush3.bf16.msra.mxu0 %v8698_v4 }
 0x499   : > { %6252 = vmatprep.subr.bf16.mxu1 %v8681_v60  ;;  %6276 = vmatprep.subr.bf16.mxu0 %v7855_v33 }
 0x49c   : > { %6254 = vmatpush1.bf16.msra.mxu1 %v8690_v1  ;;  %6278 = vmatpush3.bf16.msra.mxu0 %v8706_v7 }
 0x49d   : > { %6280 = vmatprep.subr.bf16.mxu1 %v8571_v31  ;;  %6311 = vmatprep.subr.bf16.mxu0 %v7855_v33 }
 0x552   : > { %v1641_v14 = vpop.f32.mrb[2].mxu1  ;;  %v1712_v17 = vpop.f32.mrb[18].mxu0 }
 0x553   : > { %v6561_v47 = vadd.f32 %v1641_v14, %v8773_v41  ;;  %v1643_v50 = vpop.f32.mrb[3].mxu1  ;;  %v5878_v51 = vpop.f32.mrb[19].mxu0  ;;  %v1730_v5 = vadd.f32 %v8780_v3, %v1712_v17 }
 0x554   : > { %v6562_v53 = vadd.f32 %v1643_v50, %v8776_v46 }
 0x555   : > { %v5305_v52 = vmul.f32 -1.442695, %v6561_v47 }
 0x556   : > { %v5306_v57 = vmul.f32 -1.442695, %v6562_v53 }
 0x557   : > { %7078 = vpow2.f32 %v5305_v52 }
 0x558   : > { %7080 = vpow2.f32 %v5306_v57 }
 0x561   : > { %v7079_v58 = vpop.eup %7078 }
 0x562   : > { %v1720_v61 = vadd.f32 1.0, %v7079_v58  ;;  %v7081_v63 = vpop.eup %7080 }
 0x563   : > { %v1727_v2 = vadd.f32 1.0, %v7081_v63 }
 0x564   : > { %7082 = vrcp.f32 %v1720_v61 }
 0x565   : > { %7084 = vrcp.f32 %v1727_v2 }
 0x56e   : > { %v7083_v6 = vpop.eup %7082 }
 0x56f   : > { %v1731_v9 = vmul.f32 %v7083_v6, %v1730_v5  ;;  %v7085_v15 = vpop.eup %7084 }
 0x570   : > { %v1734_v18 = vsub.f32 1.0, %v7085_v15  ;;  %v1736_v27 = vmul.f32 %v7085_v15, %v1574_v42 }
 0x571   : > { %v1732_v13 = vadd.f32 %v1731_v9, %v8752_v16 }
 0x573   : > { %7086 = vtanh.f32 %v1732_v13 }
 0x57d   : > { %v7087_v22 = vpop.eup %7086 }
 0x57e   : > { %v1735_v24 = vmul.f32 %v7087_v22, %v1734_v18 }
 0x580   : > { %v1737_v29 = vadd.f32 %v1736_v27, %v1735_v24 }
 0x582   : > { %1803 = vmatmul.mubr.f32.vlgmr.msra.gmra.mrb[4].mxu1 %v1737_v29  ;;  %5912 = vmatmul.mubr.f32.vlgmr.msra.gmra.mrb[20].mxu0 %v1737_v29 }
 0x583   : > { %6282 = vmatpush1.bf16.msra.mxu1 %v8580_v45  ;;  %6313 = vmatpush3.bf16.msra.mxu0 %v8587_v56 }
 0x584   : > { %6284 = vmatprep.subr.bf16.mxu1 %v8582_v48  ;;  %6314 = vmatprep.subr.bf16.mxu0 %v7855_v33 }
 0x585   : > { %1965 = vmatprep.mubr.f32.mxu1 %v7854_v32  ;;  %5946 = vmatprep.mubr.msk.f32.mxu0 %vm7856_vm5, %v7854_v32 }
 0x587   : > { %6286 = vmatpush1.bf16.msra.mxu1 %v8595_v59  ;;  %6316 = vmatpush3.bf16.msra.mxu0 %v8621_v19 }
 0x588   : > { %6288 = vmatprep.subr.bf16.mxu1 %v8599_v62  ;;  %6317 = vmatprep.subr.bf16.mxu0 %v7855_v33 }
 0x58b   : > { %6290 = vmatpush1.bf16.msra.mxu1 %v8610_v8  ;;  %6319 = vmatpush3.bf16.msra.mxu0 %v8643_v34 }
 0x58c   : > { %6292 = vmatprep.subr.bf16.mxu1 %v8615_v11  ;;  %6320 = vmatprep.subr.bf16.mxu0 %v7855_v33 }
 0x58f   : > { %6294 = vmatpush1.bf16.msra.mxu1 %v8630_v21  ;;  %6322 = vmatpush3.bf16.msra.mxu0 %v8660_v43 }
 0x590   : > { %6296 = vmatprep.subr.bf16.mxu1 %v8638_v26  ;;  %6323 = vmatprep.subr.bf16.mxu0 %v7855_v33 }
 0x593   : > { %6298 = vmatpush1.bf16.msra.mxu1 %v8647_v35  ;;  %6325 = vmatpush3.bf16.msra.mxu0 %v8674_v54 }
 0x594   : > { %6300 = vmatprep.subr.bf16.mxu1 %v8650_v38  ;;  %6326 = vmatprep.subr.bf16.mxu0 %v7855_v33 }
 0x597   : > { %6302 = vmatpush1.bf16.msra.mxu1 %v8664_v44  ;;  %6328 = vmatpush3.bf16.msra.mxu0 %v8686_v0 }
 0x598   : > { %6304 = vmatprep.subr.bf16.mxu1 %v8667_v49  ;;  %6329 = vmatprep.subr.bf16.mxu0 %v7855_v33 }
 0x59b   : > { %6306 = vmatpush1.bf16.msra.mxu1 %v8678_v55  ;;  %6331 = vmatpush3.bf16.msra.mxu0 %v8698_v4 }
 0x59c   : > { %6308 = vmatprep.subr.bf16.mxu1 %v8681_v60  ;;  %6332 = vmatprep.subr.bf16.mxu0 %v7855_v33 }
 0x59f   : > { %6310 = vmatpush1.bf16.msra.mxu1 %v8690_v1  ;;  %6334 = vmatpush3.bf16.msra.mxu0 %v8706_v7 }
 0x5a0   : > { %6336 = vmatprep.subr.bf16.mxu1 %v8571_v31  ;;  %6367 = vmatprep.subr.bf16.mxu0 %v7855_v33 }
 0x655   : > { %v1804_v16 = vpop.f32.mrb[4].mxu1  ;;  %v1875_v36 = vpop.f32.mrb[20].mxu0 }
 0x656   : > { %v6563_v42 = vadd.f32 %v1804_v16, %v8773_v41  ;;  %v1806_v14 = vpop.f32.mrb[5].mxu1  ;;  %v5913_v17 = vpop.f32.mrb[21].mxu0  ;;  %v1893_v61 = vadd.f32 %v8780_v3, %v1875_v36 }
 0x657   : > { %v6564_v50 = vadd.f32 %v1806_v14, %v8776_v46 }
 0x658   : > { %v5307_v47 = vmul.f32 -1.442695, %v6563_v42 }
 0x659   : > { %v5308_v51 = vmul.f32 -1.442695, %v6564_v50 }
 0x65a   : > { %7088 = vpow2.f32 %v5307_v47 }
 0x65b   : > { %7090 = vpow2.f32 %v5308_v51 }
 0x664   : > { %v7089_v52 = vpop.eup %7088 }
 0x665   : > { %v1883_v53 = vadd.f32 1.0, %v7089_v52  ;;  %v7091_v57 = vpop.eup %7090 }
 0x666   : > { %v1890_v58 = vadd.f32 1.0, %v7091_v57 }
 0x667   : > { %7092 = vrcp.f32 %v1883_v53 }
 0x668   : > { %7094 = vrcp.f32 %v1890_v58 }
 0x671   : > { %v7093_v63 = vpop.eup %7092 }
 0x672   : > { %v1894_v2 = vmul.f32 %v7093_v63, %v1893_v61  ;;  %v7095_v6 = vpop.eup %7094 }
 0x673   : > { %v1897_v9 = vsub.f32 1.0, %v7095_v6  ;;  %v1899_v18 = vmul.f32 %v7095_v6, %v1737_v29 }
 0x674   : > { %v1895_v5 = vadd.f32 %v1894_v2, %v8756_v23 }
 0x676   : > { %7096 = vtanh.f32 %v1895_v5 }
 0x680   : > { %v7097_v13 = vpop.eup %7096 }
 0x681   : > { %v1898_v15 = vmul.f32 %v7097_v13, %v1897_v9 }
 0x683   : > { %v1900_v22 = vadd.f32 %v1899_v18, %v1898_v15 }
 0x685   : > { %1966 = vmatmul.mubr.f32.vlgmr.msra.gmra.mrb[6].mxu1 %v1900_v22  ;;  %5947 = vmatmul.mubr.f32.vlgmr.msra.gmra.mrb[22].mxu0 %v1900_v22 }
 0x686   : > { %6338 = vmatpush1.bf16.msra.mxu1 %v8580_v45  ;;  %6369 = vmatpush3.bf16.msra.mxu0 %v8587_v56 }
 0x687   : > { %6340 = vmatprep.subr.bf16.mxu1 %v8582_v48  ;;  %6370 = vmatprep.subr.bf16.mxu0 %v7855_v33 }
 0x688   : > { %2128 = vmatprep.mubr.f32.mxu1 %v7854_v32  ;;  %5981 = vmatprep.mubr.msk.f32.mxu0 %vm7856_vm5, %v7854_v32 }
 0x68a   : > { %6342 = vmatpush1.bf16.msra.mxu1 %v8595_v59  ;;  %6372 = vmatpush3.bf16.msra.mxu0 %v8621_v19 }
 0x68b   : > { %6344 = vmatprep.subr.bf16.mxu1 %v8599_v62  ;;  %6373 = vmatprep.subr.bf16.mxu0 %v7855_v33 }
 0x68e   : > { %6346 = vmatpush1.bf16.msra.mxu1 %v8610_v8  ;;  %6375 = vmatpush3.bf16.msra.mxu0 %v8643_v34 }
 0x68f   : > { %6348 = vmatprep.subr.bf16.mxu1 %v8615_v11  ;;  %6376 = vmatprep.subr.bf16.mxu0 %v7855_v33 }
 0x692   : > { %6350 = vmatpush1.bf16.msra.mxu1 %v8630_v21  ;;  %6378 = vmatpush3.bf16.msra.mxu0 %v8660_v43 }
 0x693   : > { %6352 = vmatprep.subr.bf16.mxu1 %v8638_v26  ;;  %6379 = vmatprep.subr.bf16.mxu0 %v7855_v33 }
 0x696   : > { %6354 = vmatpush1.bf16.msra.mxu1 %v8647_v35  ;;  %6381 = vmatpush3.bf16.msra.mxu0 %v8674_v54 }
 0x697   : > { %6356 = vmatprep.subr.bf16.mxu1 %v8650_v38  ;;  %6382 = vmatprep.subr.bf16.mxu0 %v7855_v33 }
 0x69a   : > { %6358 = vmatpush1.bf16.msra.mxu1 %v8664_v44  ;;  %6384 = vmatpush3.bf16.msra.mxu0 %v8686_v0 }
 0x69b   : > { %6360 = vmatprep.subr.bf16.mxu1 %v8667_v49  ;;  %6385 = vmatprep.subr.bf16.mxu0 %v7855_v33 }
 0x69e   : > { %6362 = vmatpush1.bf16.msra.mxu1 %v8678_v55  ;;  %6387 = vmatpush3.bf16.msra.mxu0 %v8698_v4 }
 0x69f   : > { %6364 = vmatprep.subr.bf16.mxu1 %v8681_v60  ;;  %6388 = vmatprep.subr.bf16.mxu0 %v7855_v33 }
 0x6a2   : > { %6366 = vmatpush1.bf16.msra.mxu1 %v8690_v1  ;;  %6390 = vmatpush3.bf16.msra.mxu0 %v8706_v7 }
 0x6a3   : > { %6392 = vmatprep.subr.bf16.mxu1 %v8571_v31  ;;  %6423 = vmatprep.subr.bf16.mxu0 %v7855_v33 }
 0x758   : > { %v1967_v23 = vpop.f32.mrb[6].mxu1  ;;  %v2038_v24 = vpop.f32.mrb[22].mxu0 }
 0x759   : > { %v6565_v27 = vadd.f32 %v1967_v23, %v8773_v41  ;;  %v1969_v29 = vpop.f32.mrb[7].mxu1  ;;  %v5948_v16 = vpop.f32.mrb[23].mxu0  ;;  %v2056_v52 = vadd.f32 %v8780_v3, %v2038_v24 }
 0x75a   : > { %v6566_v42 = vadd.f32 %v1969_v29, %v8776_v46 }
 0x75b   : > { %v5309_v36 = vmul.f32 -1.442695, %v6565_v27 }
 0x75c   : > { %v5310_v14 = vmul.f32 -1.442695, %v6566_v42 }
 0x75d   : > { %7098 = vpow2.f32 %v5309_v36 }
 0x75e   : > { %7100 = vpow2.f32 %v5310_v14 }
 0x767   : > { %v7099_v17 = vpop.eup %7098 }
 0x768   : > { %v2046_v47 = vadd.f32 1.0, %v7099_v17  ;;  %v7101_v50 = vpop.eup %7100 }
 0x769   : > { %v2053_v51 = vadd.f32 1.0, %v7101_v50 }
 0x76a   : > { %7102 = vrcp.f32 %v2046_v47 }
 0x76b   : > { %7104 = vrcp.f32 %v2053_v51 }
 0x774   : > { %v7103_v53 = vpop.eup %7102 }
 0x775   : > { %v2057_v57 = vmul.f32 %v7103_v53, %v2056_v52  ;;  %v7105_v61 = vpop.eup %7104 }
 0x776   : > { %v2060_v63 = vsub.f32 1.0, %v7105_v61  ;;  %v2062_v6 = vmul.f32 %v7105_v61, %v1900_v22 }
 0x777   : > { %v2058_v58 = vadd.f32 %v2057_v57, %v8754_v20 }
 0x779   : > { %7106 = vtanh.f32 %v2058_v58 }
 0x783   : > { %v7107_v2 = vpop.eup %7106 }
 0x784   : > { %v2061_v5 = vmul.f32 %v7107_v2, %v2060_v63 }
 0x786   : > { %v2063_v9 = vadd.f32 %v2062_v6, %v2061_v5 }
 0x788   : > { %2129 = vmatmul.mubr.f32.vlgmr.msra.gmra.mrb[8].mxu1 %v2063_v9  ;;  %5982 = vmatmul.mubr.f32.vlgmr.msra.gmra.mrb[24].mxu0 %v2063_v9 }
 0x789   : > { %6394 = vmatpush1.bf16.msra.mxu1 %v8580_v45  ;;  %6425 = vmatpush3.bf16.msra.mxu0 %v8587_v56 }
 0x78a   : > { %6396 = vmatprep.subr.bf16.mxu1 %v8582_v48  ;;  %6426 = vmatprep.subr.bf16.mxu0 %v7855_v33 }
 0x78b   : > { %2291 = vmatprep.mubr.f32.mxu1 %v7854_v32  ;;  %6016 = vmatprep.mubr.msk.f32.mxu0 %vm7856_vm5, %v7854_v32 }
 0x78d   : > { %6398 = vmatpush1.bf16.msra.mxu1 %v8595_v59  ;;  %6428 = vmatpush3.bf16.msra.mxu0 %v8621_v19 }
 0x78e   : > { %6400 = vmatprep.subr.bf16.mxu1 %v8599_v62  ;;  %6429 = vmatprep.subr.bf16.mxu0 %v7855_v33 }
 0x791   : > { %6402 = vmatpush1.bf16.msra.mxu1 %v8610_v8  ;;  %6431 = vmatpush3.bf16.msra.mxu0 %v8643_v34 }
 0x792   : > { %6404 = vmatprep.subr.bf16.mxu1 %v8615_v11  ;;  %6432 = vmatprep.subr.bf16.mxu0 %v7855_v33 }
 0x795   : > { %6406 = vmatpush1.bf16.msra.mxu1 %v8630_v21  ;;  %6434 = vmatpush3.bf16.msra.mxu0 %v8660_v43 }
 0x796   : > { %6408 = vmatprep.subr.bf16.mxu1 %v8638_v26  ;;  %6435 = vmatprep.subr.bf16.mxu0 %v7855_v33 }
 0x799   : > { %6410 = vmatpush1.bf16.msra.mxu1 %v8647_v35  ;;  %6437 = vmatpush3.bf16.msra.mxu0 %v8674_v54 }
 0x79a   : > { %6412 = vmatprep.subr.bf16.mxu1 %v8650_v38  ;;  %6438 = vmatprep.subr.bf16.mxu0 %v7855_v33 }
 0x79d   : > { %6414 = vmatpush1.bf16.msra.mxu1 %v8664_v44  ;;  %6440 = vmatpush3.bf16.msra.mxu0 %v8686_v0 }
 0x79e   : > { %6416 = vmatprep.subr.bf16.mxu1 %v8667_v49  ;;  %6441 = vmatprep.subr.bf16.mxu0 %v7855_v33 }
 0x7a1   : > { %6418 = vmatpush1.bf16.msra.mxu1 %v8678_v55  ;;  %6443 = vmatpush3.bf16.msra.mxu0 %v8698_v4 }
 0x7a2   : > { %6420 = vmatprep.subr.bf16.mxu1 %v8681_v60  ;;  %6444 = vmatprep.subr.bf16.mxu0 %v7855_v33 }
 0x7a5   : > { %6422 = vmatpush1.bf16.msra.mxu1 %v8690_v1  ;;  %6446 = vmatpush3.bf16.msra.mxu0 %v8706_v7 }
 0x7a6   : > { %6448 = vmatprep.subr.bf16.mxu1 %v8571_v31  ;;  %6479 = vmatprep.subr.bf16.mxu0 %v7855_v33 }
 0x85b   : > { %v2130_v20 = vpop.f32.mrb[8].mxu1  ;;  %v2201_v13 = vpop.f32.mrb[24].mxu0 }
 0x85c   : > { %v6567_v15 = vadd.f32 %v2130_v20, %v8773_v41  ;;  %v2132_v18 = vpop.f32.mrb[9].mxu1  ;;  %v5983_v22 = vpop.f32.mrb[25].mxu0  ;;  %v2219_v14 = vadd.f32 %v8780_v3, %v2201_v13 }
 0x85d   : > { %v6568_v24 = vadd.f32 %v2132_v18, %v8776_v46 }
 0x85e   : > { %v5311_v23 = vmul.f32 -1.442695, %v6567_v15 }
 0x85f   : > { %v5312_v27 = vmul.f32 -1.442695, %v6568_v24 }
 0x860   : > { %7108 = vpow2.f32 %v5311_v23 }
 0x861   : > { %7110 = vpow2.f32 %v5312_v27 }
 0x86a   : > { %v7109_v29 = vpop.eup %7108 }
 0x86b   : > { %v2209_v16 = vadd.f32 1.0, %v7109_v29  ;;  %v7111_v36 = vpop.eup %7110 }
 0x86c   : > { %v2216_v42 = vadd.f32 1.0, %v7111_v36 }
 0x86d   : > { %7112 = vrcp.f32 %v2209_v16 }
 0x86e   : > { %7114 = vrcp.f32 %v2216_v42 }
 0x877   : > { %v7113_v17 = vpop.eup %7112 }
 0x878   : > { %v2220_v47 = vmul.f32 %v7113_v17, %v2219_v14  ;;  %v7115_v51 = vpop.eup %7114 }
 0x879   : > { %v2223_v52 = vsub.f32 1.0, %v7115_v51  ;;  %v2225_v58 = vmul.f32 %v7115_v51, %v2063_v9 }
 0x87a   : > { %v2221_v50 = vadd.f32 %v2220_v47, %v8760_v28 }
 0x87c   : > { %7116 = vtanh.f32 %v2221_v50 }
 0x886   : > { %v7117_v53 = vpop.eup %7116 }
 0x887   : > { %v2224_v57 = vmul.f32 %v7117_v53, %v2223_v52  ;;  %v2743_v52 = vld [vmem:[#allocation17 + $0x40] sm:$0xff] }
 0x888   : > { %v2747_v53 = vld [vmem:[#allocation17 + $0x60] sm:$0xff] }
 0x889   : > { %v2226_v61 = vadd.f32 %v2225_v58, %v2224_v57  ;;  %v2744_v57 = vld [vmem:[#allocation17 + $0x48] sm:$0xff]  ;;  %v5328_v58 = vcombine.high %v2743_v52, %v2747_v53 }
 0x88b   : > { %2292 = vmatmul.mubr.f32.vlgmr.msra.gmra.mrb[10].mxu1 %v2226_v61  ;;  %6017 = vmatmul.mubr.f32.vlgmr.msra.gmra.mrb[26].mxu0 %v2226_v61 }
 0x88c   : > { %6450 = vmatpush1.bf16.msra.mxu1 %v8580_v45  ;;  %6481 = vmatpush3.bf16.msra.mxu0 %v8587_v56 }
 0x88d   : > { %6452 = vmatprep.subr.bf16.mxu1 %v8582_v48  ;;  %6482 = vmatprep.subr.bf16.mxu0 %v7855_v33 }
 0x88e   : > { %2454 = vmatprep.mubr.f32.mxu1 %v7854_v32  ;;  %6051 = vmatprep.mubr.msk.f32.mxu0 %vm7856_vm5, %v7854_v32 }
 0x890   : > { %6454 = vmatpush1.bf16.msra.mxu1 %v8595_v59  ;;  %6484 = vmatpush3.bf16.msra.mxu0 %v8621_v19 }
 0x891   : > { %6456 = vmatprep.subr.bf16.mxu1 %v8599_v62  ;;  %6485 = vmatprep.subr.bf16.mxu0 %v7855_v33 }
 0x894   : > { %6458 = vmatpush1.bf16.msra.mxu1 %v8610_v8  ;;  %6487 = vmatpush3.bf16.msra.mxu0 %v8643_v34 }
 0x895   : > { %6460 = vmatprep.subr.bf16.mxu1 %v8615_v11  ;;  %6488 = vmatprep.subr.bf16.mxu0 %v7855_v33 }
 0x898   : > { %6462 = vmatpush1.bf16.msra.mxu1 %v8630_v21  ;;  %6490 = vmatpush3.bf16.msra.mxu0 %v8660_v43 }
 0x899   : > { %6464 = vmatprep.subr.bf16.mxu1 %v8638_v26  ;;  %6491 = vmatprep.subr.bf16.mxu0 %v7855_v33 }
 0x89c   : > { %6466 = vmatpush1.bf16.msra.mxu1 %v8647_v35  ;;  %6493 = vmatpush3.bf16.msra.mxu0 %v8674_v54 }
 0x89d   : > { %6468 = vmatprep.subr.bf16.mxu1 %v8650_v38  ;;  %6494 = vmatprep.subr.bf16.mxu0 %v7855_v33 }
 0x8a0   : > { %6470 = vmatpush1.bf16.msra.mxu1 %v8664_v44  ;;  %6496 = vmatpush3.bf16.msra.mxu0 %v8686_v0 }
 0x8a1   : > { %6472 = vmatprep.subr.bf16.mxu1 %v8667_v49  ;;  %6497 = vmatprep.subr.bf16.mxu0 %v7855_v33 }
 0x8a4   : > { %6474 = vmatpush1.bf16.msra.mxu1 %v8678_v55  ;;  %6499 = vmatpush3.bf16.msra.mxu0 %v8698_v4 }
 0x8a5   : > { %6476 = vmatprep.subr.bf16.mxu1 %v8681_v60  ;;  %6500 = vmatprep.subr.bf16.mxu0 %v7855_v33 }
 0x8a8   : > { %6478 = vmatpush1.bf16.msra.mxu1 %v8690_v1  ;;  %6502 = vmatpush3.bf16.msra.mxu0 %v8706_v7 }
 0x8a9   : > { %6504 = vmatprep.subr.bf16.mxu1 %v8571_v31  ;;  %6535 = vmatprep.subr.bf16.mxu0 %v7855_v33 }
 0x95e   : > { %v2293_v28 = vpop.f32.mrb[10].mxu1  ;;  %v2364_v63 = vpop.f32.mrb[26].mxu0 }
 0x95f   : > { %v6569_v2 = vadd.f32 %v2293_v28, %v8773_v41  ;;  %v2295_v5 = vpop.f32.mrb[11].mxu1  ;;  %v6018_v6 = vpop.f32.mrb[27].mxu0  ;;  %v2382_v31 = vadd.f32 %v8780_v3, %v2364_v63  ;;  %v5327_v28 = vcombine.low %v2743_v52, %v2747_v53  ;;  %v2742_v52 = vld [vmem:[#allocation17 + $0x38] sm:$0xff] }
 0x960   : > { %v6570_v20 = vadd.f32 %v2295_v5, %v8776_v46  ;;  %v2751_v5 = vld [vmem:[#allocation17 + $0x80] sm:$0xff] }
 0x961   : > { %v5313_v9 = vmul.f32 -1.442695, %v6569_v2  ;;  %v2755_v6 = vld [vmem:[#allocation17 + $0xa0] sm:$0xff] }
 0x962   : > { %v5314_v13 = vmul.f32 -1.442695, %v6570_v20  ;;  %v5336_v20 = vcombine.high %v2751_v5, %v2755_v6 }
 0x963   : > { %7118 = vpow2.f32 %v5313_v9  ;;  %v2752_v9 = vld [vmem:[#allocation17 + $0x88] sm:$0xff] }
 0x964   : > { %7120 = vpow2.f32 %v5314_v13  ;;  %v2756_v13 = vld [vmem:[#allocation17 + $0xa8] sm:$0xff] }
 0x96d   : > { %v7119_v15 = vpop.eup %7118 }
 0x96e   : > { %v2372_v18 = vadd.f32 1.0, %v7119_v15  ;;  %v7121_v22 = vpop.eup %7120  ;;  %v5335_v15 = vcombine.low %v2751_v5, %v2755_v6 }
 0x96f   : > { %v2379_v23 = vadd.f32 1.0, %v7121_v22  ;;  %v5338_v22 = vcombine.high %v2752_v9, %v2756_v13 }
 0x970   : > { %7122 = vrcp.f32 %v2372_v18  ;;  %v5337_v18 = vcombine.low %v2752_v9, %v2756_v13 }
 0x971   : > { %7124 = vrcp.f32 %v2379_v23  ;;  %v2759_v23 = vld [vmem:[#allocation17 + $0xc0] sm:$0xff] }
 0x97a   : > { %v7123_v24 = vpop.eup %7122 }
 0x97b   : > { %v2383_v27 = vmul.f32 %v7123_v24, %v2382_v31  ;;  %v7125_v16 = vpop.eup %7124  ;;  %v2763_v31 = vld [vmem:[#allocation17 + $0xe0] sm:$0xff]  ;;  %v2760_v24 = vld [vmem:[#allocation17 + $0xc8] sm:$0xff] }
 0x97c   : > { %v2386_v36 = vsub.f32 1.0, %v7125_v16  ;;  %v2388_v17 = vmul.f32 %v7125_v16, %v2226_v61  ;;  %v2748_v61 = vld [vmem:[#allocation17 + $0x68] sm:$0xff]  ;;  %v5343_v16 = vcombine.low %v2759_v23, %v2763_v31 }
 0x97d   : > { %v2384_v29 = vadd.f32 %v2383_v27, %v8758_v25  ;;  %v5329_v63 = vcombine.low %v2744_v57, %v2748_v61  ;;  %v5330_v2 = vcombine.high %v2744_v57, %v2748_v61  ;;  %v5344_v27 = vcombine.high %v2759_v23, %v2763_v31 }
 0x97f   : > { %7126 = vtanh.f32 %v2384_v29  ;;  %v2764_v29 = vld [vmem:[#allocation17 + $0xe8] sm:$0xff] }
 0x989   : > { %v7127_v42 = vpop.eup %7126 }
 0x98a   : > { %v2387_v14 = vmul.f32 %v7127_v42, %v2386_v36  ;;  %v5345_v36 = vcombine.low %v2760_v24, %v2764_v29  ;;  %v5346_v42 = vcombine.high %v2760_v24, %v2764_v29 }
 0x98c   : > { %v2389_v47 = vadd.f32 %v2388_v17, %v2387_v14  ;;  %v2767_v14 = vld [vmem:[#allocation17 + $0x100] sm:$0xff] }
 0x98d   : > { %v2771_v17 = vld [vmem:[#allocation17 + $0x120] sm:$0xff] }
 0x98e   : > { %2455 = vmatmul.mubr.f32.vlgmr.msra.gmra.mrb[12].mxu1 %v2389_v47  ;;  %6052 = vmatmul.mubr.f32.vlgmr.msra.gmra.mrb[28].mxu0 %v2389_v47 }
 0x98f   : > { %6506 = vmatpush1.bf16.msra.mxu1 %v8580_v45  ;;  %6537 = vmatpush3.bf16.msra.mxu0 %v8587_v56 }
 0x990   : > { %6508 = vmatprep.subr.bf16.mxu1 %v8582_v48  ;;  %6538 = vmatprep.subr.bf16.mxu0 %v7855_v33 }
 0x991   : > { %2617 = vmatprep.mubr.f32.mxu1 %v7854_v32  ;;  %6086 = vmatprep.mubr.msk.f32.mxu0 %vm7856_vm5, %v7854_v32 }
 0x993   : > { %6510 = vmatpush1.bf16.msra.mxu1 %v8595_v59  ;;  %6540 = vmatpush3.bf16.msra.mxu0 %v8621_v19 }
 0x994   : > { %6512 = vmatprep.subr.bf16.mxu1 %v8599_v62  ;;  %6541 = vmatprep.subr.bf16.mxu0 %v7855_v33 }
 0x997   : > { %6514 = vmatpush1.bf16.msra.mxu1 %v8610_v8  ;;  %6543 = vmatpush3.bf16.msra.mxu0 %v8643_v34 }
 0x998   : > { %6516 = vmatprep.subr.bf16.mxu1 %v8615_v11  ;;  %6544 = vmatprep.subr.bf16.mxu0 %v7855_v33 }
 0x99b   : > { %6518 = vmatpush1.bf16.msra.mxu1 %v8630_v21  ;;  %6546 = vmatpush3.bf16.msra.mxu0 %v8660_v43 }
 0x99c   : > { %6520 = vmatprep.subr.bf16.mxu1 %v8638_v26  ;;  %6547 = vmatprep.subr.bf16.mxu0 %v7855_v33 }
 0x99f   : > { %6522 = vmatpush1.bf16.msra.mxu1 %v8647_v35  ;;  %6549 = vmatpush3.bf16.msra.mxu0 %v8674_v54 }
 0x9a0   : > { %6524 = vmatprep.subr.bf16.mxu1 %v8650_v38  ;;  %6550 = vmatprep.subr.bf16.mxu0 %v7855_v33 }
 0x9a3   : > { %6526 = vmatpush1.bf16.msra.mxu1 %v8664_v44  ;;  %6552 = vmatpush3.bf16.msra.mxu0 %v8686_v0 }
 0x9a4   : > { %6528 = vmatprep.subr.bf16.mxu1 %v8667_v49  ;;  %6553 = vmatprep.subr.bf16.mxu0 %v7855_v33 }
 0x9a7   : > { %6530 = vmatpush1.bf16.msra.mxu1 %v8678_v55  ;;  %6555 = vmatpush3.bf16.msra.mxu0 %v8698_v4  ;;  %v2739_v4 = vld [vmem:[#allocation17 + $0x20] sm:$0xff] }
 0x9a8   : > { %6532 = vmatprep.subr.bf16.mxu1 %v8681_v60  ;;  %6556 = vmatprep.subr.bf16.mxu0 %v7855_v33 }
 0x9ab   : > { %6534 = vmatpush1.bf16.msra.mxu1 %v8690_v1  ;;  %6558 = vmatpush3.bf16.msra.mxu0 %v8706_v7  ;;  %v2735_v1 = vld [vmem:[#allocation17] sm:$0xff]  ;;  %v2736_v7 = vld [vmem:[#allocation17 + $0x8] sm:$0xff] }
 0x9ac   : > { %v5320_v25 = vcombine.high %v2735_v1, %v2739_v4  ;;  %v5319_v50 = vcombine.low %v2735_v1, %v2739_v4  ;;  %v2792_v1 = vld [vmem:[#allocation17 + $0x1c8] sm:$0xff] }
 0x9ad   : > { %v2796_v4 = vld [vmem:[#allocation17 + $0x1e8] sm:$0xff] }
 0x9ae   : > { %3119 = vmatprep.subr.bf16.mxu1 %v5320_v25  ;;  %v9020_v25 = vld [vmem:[#allocation17 + $0x10] sm:$0xff]  ;;  %v5378_v61 = vcombine.high %v2792_v1, %v2796_v4 }
 0xa61   : > { %v2456_v32 = vpop.f32.mrb[12].mxu1  ;;  %v2527_v45 = vpop.f32.mrb[28].mxu0 }
 0xa62   : > { %v6571_v48 = vadd.f32 %v2456_v32, %v8773_v41  ;;  %v2458_v56 = vpop.f32.mrb[13].mxu1  ;;  %v6053_v59 = vpop.f32.mrb[29].mxu0  ;;  %v2545_v34 = vadd.f32 %v8780_v3, %v2527_v45  ;;  %v2740_v3 = vld [vmem:[#allocation17 + $0x28] sm:$0xff]  ;;  %v5352_v32 = vcombine.high %v2767_v14, %v2771_v17 }
 0xa63   : > { %v6572_v8 = vadd.f32 %v2458_v56, %v8776_v46  ;;  %v5321_v51 = vcombine.low %v2736_v7, %v2740_v3  ;;  %v2772_v45 = vld [vmem:[#allocation17 + $0x128] sm:$0xff] }
 0xa64   : > { %v5315_v62 = vmul.f32 -1.442695, %v6571_v48  ;;  %v5351_v48 = vcombine.low %v2767_v14, %v2771_v17 }
 0xa65   : > { %v5316_v11 = vmul.f32 -1.442695, %v6572_v8  ;;  %v2779_v8 = vld [vmem:[#allocation17 + $0x160] sm:$0xff] }
 0xa66   : > { %7128 = vpow2.f32 %v5315_v62  ;;  %v2775_v62 = vld [vmem:[#allocation17 + $0x140] sm:$0xff] }
 0xa67   : > { %7130 = vpow2.f32 %v5316_v11  ;;  %v2776_v11 = vld [vmem:[#allocation17 + $0x148] sm:$0xff] }
 0xa70   : > { %v7129_v19 = vpop.eup %7128 }
 0xa71   : > { %v2535_v21 = vadd.f32 1.0, %v7129_v19  ;;  %v7131_v33 = vpop.eup %7130  ;;  %v5359_v19 = vcombine.low %v2775_v62, %v2779_v8 }
 0xa72   : > { %v2542_v26 = vadd.f32 1.0, %v7131_v33  ;;  %v2780_v33 = vld [vmem:[#allocation17 + $0x168] sm:$0xff] }
 0xa73   : > { %7132 = vrcp.f32 %v2535_v21  ;;  %v5360_v21 = vcombine.high %v2775_v62, %v2779_v8  ;;  %v2750_v62 = vld [vmem:[#allocation17 + $0x78] sm:$0xff] }
 0xa74   : > { %7134 = vrcp.f32 %v2542_v26  ;;  %v2783_v26 = vld [vmem:[#allocation17 + $0x180] sm:$0xff] }
 0xa7d   : > { %v7133_v35 = vpop.eup %7132 }
 0xa7e   : > { %v2546_v38 = vmul.f32 %v7133_v35, %v2545_v34  ;;  %v7135_v44 = vpop.eup %7134  ;;  %v2787_v34 = vld [vmem:[#allocation17 + $0x1a0] sm:$0xff]  ;;  %v5361_v35 = vcombine.low %v2776_v11, %v2780_v33 }
 0xa7f   : > { %v2549_v49 = vsub.f32 1.0, %v7135_v44  ;;  %v2551_v60 = vmul.f32 %v7135_v44, %v2389_v47  ;;  %v2768_v47 = vld [vmem:[#allocation17 + $0x108] sm:$0xff] }
 0xa80   : > { %v2547_v43 = vadd.f32 %v2546_v38, %v8764_v37  ;;  %v5322_v37 = vcombine.high %v2736_v7, %v2740_v3  ;;  %v5353_v56 = vcombine.low %v2768_v47, %v2772_v45  ;;  %v5354_v59 = vcombine.high %v2768_v47, %v2772_v45  ;;  %v2784_v44 = vld [vmem:[#allocation17 + $0x188] sm:$0xff]  ;;  %v9022_v3 = vld [vmem:[#allocation17 + $0x30] sm:$0xff] }
 0xa81   : > { %v5362_v38 = vcombine.high %v2776_v11, %v2780_v33  ;;  %v7857_v7 = vmov 0   ;;  %v2753_v33 = vld [vmem:[#allocation17 + $0x90] sm:$0xff] }
 0xa82   : > { %7136 = vtanh.f32 %v2547_v43  ;;  %3160 = vmatprep.subr.bf16.mxu0 %v5322_v37  ;;  %v5368_v43 = vcombine.high %v2783_v26, %v2787_v34  ;;  %v5323_v37 = vcombine.low %v9020_v25, %v9022_v3 }
 0xa8c   : > { %v7137_v54 = vpop.eup %7136 }
 0xa8d   : > { %v2550_v55 = vmul.f32 %v7137_v54, %v2549_v49  ;;  %v2788_v49 = vld [vmem:[#allocation17 + $0x1a8] sm:$0xff]  ;;  %v2791_v54 = vld [vmem:[#allocation17 + $0x1c0] sm:$0xff] }
 0xa8e   : > { %v5369_v53 = vcombine.low %v2784_v44, %v2788_v49 }
 0xa8f   : > { %v9015_v0 = vadd.f32 %v2551_v60, %v2550_v55  ;;  %v5370_v55 = vcombine.high %v2784_v44, %v2788_v49  ;;  %v2795_v60 = vld [vmem:[#allocation17 + $0x1e0] sm:$0xff]  ;;  %v2761_v44 = vld [vmem:[#allocation17 + $0xd0] sm:$0xff] }
 0xa90   : > { %v5376_v57 = vcombine.high %v2791_v54, %v2795_v60  ;;  %v2765_v49 = vld [vmem:[#allocation17 + $0xf0] sm:$0xff] }
 0xa91   : > { %2618 = vmatmul.mubr.f32.vlgmr.msra.gmra.mrb[14].mxu1 %v9015_v0  ;;  %6087 = vmatmul.mubr.f32.vlgmr.msra.gmra.mrb[30].mxu0 %v9015_v0 }
 0xa92   : > { %3120 = vmatpush1.bf16.msra.mxu1 %v5319_v50  ;;  %3161 = vmatpush1.bf16.msra.mxu0 %v5321_v51  ;;  %v9024_v50 = vld [vmem:[#allocation17 + $0x18] sm:$0xff]  ;;  %v5367_v51 = vcombine.low %v2783_v26, %v2787_v34  ;;  %v2757_v26 = vld [vmem:[#allocation17 + $0xb0] sm:$0xff] }
 0xa93   : > { %3121 = vmatprep.subr.bf16.mxu1 %v5328_v58  ;;  %3162 = vmatprep.subr.bf16.mxu0 %v5330_v2  ;;  %v5325_v58 = vcombine.low %v9024_v50, %v2742_v52  ;;  %v5324_v2 = vcombine.high %v9020_v25, %v9022_v3  ;;  %v5326_v5 = vcombine.high %v9024_v50, %v2742_v52  ;;  %v2754_v34 = vld [vmem:[#allocation17 + $0x98] sm:$0xff]  ;;  %v2769_v3 = vld [vmem:[#allocation17 + $0x110] sm:$0xff] }
 0xa94   : > { %3151 = vmatprep.mubr.bf16.mxu1 %v7857_v7  ;;  %3192 = vmatprep.mubr.bf16.mxu0 %v7857_v7  ;;  %v2773_v50 = vld [vmem:[#allocation17 + $0x130] sm:$0xff]  ;;  %v5347_v52 = vcombine.low %v2761_v44, %v2765_v49 }
 0xa96   : > { %3122 = vmatpush1.bf16.msra.mxu1 %v5327_v28  ;;  %3163 = vmatpush1.bf16.msra.mxu0 %v5329_v63  ;;  %v5375_v28 = vcombine.low %v2791_v54, %v2795_v60  ;;  %v5377_v63 = vcombine.low %v2792_v1, %v2796_v4  ;;  %v2762_v54 = vld [vmem:[#allocation17 + $0xd8] sm:$0xff]  ;;  %v5339_v60 = vcombine.low %v2753_v33, %v2757_v26 }
 0xa97   : > { %3123 = vmatprep.subr.bf16.mxu1 %v5336_v20  ;;  %3164 = vmatprep.subr.bf16.mxu0 %v5338_v22  ;;  %v5348_v4 = vcombine.high %v2761_v44, %v2765_v49 }
 0xa9a   : > { %3124 = vmatpush1.bf16.msra.mxu1 %v5335_v15  ;;  %3165 = vmatpush1.bf16.msra.mxu0 %v5337_v18 }
 0xa9b   : > { %3125 = vmatprep.subr.bf16.mxu1 %v5344_v27  ;;  %3166 = vmatprep.subr.bf16.mxu0 %v5346_v42 }
 0xa9e   : > { %3126 = vmatpush1.bf16.msra.mxu1 %v5343_v16  ;;  %3167 = vmatpush1.bf16.msra.mxu0 %v5345_v36  ;;  %v7148_v16 = vld [vmem:[#allocation14] ss:$0 sm:$0xff] }
 0xa9f   : > { %3127 = vmatprep.subr.bf16.mxu1 %v5352_v32  ;;  %3168 = vmatprep.subr.bf16.mxu0 %v5354_v59  ;;  %v2746_v59 = vld [vmem:[#allocation17 + $0x58] sm:$0xff] }
 0xaa2   : > { %3128 = vmatpush1.bf16.msra.mxu1 %v5351_v48  ;;  %3169 = vmatpush1.bf16.msra.mxu0 %v5353_v56  ;;  %v2745_v48 = vld [vmem:[#allocation17 + $0x50] sm:$0xff] }
 0xaa3   : > { %3129 = vmatprep.subr.bf16.mxu1 %v5360_v21  ;;  %3170 = vmatprep.subr.bf16.mxu0 %v5362_v38  ;;  %v2749_v56 = vld [vmem:[#allocation17 + $0x70] sm:$0xff]  ;;  %v5334_v21 = vcombine.high %v2746_v59, %v2750_v62  ;;  %v5340_v38 = vcombine.high %v2753_v33, %v2757_v26 }
 0xaa4   : > { %v2729_v33 = vld [vmem:[#allocation16 + $0x50] sm:$0xff] }
 0xaa5   : > { %v2733_v26 = vld [vmem:[#allocation16 + $0x70] sm:$0xff] }
 0xaa6   : > { %3130 = vmatpush1.bf16.msra.mxu1 %v5359_v19  ;;  %3171 = vmatpush1.bf16.msra.mxu0 %v5361_v35  ;;  %v5332_v19 = vcombine.high %v2745_v48, %v2749_v56  ;;  %v5333_v35 = vcombine.low %v2746_v59, %v2750_v62  ;;  %v5395_v49 = vcombine.low %v2729_v33, %v2733_v26 }
 0xaa7   : > { %3131 = vmatprep.subr.bf16.mxu1 %v5368_v43  ;;  %3172 = vmatprep.subr.bf16.mxu0 %v5370_v55  ;;  %v2766_v55 = vld [vmem:[#allocation17 + $0xf8] sm:$0xff] }
 0xaa8   : > { %v5350_v25 = vcombine.high %v2762_v54, %v2766_v55 }
 0xaaa   : > { %3132 = vmatpush1.bf16.msra.mxu1 %v5367_v51  ;;  %3173 = vmatpush1.bf16.msra.mxu0 %v5369_v53  ;;  %v2770_v51 = vld [vmem:[#allocation17 + $0x118] sm:$0xff]  ;;  %v5349_v53 = vcombine.low %v2762_v54, %v2766_v55 }
 0xaab   : > { %3133 = vmatprep.subr.bf16.mxu1 %v5376_v57  ;;  %3174 = vmatprep.subr.bf16.mxu0 %v5378_v61  ;;  %v5356_v57 = vcombine.high %v2769_v3, %v2773_v50  ;;  %v2777_v61 = vld [vmem:[#allocation17 + $0x150] sm:$0xff]  ;;  %v2716_v54 = vld [vmem:[%s790_s8] sm:$0xff] }
 0xaae   : > { %3134 = vmatpush1.bf16.msra.mxu1 %v5375_v28  ;;  %3175 = vmatpush1.bf16.msra.mxu0 %v5377_v63  ;;  %v2781_v28 = vld [vmem:[#allocation17 + $0x170] sm:$0xff]  ;;  %v2778_v63 = vld [vmem:[#allocation17 + $0x158] sm:$0xff] }
 0xaaf   : > { %3201 = vmatprep.subr.bf16.mxu1 %v5324_v2  ;;  %3242 = vmatprep.subr.bf16.mxu0 %v5326_v5  ;;  %v2782_v2 = vld [vmem:[#allocation17 + $0x178] sm:$0xff]  ;;  %v5355_v5 = vcombine.low %v2769_v3, %v2773_v50  ;;  %v6844_v50 = vld [vmem:[#allocation20] ss:$8 sps:$4 sm:$0xff]  }
 0xb64   : > { %v2619_v6 = vpop.f32.mrb[14].mxu1  ;;  %v2690_v9 = vpop.f32.mrb[30].mxu0 }
 0xb65   : > { %v6573_v20 = vadd.f32 %v2619_v6, %v8773_v41  ;;  %v2621_v13 = vpop.f32.mrb[15].mxu1  ;;  %v6088_v15 = vpop.f32.mrb[31].mxu0  ;;  %v2708_v36 = vadd.f32 %v7148_v16, %v2690_v9  ;;  %v5364_v9 = vcombine.high %v2777_v61, %v2781_v28  ;;  %v2797_v16 = vld [vmem:[#allocation17 + $0x1f0] sm:$0xff] }
 0xb66   : > { %v6574_v22 = vadd.f32 %v2621_v13, %v8776_v46  ;;  %v2785_v13 = vld [vmem:[#allocation17 + $0x190] sm:$0xff] }
 0xb67   : > { %v5317_v18 = vmul.f32 -1.442695, %v6573_v20  ;;  %v5366_v20 = vcombine.high %v2778_v63, %v2782_v2  ;;  %v2789_v15 = vld [vmem:[#allocation17 + $0x1b0] sm:$0xff] }
 0xb68   : > { %v5318_v23 = vmul.f32 -1.442695, %v6574_v22  ;;  %v2790_v22 = vld [vmem:[#allocation17 + $0x1b8] sm:$0xff] }
 0xb69   : > { %7138 = vpow2.f32 %v5317_v18  ;;  %v2786_v18 = vld [vmem:[#allocation17 + $0x198] sm:$0xff] }
 0xb6a   : > { %7140 = vpow2.f32 %v5318_v23  ;;  %v5363_v23 = vcombine.low %v2777_v61, %v2781_v28  ;;  %v2730_v61 = vld [vmem:[#allocation16 + $0x58] sm:$0xff] }
 0xb6b   : > { %v2734_v28 = vld [vmem:[#allocation16 + $0x78] sm:$0xff] }
 0xb73   : > { %v7139_v31 = vpop.eup %7138 }
 0xb74   : > { %v2698_v24 = vadd.f32 1.0, %v7139_v31  ;;  %v7141_v27 = vpop.eup %7140  ;;  %v5365_v31 = vcombine.low %v2778_v63, %v2782_v2  ;;  %v6852_v63 = vld [vmem:[#allocation20 + $0x24] ss:$8 sps:$4 sm:$0xff]  }
 0xb75   : > { %v2705_v29 = vadd.f32 1.0, %v7141_v27  ;;  %v5374_v27 = vcombine.high %v2786_v18, %v2790_v22 }
 0xb76   : > { %7142 = vrcp.f32 %v2698_v24  ;;  %v5372_v24 = vcombine.high %v2785_v13, %v2789_v15 }
 0xb77   : > { %7144 = vrcp.f32 %v2705_v29  ;;  %v2793_v29 = vld [vmem:[#allocation17 + $0x1d0] sm:$0xff] }
 0xb80   : > { %v7143_v42 = vpop.eup %7142 }
 0xb81   : > { %v2709_v14 = vmul.f32 %v7143_v42, %v2708_v36  ;;  %v7145_v17 = vpop.eup %7144  ;;  %v2794_v36 = vld [vmem:[#allocation17 + $0x1d8] sm:$0xff] }
 0xb82   : > { %v2712_v47 = vsub.f32 1.0, %v7145_v17  ;;  %v2714_v45 = vmul.f32 %v7145_v17, %v9015_v0  ;;  %v5331_v0 = vcombine.low %v2745_v48, %v2749_v56  ;;  %v2798_v42 = vld [vmem:[#allocation17 + $0x1f8] sm:$0xff]  ;;  %v5380_v17 = vcombine.high %v2793_v29, %v2797_v16  ;;  %v2725_v48 = vld [vmem:[#allocation16 + $0x30] sm:$0xff] }
 0xb83   : > { %v2710_v41 = vadd.f32 %v2709_v14, %v8762_v30  ;;  %v2758_v30 = vld [vmem:[#allocation17 + $0xb8] sm:$0xff]  ;;  %v5371_v14 = vcombine.low %v2785_v13, %v2789_v15  ;;  %v5379_v56 = vcombine.low %v2793_v29, %v2797_v16  ;;  %v5381_v59 = vcombine.low %v2794_v36, %v2798_v42  ;;  %v6858_v15 = vld [vmem:[#allocation20 + $0x44] ss:$8 sps:$4 sm:$0xff]   ;;  %v6868_v16 = vld [vmem:[#allocation20 + $0x80] ss:$8 sps:$4 sm:$0xff]  }
 0xb84   : > { %v5342_v43 = vcombine.high %v2754_v34, %v2758_v30  ;;  %v5341_v1 = vcombine.low %v2754_v34, %v2758_v30  ;;  %v6853_v13 = vld [vmem:[#allocation20 + $0x30] ss:$8 sps:$4 sm:$0xff]   ;;  %v6870_v29 = vld [vmem:[#allocation20 + $0x84] ss:$8 sps:$4 sm:$0xff]  }
 0xb85   : > { %7146 = vtanh.f32 %v2710_v41  ;;  %v5373_v41 = vcombine.low %v2786_v18, %v2790_v22  ;;  %v6856_v18 = vld [vmem:[#allocation20 + $0x40] ss:$8 sps:$4 sm:$0xff]   ;;  %v6859_v22 = vld [vmem:[#allocation20 + $0x50] ss:$8 sps:$4 sm:$0xff]  }
 0xb8f   : > { %v7147_v32 = vpop.eup %7146 }
 0xb90   : > { %v2713_v46 = vmul.f32 %v7147_v32, %v2712_v47  ;;  %v5382_v47 = vcombine.high %v2794_v36, %v2798_v42  ;;  %v2719_v32 = vld [vmem:[#allocation16] sm:$0xff] }
 0xb91   : > { %v6873_v36 = vld [vmem:[#allocation20 + $0x94] ss:$8 sps:$4 sm:$0xff]   ;;  %v6871_v42 = vld [vmem:[#allocation20 + $0x90] ss:$8 sps:$4 sm:$0xff]  }
 0xb92   : > { %v2715_v8 = vadd.f32 %v2714_v45, %v2713_v46  ;;  %v2723_v46 = vld [vmem:[#allocation16 + $0x20] sm:$0xff]  ;;  %v2721_v45 = vld [vmem:[#allocation16 + $0x10] sm:$0xff] }
 0xb93   : > { %v5384_v62 = vcombine.high %v2719_v32, %v2723_v46  ;;  %v5383_v34 = vcombine.low %v2719_v32, %v2723_v46  ;;  %v5387_v30 = vcombine.low %v2721_v45, %v2725_v48  ;;  %v6882_v32 = vld [vmem:[#allocation20 + $0xc4] ss:$8 sps:$4 sm:$0xff]   ;;  %v6880_v46 = vld [vmem:[#allocation20 + $0xc0] ss:$8 sps:$4 sm:$0xff]  }
 0xb94   : > { %v9037_v11 = vpack.c.bf16 %v2715_v8, %v2715_v8  ;;  %v5388_v8 = vcombine.high %v2721_v45, %v2725_v48  ;;  %v6883_v45 = vld [vmem:[#allocation20 + $0xd0] ss:$8 sps:$4 sm:$0xff]   ;;  %v6885_v48 = vld [vmem:[#allocation20 + $0xd4] ss:$8 sps:$4 sm:$0xff]  }
 0xb96   : > { %3152 = vmatmul.mubr.bf16.vlgmr.msra.gmra.mrb[16].mxu1 %v9037_v11  ;;  %3193 = vmatmul.mubr.bf16.vlgmr.msra.gmra.mrb[32].mxu0 %v9037_v11 }
 0xb97   : > { %3202 = vmatpush1.bf16.msra.mxu1 %v5323_v37  ;;  %3243 = vmatpush1.bf16.msra.mxu0 %v5325_v58  ;;  %v2774_v37 = vld [vmem:[#allocation17 + $0x138] sm:$0xff] }
 0xb98   : > { %3203 = vmatprep.subr.bf16.mxu1 %v5332_v19  ;;  %3244 = vmatprep.subr.bf16.mxu0 %v5334_v21  ;;  %v5358_v58 = vcombine.high %v2770_v51, %v2774_v37  ;;  %v5357_v6 = vcombine.low %v2770_v51, %v2774_v37  ;;  %v2727_v19 = vld [vmem:[#allocation16 + $0x40] sm:$0xff]  ;;  %v2722_v51 = vld [vmem:[#allocation16 + $0x18] sm:$0xff] }
 0xb99   : > { %3233 = vmatprep.mubr.bf16.mxu1 %v7857_v7  ;;  %3274 = vmatprep.mubr.bf16.mxu0 %v7857_v7  ;;  %v2731_v21 = vld [vmem:[#allocation16 + $0x60] sm:$0xff]  ;;  %v2726_v37 = vld [vmem:[#allocation16 + $0x38] sm:$0xff] }
 0xb9a   : > { %v5391_v44 = vcombine.low %v2727_v19, %v2731_v21  ;;  %v5389_v2 = vcombine.low %v2722_v51, %v2726_v37 }
 0xb9b   : > { %3204 = vmatpush1.bf16.msra.mxu1 %v5331_v0  ;;  %3245 = vmatpush1.bf16.msra.mxu0 %v5333_v35  ;;  %v5392_v0 = vcombine.high %v2727_v19, %v2731_v21  ;;  %v5396_v35 = vcombine.high %v2729_v33, %v2733_v26  ;;  %v6894_v19 = vld [vmem:[#allocation20 + $0x104] ss:$8 sps:$4 sm:$0xff]  }
 0xb9c   : > { %3205 = vmatprep.subr.bf16.mxu1 %v5340_v38  ;;  %3246 = vmatprep.subr.bf16.mxu0 %v5342_v43  ;;  %v2720_v38 = vld [vmem:[#allocation16 + $0x8] sm:$0xff]  ;;  %v6942_v26 = vld [vmem:[#allocation23 + $0x48] sm:$0xff]  }
 0xb9d   : > { %v2724_v43 = vld [vmem:[#allocation16 + $0x28] sm:$0xff] }
 0xb9e   : > { %v5386_v55 = vcombine.high %v2720_v38, %v2724_v43  ;;  %v6940_v21 = vld [vmem:[#allocation23 + $0x40] sm:$0xff]  }
 0xb9f   : > { %3206 = vmatpush1.bf16.msra.mxu1 %v5339_v60  ;;  %3247 = vmatpush1.bf16.msra.mxu0 %v5341_v1  ;;  %v6846_v60 = vld [vmem:[#allocation20 + $0x4] ss:$8 sps:$4 sm:$0xff]  }
 0xba0   : > { %3207 = vmatprep.subr.bf16.mxu1 %v5348_v4  ;;  %3248 = vmatprep.subr.bf16.mxu0 %v5350_v25  ;;  %v2728_v1 = vld [vmem:[#allocation16 + $0x48] sm:$0xff]  ;;  %v2717_v25 = vpack.c.bf16 %v2716_v54, %v2716_v54 }
 0xba1   : > { %v2732_v4 = vld [vmem:[#allocation16 + $0x68] sm:$0xff] }
 0xba2   : > { %v5394_v3 = vcombine.high %v2728_v1, %v2732_v4  ;;  %v6941_v33 = vld [vmem:[#allocation23] sm:$0xff]  }
 0xba3   : > { %3208 = vmatpush1.bf16.msra.mxu1 %v5347_v52  ;;  %3249 = vmatpush1.bf16.msra.mxu0 %v5349_v53  ;;  %v6849_v52 = vld [vmem:[#allocation20 + $0x14] ss:$8 sps:$4 sm:$0xff]   ;;  %v5393_v53 = vcombine.low %v2728_v1, %v2732_v4  ;;  %v6949_v4 = vld [vmem:[#allocation23 + $0x20] sm:$0xff]  }
 0xba4   : > { %3209 = vmatprep.subr.bf16.mxu1 %v5356_v57  ;;  %3250 = vmatprep.subr.bf16.mxu0 %v5358_v58  ;;  %v5390_v57 = vcombine.high %v2722_v51, %v2726_v37  ;;  %v6847_v58 = vld [vmem:[#allocation20 + $0x10] ss:$8 sps:$4 sm:$0xff]  }
 0xba7   : > { %3210 = vmatpush1.bf16.msra.mxu1 %v5355_v5  ;;  %3251 = vmatpush1.bf16.msra.mxu0 %v5357_v6  ;;  %v5398_v5 = vcombine.high %v2730_v61, %v2734_v28  ;;  %v6850_v6 = vld [vmem:[#allocation20 + $0x20] ss:$8 sps:$4 sm:$0xff]  }
 0xba8   : > { %3211 = vmatprep.subr.bf16.mxu1 %v5364_v9  ;;  %3252 = vmatprep.subr.bf16.mxu0 %v5366_v20  ;;  %v6855_v9 = vld [vmem:[#allocation20 + $0x34] ss:$8 sps:$4 sm:$0xff]   ;;  %v5397_v20 = vcombine.low %v2730_v61, %v2734_v28 }
 0xbab   : > { %3212 = vmatpush1.bf16.msra.mxu1 %v5363_v23  ;;  %3253 = vmatpush1.bf16.msra.mxu0 %v5365_v31  ;;  %v6861_v23 = vld [vmem:[#allocation20 + $0x54] ss:$8 sps:$4 sm:$0xff]   ;;  %v6864_v31 = vld [vmem:[#allocation20 + $0x64] ss:$8 sps:$4 sm:$0xff]  }
 0xbac   : > { %3213 = vmatprep.subr.bf16.mxu1 %v5372_v24  ;;  %3254 = vmatprep.subr.bf16.mxu0 %v5374_v27  ;;  %v6862_v24 = vld [vmem:[#allocation20 + $0x60] ss:$8 sps:$4 sm:$0xff]   ;;  %v6865_v27 = vld [vmem:[#allocation20 + $0x70] ss:$8 sps:$4 sm:$0xff]  }
 0xbaf   : > { %3214 = vmatpush1.bf16.msra.mxu1 %v5371_v14  ;;  %3255 = vmatpush1.bf16.msra.mxu0 %v5373_v41  ;;  %v6876_v14 = vld [vmem:[#allocation20 + $0xa4] ss:$8 sps:$4 sm:$0xff]   ;;  %v6874_v41 = vld [vmem:[#allocation20 + $0xa0] ss:$8 sps:$4 sm:$0xff]  }
 0xbb0   : > { %3215 = vmatprep.subr.bf16.mxu1 %v5380_v17  ;;  %3256 = vmatprep.subr.bf16.mxu0 %v5382_v47  ;;  %v6879_v17 = vld [vmem:[#allocation20 + $0xb4] ss:$8 sps:$4 sm:$0xff]   ;;  %v6877_v47 = vld [vmem:[#allocation20 + $0xb0] ss:$8 sps:$4 sm:$0xff]  }
 0xbb3   : > { %3216 = vmatpush1.bf16.msra.mxu1 %v5379_v56  ;;  %3257 = vmatpush1.bf16.msra.mxu0 %v5381_v59  ;;  %v6888_v56 = vld [vmem:[#allocation20 + $0xe4] ss:$8 sps:$4 sm:$0xff]   ;;  %v6886_v59 = vld [vmem:[#allocation20 + $0xe0] ss:$8 sps:$4 sm:$0xff]  }
 0xbb4   : > { %3366 = vmatprep.subr.bf16.mxu1 %v5384_v62  ;;  %3448 = vmatprep.subr.bf16.mxu0 %v5388_v8  ;;  %v6891_v62 = vld [vmem:[#allocation20 + $0xf4] ss:$8 sps:$4 sm:$0xff]   ;;  %v6889_v8 = vld [vmem:[#allocation20 + $0xf0] ss:$8 sps:$4 sm:$0xff]  }
 0xbb6   : > { %3234 = vmatmul.mubr.bf16.vlgmr.msra.gmra.mrb[20].mxu1 %v9037_v11  ;;  %3275 = vmatmul.mubr.bf16.vlgmr.msra.gmra.mrb[36].mxu0 %v9037_v11  ;;  %v5385_v11 = vcombine.low %v2720_v38, %v2724_v43  ;;  %v6947_v38 = vld [vmem:[#allocation23 + $0x18] sm:$0xff]   ;;  %v6948_v43 = vld [vmem:[#allocation23 + $0x60] sm:$0xff]  }
 0xbb7   : > { %3367 = vmatpush1.bf16.msra.mxu1 %v5383_v34  ;;  %3449 = vmatpush1.bf16.msra.mxu0 %v5387_v30  ;;  %v6943_v34 = vld [vmem:[#allocation23 + $0x8] sm:$0xff]   ;;  %v6944_v30 = vld [vmem:[#allocation23 + $0x50] sm:$0xff]  }
 0xbb8   : > { %3368 = vmatprep.subr.bf16.mxu1 %v5392_v0  ;;  %3450 = vmatprep.subr.bf16.mxu0 %v5396_v35  ;;  %v6945_v0 = vld [vmem:[#allocation23 + $0x10] sm:$0xff]   ;;  %v6946_v35 = vld [vmem:[#allocation23 + $0x58] sm:$0xff]  }
 0xbb9   : > { %3398 = vmatprep.mubr.bf16.mxu1 %v7857_v7  ;;  %3480 = vmatprep.mubr.bf16.mxu0 %v7857_v7 }
 0xbbb   : > { %3369 = vmatpush1.bf16.msra.mxu1 %v5391_v44  ;;  %3451 = vmatpush1.bf16.msra.mxu0 %v5395_v49 }
 0xbbc   : > { %3407 = vmatprep.subr.bf16.mxu1 %v5386_v55  ;;  %3992 = vmatprep.subr.bf16.mxu0 %v6846_v60 }
 0xbbe   : > { %5399 = vmatmul.mubr.msk.bf16.vlgmr.msra.gmra.mrb[24].mxu1 %vm1114_vm4, %v2717_v25  ;;  %5401 = vmatmul.mubr.msk.bf16.vlgmr.msra.gmra.mrb[40].mxu0 %vm1114_vm4, %v2717_v25 }
 0xbbf   : > { %3408 = vmatpush1.bf16.msra.mxu1 %v5385_v11  ;;  %3439 = vmatprep.mubr.bf16.mxu1 %v7857_v7 }
 0xbc0   : > { %3409 = vmatprep.subr.bf16.mxu1 %v5394_v3  ;;  %3993 = vmatpush1.bf16.msra.mxu0 %v6844_v50  ;;  %v6950_v3 = vld [vmem:[#allocation23 + $0x68] sm:$0xff]  }
 0xbc1   : > { %3994 = vmatprep.subr.bf16.mxu0 %v6849_v52  ;;  %v6951_v50 = vld [vmem:[#allocation23 + $0x28] sm:$0xff]  }
 0xbc3   : > { %3410 = vmatpush1.bf16.msra.mxu1 %v5393_v53 }
 0xbc4   : > { %3489 = vmatprep.subr.bf16.mxu1 %v5390_v57  ;;  %3995 = vmatpush1.bf16.msra.mxu0 %v6847_v58 }
 0xbc5   : > { %3996 = vmatprep.subr.bf16.mxu0 %v6852_v63  ;;  %v3550_v63 = vsub.s32 4, %v8747_v10 }
 0xbc6   : > { %5400 = vmatmul.mubr.msk.bf16.vlgmr.msra.gmra.mrb[28].mxu1 %vm1114_vm4, %v2717_v25 }
 0xbc7   : > { %3490 = vmatpush1.bf16.msra.mxu1 %v5389_v2  ;;  %3521 = vmatprep.mubr.bf16.mxu1 %v7857_v7  ;;  %v6867_v7 = vld [vmem:[#allocation20 + $0x74] ss:$8 sps:$4 sm:$0xff]  }
 0xbc8   : > { %3491 = vmatprep.subr.bf16.mxu1 %v5398_v5  ;;  %3997 = vmatpush1.bf16.msra.mxu0 %v6850_v6  ;;  %v3530_v2 = vld [vmem:[#allocation19] sm:$0xff]  ;;  %v3554_v5 = vsub.s32 5, %v8747_v10 }
 0xbc9   : > { %3998 = vmatprep.subr.bf16.mxu0 %v6855_v9  ;;  %v3535_v6 = vrot.slane %v3530_v2, %v8767_v39  ;;  %v3551_v9 = vrot.slane %v3530_v2, %v3550_v63  ;;  %v6904_v63 = vld [vmem:[#allocation20 + $0x140] ss:$8 sps:$4 sm:$0xff]  }
 0xbcb   : > { %3492 = vmatpush1.bf16.msra.mxu1 %v5397_v20 }
 0xbcc   : > { %3999 = vmatpush1.bf16.msra.mxu0 %v6853_v13  ;;  %5729 = vmatprep.subr.bf16.mxu1 %v6940_v21 }
 0xbcd   : > { %4000 = vmatprep.subr.bf16.mxu0 %v6858_v15  ;;  %v3539_v15 = vrot.slane %v3530_v2, %v8770_v40 }
 0xbce   : > { %5402 = vmatmul.mubr.msk.bf16.vlgmr.msra.gmra.mrb[32].mxu1 %vm1114_vm4, %v2717_v25 }
 0xbcf   : > { %5730 = vmatpush3.bf16.msra.mxu1 %v6941_v33 }
 0xbd0   : > { %4001 = vmatpush1.bf16.msra.mxu0 %v6856_v18  ;;  %5731 = vmatprep.subr.bf16.mxu1 %v6942_v26  ;;  %v3555_v18 = vrot.slane %v3530_v2, %v3554_v5  ;;  %v6897_v26 = vld [vmem:[#allocation20 + $0x114] ss:$8 sps:$4 sm:$0xff]   ;;  %v6912_v5 = vld [vmem:[#allocation20 + $0x164] ss:$8 sps:$4 sm:$0xff]  }
 0xbd1   : > { %4002 = vmatprep.subr.bf16.mxu0 %v6861_v23 }
 0xbd3   : > { %5732 = vmatpush3.bf16.msra.mxu1 %v6943_v34 }
 0xbd4   : > { %4003 = vmatpush1.bf16.msra.mxu0 %v6859_v22  ;;  %5733 = vmatprep.subr.bf16.mxu1 %v6944_v30 }
 0xbd5   : > { %4004 = vmatprep.subr.bf16.mxu0 %v6864_v31 }
 0xbd7   : > { %5734 = vmatpush3.bf16.msra.mxu1 %v6945_v0 }
 0xbd8   : > { %4005 = vmatpush1.bf16.msra.mxu0 %v6862_v24  ;;  %5735 = vmatprep.subr.bf16.mxu1 %v6946_v35 }
 0xbd9   : > { %4006 = vmatprep.subr.bf16.mxu0 %v6867_v7 }
 0xbdb   : > { %5736 = vmatpush3.bf16.msra.mxu1 %v6947_v38  ;;  %v3558_v38 = vsub.s32 6, %v8747_v10 }
 0xbdc   : > { %4007 = vmatpush1.bf16.msra.mxu0 %v6865_v27  ;;  %5737 = vmatprep.subr.bf16.mxu1 %v6948_v43 }
 0xbdd   : > { %4008 = vmatprep.subr.bf16.mxu0 %v6870_v29 }
 0xbdf   : > { %5738 = vmatpush3.bf16.msra.mxu1 %v6949_v4 }
 0xbe0   : > { %4009 = vmatpush1.bf16.msra.mxu0 %v6868_v16  ;;  %5739 = vmatprep.subr.bf16.mxu1 %v6950_v3 }
 0xbe1   : > { %4010 = vmatprep.subr.bf16.mxu0 %v6873_v36 }
 0xbe3   : > { %5740 = vmatpush3.bf16.msra.mxu1 %v6951_v50  ;;  %v6903_v50 = vld [vmem:[#allocation20 + $0x134] ss:$8 sps:$4 sm:$0xff]  }
 0xbe4   : > { %4011 = vmatpush1.bf16.msra.mxu0 %v6871_v42 }
 0xbe5   : > { %4012 = vmatprep.subr.bf16.mxu0 %v6876_v14 }
 0xbe8   : > { %4013 = vmatpush1.bf16.msra.mxu0 %v6874_v41 }
 0xbe9   : > { %4014 = vmatprep.subr.bf16.mxu0 %v6879_v17 }
 0xbec   : > { %4015 = vmatpush1.bf16.msra.mxu0 %v6877_v47 }
 0xbed   : > { %4016 = vmatprep.subr.bf16.mxu0 %v6882_v32  ;;  %v3546_v32 = vsub.s32 3, %v8747_v10 }
 0xbf0   : > { %4017 = vmatpush1.bf16.msra.mxu0 %v6880_v46 }
 0xbf1   : > { %4018 = vmatprep.subr.bf16.mxu0 %v6885_v48  ;;  %v3543_v48 = vrot.slane %v3530_v2, %v1109_v12  ;;  %v6895_v12 = vld [vmem:[#allocation20 + $0x110] ss:$8 sps:$4 sm:$0xff]  }
 0xbf4   : > { %4019 = vmatpush1.bf16.msra.mxu0 %v6883_v45 }
 0xbf5   : > { %4020 = vmatprep.subr.bf16.mxu0 %v6888_v56 }
 0xbf8   : > { %4021 = vmatpush1.bf16.msra.mxu0 %v6886_v59 }
 0xbf9   : > { %4022 = vmatprep.subr.bf16.mxu0 %v6891_v62  ;;  %v3547_v62 = vrot.slane %v3530_v2, %v3546_v32 }
 0xbfc   : > { %4023 = vmatpush1.bf16.msra.mxu0 %v6889_v8  ;;  %v6892_v8 = vld [vmem:[#allocation20 + $0x100] ss:$8 sps:$4 sm:$0xff]  }
 0xbfd   : > { %4033 = vmatprep.subr.bf16.mxu0 %v6894_v19 }
 0xc69   : > { %v3153_v44 = vpop.f32.mrb[16].mxu1  ;;  %v3194_v49 = vpop.f32.mrb[32].mxu0 }
 0xc6a   : > { %v3155_v54 = vpop.f32.mrb[17].mxu1  ;;  %v3196_v55 = vpop.f32.mrb[33].mxu0 }
 0xc6b   : > { %v3157_v60 = vpop.f32.mrb[18].mxu1  ;;  %v3198_v1 = vpop.f32.mrb[34].mxu0 }
 0xc6c   : > { %v3158_v25 = vpop.f32.mrb[19].mxu1  ;;  %v3199_v11 = vpop.f32.mrb[35].mxu0 }
 0xc6d   : > { %v6898_v25 = vld [vmem:[#allocation20 + $0x120] ss:$8 sps:$4 sm:$0xff]  }
 0xc89   : > { %v3235_v51 = vpop.f32.mrb[20].mxu1  ;;  %v3276_v37 = vpop.f32.mrb[36].mxu0 }
 0xc8a   : > { %v3237_v52 = vpop.f32.mrb[21].mxu1  ;;  %v9055_v53 = vpop.f32.mrb[37].mxu0 }
 0xc8b   : > { %v3239_v57 = vpop.f32.mrb[22].mxu1  ;;  %v3280_v58 = vpop.f32.mrb[38].mxu0 }
 0xc8c   : > { %v3240_v61 = vpop.f32.mrb[23].mxu1  ;;  %v3281_v28 = vpop.f32.mrb[39].mxu0 }
 0xc8d   : > { %v6901_v61 = vld [vmem:[#allocation20 + $0x130] ss:$8 sps:$4 sm:$0xff]   ;;  %v6906_v28 = vld [vmem:[#allocation20 + $0x144] ss:$8 sps:$4 sm:$0xff]  }
 0xc91   : > { %v3400_v20 = vpop.f32.mrb[24].mxu1  ;;  %v3482_v13 = vpop.f32.mrb[40].mxu0 }
 0xc92   : > { %v3401_v22 = vadd.f32 %v3400_v20, %v3153_v44  ;;  %v3483_v23 = vadd.f32 %v3482_v13, %v3235_v51  ;;  %v3402_v31 = vpop.f32.mrb[25].mxu1  ;;  %v3484_v24 = vpop.f32.mrb[41].mxu0  ;;  %v3562_v44 = vsub.s32 7, %v8747_v10  ;;  %v6918_v20 = vld [vmem:[#allocation20 + $0x184] ss:$8 sps:$4 sm:$0xff]  }
 0xc93   : > { %v3403_v7 = vadd.f32 %v3402_v31, %v3155_v54  ;;  %v3485_v27 = vadd.f32 %v3484_v24, %v3237_v52  ;;  %v3404_v29 = vpop.f32.mrb[26].mxu1  ;;  %v3486_v16 = vpop.f32.mrb[42].mxu0  ;;  %v6900_v54 = vld [vmem:[#allocation20 + $0x124] ss:$8 sps:$4 sm:$0xff]   ;;  %v6916_v13 = vld [vmem:[#allocation20 + $0x180] ss:$8 sps:$4 sm:$0xff]  }
 0xc94   : > { %v3572_v36 = vadd.f32 %v3535_v6, %v3401_v22  ;;  %v9061_v42 = vadd.f32 %v3551_v9, %v3483_v23  ;;  %v3405_v14 = vpop.f32.mrb[27].mxu1  ;;  %v3487_v41 = vpop.f32.mrb[43].mxu0  ;;  %v3563_v4 = vrot.slane %v3530_v2, %v3562_v44  ;;  %v6915_v6 = vld [vmem:[#allocation20 + $0x174] ss:$8 sps:$4 sm:$0xff]   ;;  %v6913_v9 = vld [vmem:[#allocation20 + $0x170] ss:$8 sps:$4 sm:$0xff]  }
 0xc95   : > { %v3573_v17 = vadd.f32 %v3539_v15, %v3403_v7  ;;  %v9063_v47 = vadd.f32 %v3555_v18, %v3485_v27  ;;  %v6921_v15 = vld [vmem:[#allocation20 + $0x194] ss:$8 sps:$4 sm:$0xff]   ;;  %v6919_v18 = vld [vmem:[#allocation20 + $0x190] ss:$8 sps:$4 sm:$0xff]   ;;  %v6924_v22 = vld [vmem:[#allocation20 + $0x1a4] ss:$8 sps:$4 sm:$0xff]  }
 0xc96   : > { %v3580_v46 = vmax.f32 %v3572_v36, 0.0  ;;  %v6922_v23 = vld [vmem:[#allocation20 + $0x1a0] ss:$8 sps:$4 sm:$0xff]   ;;  %v6927_v31 = vld [vmem:[#allocation20 + $0x1b4] ss:$8 sps:$4 sm:$0xff]  }
 0xc97   : > { %v3581_v45 = vmax.f32 %v3573_v17, 0.0  ;;  %v6925_v24 = vld [vmem:[#allocation20 + $0x1b0] ss:$8 sps:$4 sm:$0xff]   ;;  %v6930_v7 = vld [vmem:[#allocation20 + $0x1c4] ss:$8 sps:$4 sm:$0xff]  }
 0xc98   : > { %v3588_v19 = vpack.c.bf16 %v3580_v46, %v3580_v46  ;;  %v6928_v27 = vld [vmem:[#allocation20 + $0x1c0] ss:$8 sps:$4 sm:$0xff]   ;;  %v6933_v29 = vld [vmem:[#allocation20 + $0x1d4] ss:$8 sps:$4 sm:$0xff]   ;;  %v6931_v16 = vld [vmem:[#allocation20 + $0x1d0] ss:$8 sps:$4 sm:$0xff]  }
 0xc99   : > { %v3589_v56 = vpack.c.bf16 %v3581_v45, %v3581_v45  ;;  %v3441_v59 = vpop.f32.mrb[28].mxu1  ;;  %v6936_v36 = vld [vmem:[#allocation20 + $0x1e4] ss:$8 sps:$4 sm:$0xff]   ;;  %v6934_v14 = vld [vmem:[#allocation20 + $0x1e0] ss:$8 sps:$4 sm:$0xff]   ;;  %v6952_v45 = vld [vmem:[#allocation23 + $0x70] sm:$0xff]  }
 0xc9a   : > { %v3442_v21 = vadd.f32 %v3441_v59, %v3194_v49  ;;  %v3443_v33 = vpop.f32.mrb[29].mxu1  ;;  %v3559_v49 = vrot.slane %v3530_v2, %v3558_v38  ;;  %v6907_v2 = vld [vmem:[#allocation20 + $0x150] ss:$8 sps:$4 sm:$0xff]   ;;  %v6939_v41 = vld [vmem:[#allocation20 + $0x1f4] ss:$8 sps:$4 sm:$0xff]   ;;  %5741 = vmatprep.subr.bf16.mxu1 %v6952_v45 }
 0xc9b   : > { %v3444_v34 = vadd.f32 %v3443_v33, %v3196_v55  ;;  %4024 = vmatprep.mubr.bf16.mxu0 %v3589_v56  ;;  %v3445_v30 = vpop.f32.mrb[30].mxu1  ;;  %v6937_v17 = vld [vmem:[#allocation20 + $0x1f0] ss:$8 sps:$4 sm:$0xff]  }
 0xc9c   : > { %v9068_v0 = vadd.f32 %v3543_v48, %v3442_v21  ;;  %4025 = vmatmul.mubr.bf16.vlgmr.msra.gmra.mrb[44].mxu0 %v3588_v19  ;;  %v3446_v35 = vpop.f32.mrb[31].mxu1  ;;  %v6953_v48 = vld [vmem:[#allocation23 + $0x30] sm:$0xff]   ;;  %v6954_v56 = vld [vmem:[#allocation23 + $0x78] sm:$0xff]  }
 0xc9d   : > { %v3575_v43 = vadd.f32 %v3547_v62, %v3444_v34  ;;  %4034 = vmatpush1.bf16.msra.mxu0 %v6892_v8  ;;  %5742 = vmatpush3.bf16.msra.mxu1 %v6953_v48  ;;  %v6955_v59 = vld [vmem:[#allocation23 + $0x38] sm:$0xff]   ;;  %v6958_v62 = vld [vmem:[#allocation26 + $0x4] ss:$8 sps:$4 sm:$0xff]   ;;  %v7010_v48 = vld [vmem:[#allocation26 + $0x120] ss:$8 sps:$4 sm:$0xff]  }
 0xc9e   : > { %4035 = vmatprep.subr.bf16.mxu0 %v6897_v26  ;;  %v3582_v32 = vmax.f32 %v9068_v0, 0.0  ;;  %5743 = vmatprep.subr.bf16.mxu1 %v6954_v56  ;;  %v3660_v8 = vld [vmem:[#allocation22] sm:$0x3]  ;;  %v7012_v45 = vld [vmem:[#allocation26 + $0x124] ss:$8 sps:$4 sm:$0xff]  }
 0xc9f   : > { %v3583_v60 = vmax.f32 %v3575_v43, 0.0  ;;  %v3665_v19 = vrot.slane %v3660_v8, %v8767_v39  ;;  %v3669_v21 = vrot.slane %v3660_v8, %v8770_v40  ;;  %v3585_v43 = vmax.f32 %v9063_v47, 0.0  ;;  %v6970_v47 = vld [vmem:[#allocation26 + $0x44] ss:$8 sps:$4 sm:$0xff]   ;;  %v7013_v56 = vld [vmem:[#allocation26 + $0x130] ss:$8 sps:$4 sm:$0xff]  }
 0xca0   : > { %v3590_v46 = vpack.c.bf16 %v3582_v32, %v3582_v32  ;;  %v7019_v8 = vld [vmem:[#allocation26 + $0x150] ss:$8 sps:$4 sm:$0xff]  }
 0xca1   : > { %v3591_v1 = vpack.c.bf16 %v3583_v60, %v3583_v60  ;;  %4036 = vmatpush1.bf16.msra.mxu0 %v6895_v12  ;;  %v3523_v55 = vpop.f32.mrb[32].mxu1  ;;  %5744 = vmatpush3.bf16.msra.mxu1 %v6955_v59  ;;  %v7016_v59 = vld [vmem:[#allocation26 + $0x140] ss:$8 sps:$4 sm:$0xff]  }
 0xca2   : > { %v3524_v11 = vadd.f32 %v3523_v55, %v3276_v37  ;;  %v3525_v3 = vpop.f32.mrb[33].mxu1  ;;  %4037 = vmatprep.subr.bf16.mxu0 %v6900_v54  ;;  %v6909_v37 = vld [vmem:[#allocation20 + $0x154] ss:$8 sps:$4 sm:$0xff]   ;;  %4650 = vmatprep.subr.bf16.mxu1 %v6958_v62  ;;  %v6956_v54 = vld [vmem:[#allocation26] ss:$8 sps:$4 sm:$0xff]  }
 0xca3   : > { %v3526_v51 = vadd.f32 %v3525_v3, %v9055_v53  ;;  %4065 = vmatprep.mubr.bf16.mxu0 %v3591_v1  ;;  %v3527_v52 = vpop.f32.mrb[34].mxu1  ;;  %v6910_v53 = vld [vmem:[#allocation20 + $0x160] ss:$8 sps:$4 sm:$0xff]   ;;  %v3593_v1 = vpack.c.bf16 %v3585_v43, %v3585_v43  ;;  %v6959_v55 = vld [vmem:[#allocation26 + $0x10] ss:$8 sps:$4 sm:$0xff]  }
 0xca4   : > { %v9073_v57 = vadd.f32 %v3559_v49, %v3524_v11  ;;  %v3528_v10 = vpop.f32.mrb[35].mxu1  ;;  %v6961_v49 = vld [vmem:[#allocation26 + $0x14] ss:$8 sps:$4 sm:$0xff]   ;;  %v6965_v3 = vld [vmem:[#allocation26 + $0x30] ss:$8 sps:$4 sm:$0xff]  }
 0xca5   : > { %v9075_v58 = vadd.f32 %v3563_v4, %v3526_v51  ;;  %4038 = vmatpush1.bf16.msra.mxu0 %v6898_v25  ;;  %v6964_v4 = vld [vmem:[#allocation26 + $0x24] ss:$8 sps:$4 sm:$0xff]   ;;  %v6962_v25 = vld [vmem:[#allocation26 + $0x20] ss:$8 sps:$4 sm:$0xff]   ;;  %v6967_v11 = vld [vmem:[#allocation26 + $0x34] ss:$8 sps:$4 sm:$0xff]  }
 0xca6   : > { %4039 = vmatprep.subr.bf16.mxu0 %v6903_v50  ;;  %v6968_v50 = vld [vmem:[#allocation26 + $0x40] ss:$8 sps:$4 sm:$0xff]   ;;  %v6973_v51 = vld [vmem:[#allocation26 + $0x54] ss:$8 sps:$4 sm:$0xff]   ;;  %v6971_v52 = vld [vmem:[#allocation26 + $0x50] ss:$8 sps:$4 sm:$0xff]  }
 0xca7   : > { %v6976_v10 = vld [vmem:[#allocation26 + $0x64] ss:$8 sps:$4 sm:$0xff]   ;;  %v7021_v62 = vld [vmem:[#allocation26 + $0x154] ss:$8 sps:$4 sm:$0xff]  }
 0xca8   : > { %v7056_v43 = vld [vmem:[#allocation29 + $0x50] sm:$0xff]  }
 0xca9   : > { %4040 = vmatpush1.bf16.msra.mxu0 %v6901_v61  ;;  %v6974_v61 = vld [vmem:[#allocation26 + $0x60] ss:$8 sps:$4 sm:$0xff]  }
 0xcaa   : > { %4041 = vmatprep.subr.bf16.mxu0 %v6906_v28  ;;  %v6979_v28 = vld [vmem:[#allocation26 + $0x74] ss:$8 sps:$4 sm:$0xff]  }
 0xcad   : > { %4042 = vmatpush1.bf16.msra.mxu0 %v6904_v63  ;;  %v6977_v63 = vld [vmem:[#allocation26 + $0x70] ss:$8 sps:$4 sm:$0xff]  }
 0xcae   : > { %4043 = vmatprep.subr.bf16.mxu0 %v6909_v37  ;;  %v6982_v37 = vld [vmem:[#allocation26 + $0x84] ss:$8 sps:$4 sm:$0xff]  }
 0xcb1   : > { %4044 = vmatpush1.bf16.msra.mxu0 %v6907_v2  ;;  %v6980_v2 = vld [vmem:[#allocation26 + $0x80] ss:$8 sps:$4 sm:$0xff]  }
 0xcb2   : > { %4045 = vmatprep.subr.bf16.mxu0 %v6912_v5  ;;  %v6985_v5 = vld [vmem:[#allocation26 + $0x94] ss:$8 sps:$4 sm:$0xff]  }
 0xcb5   : > { %4046 = vmatpush1.bf16.msra.mxu0 %v6910_v53  ;;  %v6983_v53 = vld [vmem:[#allocation26 + $0x90] ss:$8 sps:$4 sm:$0xff]  }
 0xcb6   : > { %4047 = vmatprep.subr.bf16.mxu0 %v6915_v6  ;;  %v6988_v6 = vld [vmem:[#allocation26 + $0xa4] ss:$8 sps:$4 sm:$0xff]  }
 0xcb9   : > { %4048 = vmatpush1.bf16.msra.mxu0 %v6913_v9  ;;  %v6986_v9 = vld [vmem:[#allocation26 + $0xa0] ss:$8 sps:$4 sm:$0xff]  }
 0xcba   : > { %4049 = vmatprep.subr.bf16.mxu0 %v6918_v20  ;;  %v6991_v20 = vld [vmem:[#allocation26 + $0xb4] ss:$8 sps:$4 sm:$0xff]  }
 0xcbd   : > { %4050 = vmatpush1.bf16.msra.mxu0 %v6916_v13  ;;  %v6989_v13 = vld [vmem:[#allocation26 + $0xb0] ss:$8 sps:$4 sm:$0xff]  }
 0xcbe   : > { %4051 = vmatprep.subr.bf16.mxu0 %v6921_v15  ;;  %v6994_v15 = vld [vmem:[#allocation26 + $0xc4] ss:$8 sps:$4 sm:$0xff]  }
 0xcc1   : > { %4052 = vmatpush1.bf16.msra.mxu0 %v6919_v18  ;;  %v6992_v18 = vld [vmem:[#allocation26 + $0xc0] ss:$8 sps:$4 sm:$0xff]  }
 0xcc2   : > { %4053 = vmatprep.subr.bf16.mxu0 %v6924_v22  ;;  %v6997_v22 = vld [vmem:[#allocation26 + $0xd4] ss:$8 sps:$4 sm:$0xff]  }
 0xcc5   : > { %4054 = vmatpush1.bf16.msra.mxu0 %v6922_v23  ;;  %v6995_v23 = vld [vmem:[#allocation26 + $0xd0] ss:$8 sps:$4 sm:$0xff]  }
 0xcc6   : > { %4055 = vmatprep.subr.bf16.mxu0 %v6927_v31  ;;  %v7000_v31 = vld [vmem:[#allocation26 + $0xe4] ss:$8 sps:$4 sm:$0xff]  }
 0xcc9   : > { %4056 = vmatpush1.bf16.msra.mxu0 %v6925_v24  ;;  %v6998_v24 = vld [vmem:[#allocation26 + $0xe0] ss:$8 sps:$4 sm:$0xff]  }
 0xcca   : > { %4057 = vmatprep.subr.bf16.mxu0 %v6930_v7  ;;  %v7003_v7 = vld [vmem:[#allocation26 + $0xf4] ss:$8 sps:$4 sm:$0xff]  }
 0xccd   : > { %4058 = vmatpush1.bf16.msra.mxu0 %v6928_v27  ;;  %v7001_v27 = vld [vmem:[#allocation26 + $0xf0] ss:$8 sps:$4 sm:$0xff]  }
 0xcce   : > { %4059 = vmatprep.subr.bf16.mxu0 %v6933_v29  ;;  %v3584_v29 = vmax.f32 %v9061_v42, 0.0  ;;  %v7015_v42 = vld [vmem:[#allocation26 + $0x134] ss:$8 sps:$4 sm:$0xff]  }
 0xcd1   : > { %4060 = vmatpush1.bf16.msra.mxu0 %v6931_v16  ;;  %v7006_v16 = vld [vmem:[#allocation26 + $0x104] ss:$8 sps:$4 sm:$0xff]  }
 0xcd2   : > { %4061 = vmatprep.subr.bf16.mxu0 %v6936_v36  ;;  %v3587_v36 = vmax.f32 %v9075_v58, 0.0  ;;  %v7018_v58 = vld [vmem:[#allocation26 + $0x144] ss:$8 sps:$4 sm:$0xff]  }
 0xcd4   : > { %v3595_v32 = vpack.c.bf16 %v3587_v36, %v3587_v36 }
 0xcd5   : > { %4062 = vmatpush1.bf16.msra.mxu0 %v6934_v14  ;;  %v7004_v14 = vld [vmem:[#allocation26 + $0x100] ss:$8 sps:$4 sm:$0xff]  }
 0xcd6   : > { %4063 = vmatprep.subr.bf16.mxu0 %v6939_v41  ;;  %v3592_v41 = vpack.c.bf16 %v3584_v29, %v3584_v29 }
 0xcd9   : > { %4064 = vmatpush1.bf16.msra.mxu0 %v6937_v17  ;;  %v7009_v17 = vld [vmem:[#allocation26 + $0x114] ss:$8 sps:$4 sm:$0xff]  }
 0xcdc   : > { %4066 = vmatmul.mubr.bf16.vlgmr.msra.gmra.mrb[44].mxu0 %v3590_v46  ;;  %v7007_v46 = vld [vmem:[#allocation26 + $0x110] ss:$8 sps:$4 sm:$0xff]  }
 0xdaf   : > { %v4067_v33 = vpop.f32.mrb[44].mxu0 }
 0xdb0   : > { %v6575_v26 = vadd.f32 %v4067_v33, %v3665_v19  ;;  %v4069_v34 = vpop.f32.mrb[45].mxu0  ;;  %v7024_v19 = vld [vmem:[#allocation26 + $0x164] ss:$8 sps:$4 sm:$0xff]   ;;  %v7027_v33 = vld [vmem:[#allocation26 + $0x174] ss:$8 sps:$4 sm:$0xff]  }
 0xdb1   : > { %v6576_v30 = vadd.f32 %v4069_v34, %v3669_v21  ;;  %v4071_v0 = vpop.f32.mrb[46].mxu0  ;;  %v7022_v21 = vld [vmem:[#allocation26 + $0x160] ss:$8 sps:$4 sm:$0xff]  }
 0xdb2   : > { %v4074_v35 = vmax.f32 %v6575_v26, 0.0  ;;  %v4072_v38 = vpop.f32.mrb[47].mxu0  ;;  %v7052_v26 = vld [vmem:[#allocation29 + $0x40] sm:$0xff]   ;;  %v7025_v0 = vld [vmem:[#allocation26 + $0x170] ss:$8 sps:$4 sm:$0xff]  }
 0xdb3   : > { %v4075_v12 = vmax.f32 %v6576_v30, 0.0  ;;  %v7053_v34 = vld [vmem:[#allocation29] sm:$0xff]   ;;  %v7054_v30 = vld [vmem:[#allocation29 + $0x48] sm:$0xff]   ;;  %5751 = vmatprep.subr.bf16.mxu0 %v7052_v26 }
 0xdb4   : > { %v4076_v60 = vpack.c.bf16 %v4074_v35, %v4074_v35  ;;  %v7030_v35 = vld [vmem:[#allocation26 + $0x184] ss:$8 sps:$4 sm:$0xff]   ;;  %5752 = vmatpush3.bf16.msra.mxu0 %v7053_v34 }
 0xdb5   : > { %v4077_v44 = vpack.c.bf16 %v4075_v12, %v4075_v12  ;;  %v7055_v38 = vld [vmem:[#allocation29 + $0x8] sm:$0xff]   ;;  %5753 = vmatprep.subr.bf16.mxu0 %v7054_v30 }
 0xdb6   : > { %v7028_v12 = vld [vmem:[#allocation26 + $0x180] ss:$8 sps:$4 sm:$0xff]  }
 0xdb7   : > { %4245 = vmatprep.mubr.bf16.mxu1 %v4077_v44  ;;  %v7033_v44 = vld [vmem:[#allocation26 + $0x194] ss:$8 sps:$4 sm:$0xff]  }
 0xdb8   : > { %4246 = vmatmul.mubr.bf16.vlgmr.msra.gmra.mrb[36].mxu1 %v4076_v60  ;;  %5754 = vmatpush3.bf16.msra.mxu0 %v7055_v38  ;;  %v7058_v60 = vld [vmem:[#allocation29 + $0x58] sm:$0xff]  }
 0xdb9   : > { %4651 = vmatpush1.bf16.msra.mxu1 %v6956_v54  ;;  %4682 = vmatprep.mubr.bf16.mxu1 %v3593_v1  ;;  %v7057_v54 = vld [vmem:[#allocation29 + $0x10] sm:$0xff]   ;;  %v7036_v1 = vld [vmem:[#allocation26 + $0x1a4] ss:$8 sps:$4 sm:$0xff]  }
 0xdba   : > { %4652 = vmatprep.subr.bf16.mxu1 %v6961_v49  ;;  %5755 = vmatprep.subr.bf16.mxu0 %v7056_v43  ;;  %v7031_v49 = vld [vmem:[#allocation26 + $0x190] ss:$8 sps:$4 sm:$0xff]  }
 0xdbc   : > { %5756 = vmatpush3.bf16.msra.mxu0 %v7057_v54 }
 0xdbd   : > { %4653 = vmatpush1.bf16.msra.mxu1 %v6959_v55  ;;  %v7059_v55 = vld [vmem:[#allocation29 + $0x18] sm:$0xff]   ;;  %5757 = vmatprep.subr.bf16.mxu0 %v7058_v60 }
 0xdbe   : > { %4654 = vmatprep.subr.bf16.mxu1 %v6964_v4  ;;  %v7060_v4 = vld [vmem:[#allocation29 + $0x60] sm:$0xff]  }
 0xdc0   : > { %5758 = vmatpush3.bf16.msra.mxu0 %v7059_v55 }
 0xdc1   : > { %4655 = vmatpush1.bf16.msra.mxu1 %v6962_v25  ;;  %v7034_v25 = vld [vmem:[#allocation26 + $0x1a0] ss:$8 sps:$4 sm:$0xff]   ;;  %5759 = vmatprep.subr.bf16.mxu0 %v7060_v4 }
 0xdc2   : > { %4656 = vmatprep.subr.bf16.mxu1 %v6967_v11  ;;  %v7039_v11 = vld [vmem:[#allocation26 + $0x1b4] ss:$8 sps:$4 sm:$0xff]  }
 0xdc5   : > { %4657 = vmatpush1.bf16.msra.mxu1 %v6965_v3  ;;  %v7061_v3 = vld [vmem:[#allocation29 + $0x20] sm:$0xff]  }
 0xdc6   : > { %4658 = vmatprep.subr.bf16.mxu1 %v6970_v47  ;;  %v7062_v47 = vld [vmem:[#allocation29 + $0x68] sm:$0xff]   ;;  %5760 = vmatpush3.bf16.msra.mxu0 %v7061_v3 }
 0xdc7   : > { %5761 = vmatprep.subr.bf16.mxu0 %v7062_v47 }
 0xdc9   : > { %4659 = vmatpush1.bf16.msra.mxu1 %v6968_v50  ;;  %v7037_v50 = vld [vmem:[#allocation26 + $0x1b0] ss:$8 sps:$4 sm:$0xff]  }
 0xdca   : > { %4660 = vmatprep.subr.bf16.mxu1 %v6973_v51  ;;  %v7042_v51 = vld [vmem:[#allocation26 + $0x1c4] ss:$8 sps:$4 sm:$0xff]  }
 0xdcd   : > { %4661 = vmatpush1.bf16.msra.mxu1 %v6971_v52  ;;  %v7063_v52 = vld [vmem:[#allocation29 + $0x28] sm:$0xff]  }
 0xdce   : > { %4662 = vmatprep.subr.bf16.mxu1 %v6976_v10  ;;  %v7040_v10 = vld [vmem:[#allocation26 + $0x1c0] ss:$8 sps:$4 sm:$0xff]   ;;  %5762 = vmatpush3.bf16.msra.mxu0 %v7063_v52 }
 0xdd1   : > { %4663 = vmatpush1.bf16.msra.mxu1 %v6974_v61  ;;  %v7045_v61 = vld [vmem:[#allocation26 + $0x1d4] ss:$8 sps:$4 sm:$0xff]  }
 0xdd2   : > { %4664 = vmatprep.subr.bf16.mxu1 %v6979_v28  ;;  %v7043_v28 = vld [vmem:[#allocation26 + $0x1d0] ss:$8 sps:$4 sm:$0xff]  }
 0xdd5   : > { %4665 = vmatpush1.bf16.msra.mxu1 %v6977_v63  ;;  %v7048_v63 = vld [vmem:[#allocation26 + $0x1e4] ss:$8 sps:$4 sm:$0xff]  }
 0xdd6   : > { %4666 = vmatprep.subr.bf16.mxu1 %v6982_v37  ;;  %v7046_v37 = vld [vmem:[#allocation26 + $0x1e0] ss:$8 sps:$4 sm:$0xff]  }
 0xdd9   : > { %4667 = vmatpush1.bf16.msra.mxu1 %v6980_v2  ;;  %v7051_v2 = vld [vmem:[#allocation26 + $0x1f4] ss:$8 sps:$4 sm:$0xff]  }
 0xdda   : > { %4668 = vmatprep.subr.bf16.mxu1 %v6985_v5  ;;  %v7049_v5 = vld [vmem:[#allocation26 + $0x1f0] ss:$8 sps:$4 sm:$0xff]  }
 0xddd   : > { %4669 = vmatpush1.bf16.msra.mxu1 %v6983_v53  ;;  %v3586_v53 = vmax.f32 %v9073_v57, 0.0  ;;  %v4318_v57 = vld [vmem:[#allocation28] sm:$0x3] }
 0xdde   : > { %4670 = vmatprep.subr.bf16.mxu1 %v6988_v6  ;;  %v4323_v29 = vrot.slane %v4318_v57, %v8767_v39 }
 0xddf   : > { %v3594_v6 = vpack.c.bf16 %v3586_v53, %v3586_v53 }
 0xde1   : > { %4671 = vmatpush1.bf16.msra.mxu1 %v6986_v9  ;;  %v7064_v9 = vld [vmem:[#allocation29 + $0x70] sm:$0xff]  }
 0xde2   : > { %4672 = vmatprep.subr.bf16.mxu1 %v6991_v20  ;;  %5763 = vmatprep.subr.bf16.mxu0 %v7064_v9 }
 0xde5   : > { %4673 = vmatpush1.bf16.msra.mxu1 %v6989_v13  ;;  %v7065_v13 = vld [vmem:[#allocation29 + $0x30] sm:$0xff]  }
 0xde6   : > { %4674 = vmatprep.subr.bf16.mxu1 %v6994_v15  ;;  %v5467_v15 = vld [vmem:[#allocation25] ss:$0 sm:$0xff]  ;;  %5764 = vmatpush3.bf16.msra.mxu0 %v7065_v13 }
 0xde9   : > { %4675 = vmatpush1.bf16.msra.mxu1 %v6992_v18 }
 0xdea   : > { %4676 = vmatprep.subr.bf16.mxu1 %v6997_v22 }
 0xded   : > { %4677 = vmatpush1.bf16.msra.mxu1 %v6995_v23 }
 0xdee   : > { %4678 = vmatprep.subr.bf16.mxu1 %v7000_v31 }
 0xdf1   : > { %4679 = vmatpush1.bf16.msra.mxu1 %v6998_v24  ;;  %v7066_v24 = vld [vmem:[#allocation29 + $0x78] sm:$0xff]  }
 0xdf2   : > { %4680 = vmatprep.subr.bf16.mxu1 %v7003_v7  ;;  %5765 = vmatprep.subr.bf16.mxu0 %v7066_v24 }
 0xdf5   : > { %4681 = vmatpush1.bf16.msra.mxu1 %v7001_v27  ;;  %v7067_v27 = vld [vmem:[#allocation29 + $0x38] sm:$0xff]  }
 0xdf6   : > { %4691 = vmatprep.subr.bf16.mxu1 %v7006_v16  ;;  %5766 = vmatpush3.bf16.msra.mxu0 %v7067_v27  ;;  %v4327_v16 = vrot.slane %v4318_v57, %v8770_v40 }
 0xdf8   : > { %4683 = vmatmul.mubr.bf16.vlgmr.msra.gmra.mrb[40].mxu1 %v3592_v41 }
 0xdf9   : > { %4692 = vmatpush1.bf16.msra.mxu1 %v7004_v14  ;;  %4723 = vmatprep.mubr.bf16.mxu1 %v3595_v32 }
 0xdfa   : > { %4693 = vmatprep.subr.bf16.mxu1 %v7009_v17 }
 0xdfd   : > { %4694 = vmatpush1.bf16.msra.mxu1 %v7007_v46 }
 0xdfe   : > { %4695 = vmatprep.subr.bf16.mxu1 %v7012_v45 }
 0xe01   : > { %4696 = vmatpush1.bf16.msra.mxu1 %v7010_v48 }
 0xe02   : > { %4697 = vmatprep.subr.bf16.mxu1 %v7015_v42 }
 0xe05   : > { %4698 = vmatpush1.bf16.msra.mxu1 %v7013_v56 }
 0xe06   : > { %4699 = vmatprep.subr.bf16.mxu1 %v7018_v58 }
 0xe09   : > { %4700 = vmatpush1.bf16.msra.mxu1 %v7016_v59 }
 0xe0a   : > { %4701 = vmatprep.subr.bf16.mxu1 %v7021_v62 }
 0xe0d   : > { %4702 = vmatpush1.bf16.msra.mxu1 %v7019_v8 }
 0xe0e   : > { %4703 = vmatprep.subr.bf16.mxu1 %v7024_v19 }
 0xe11   : > { %4704 = vmatpush1.bf16.msra.mxu1 %v7022_v21 }
 0xe12   : > { %4705 = vmatprep.subr.bf16.mxu1 %v7027_v33 }
 0xe15   : > { %4706 = vmatpush1.bf16.msra.mxu1 %v7025_v0 }
 0xe16   : > { %4707 = vmatprep.subr.bf16.mxu1 %v7030_v35 }
 0xe19   : > { %4708 = vmatpush1.bf16.msra.mxu1 %v7028_v12 }
 0xe1a   : > { %4709 = vmatprep.subr.bf16.mxu1 %v7033_v44 }
 0xe1d   : > { %4710 = vmatpush1.bf16.msra.mxu1 %v7031_v49 }
 0xe1e   : > { %4711 = vmatprep.subr.bf16.mxu1 %v7036_v1 }
 0xe21   : > { %4712 = vmatpush1.bf16.msra.mxu1 %v7034_v25 }
 0xe22   : > { %4713 = vmatprep.subr.bf16.mxu1 %v7039_v11 }
 0xe25   : > { %4714 = vmatpush1.bf16.msra.mxu1 %v7037_v50 }
 0xe26   : > { %4715 = vmatprep.subr.bf16.mxu1 %v7042_v51 }
 0xe29   : > { %4716 = vmatpush1.bf16.msra.mxu1 %v7040_v10 }
 0xe2a   : > { %4717 = vmatprep.subr.bf16.mxu1 %v7045_v61 }
 0xe2d   : > { %4718 = vmatpush1.bf16.msra.mxu1 %v7043_v28 }
 0xe2e   : > { %4719 = vmatprep.subr.bf16.mxu1 %v7048_v63 }
 0xe31   : > { %4720 = vmatpush1.bf16.msra.mxu1 %v7046_v37 }
 0xe32   : > { %4721 = vmatprep.subr.bf16.mxu1 %v7051_v2 }
 0xe35   : > { %4722 = vmatpush1.bf16.msra.mxu1 %v7049_v5 }
 0xe38   : > { %4724 = vmatmul.mubr.bf16.vlgmr.msra.gmra.mrb[40].mxu1 %v3594_v6 }
 0xe8b   : > { %v5745_v20 = vpop.f32.mrb[36].mxu1 }
 0xe8c   : > { %v5746_v18 = vpop.f32.mrb[37].mxu1 }
 0xe8d   : > { %v5747_v22 = vadd.f32 %v5746_v18, %v5745_v20  ;;  %v5748_v23 = vpop.f32.mrb[38].mxu1 }
 0xe8e   : > { %v5749_v31 = vpop.f32.mrb[39].mxu1 }
 0xe8f   : > { %v4248_v7 = vadd.f32 %v5747_v22, %v5467_v15 }
 0xe91   : > { %4253 = vst [vmem:[%s917_s23] sm:$0xff] %v4248_v7 }
 0xf0b   : > { %v4725_v36 = vpop.f32.mrb[40].mxu1 }
 0xf0c   : > { %v6577_v14 = vadd.f32 %v4725_v36, %v4323_v29  ;;  %v4727_v41 = vpop.f32.mrb[41].mxu1 }
 0xf0d   : > { %v6578_v17 = vadd.f32 %v4727_v41, %v4327_v16  ;;  %v4729_v32 = vpop.f32.mrb[42].mxu1 }
 0xf0e   : > { %v4732_v46 = vmax.f32 %v6577_v14, 0.0  ;;  %v4730_v45 = vpop.f32.mrb[43].mxu1 }
 0xf0f   : > { %v4733_v48 = vmax.f32 %v6578_v17, 0.0 }
 0xf10   : > { %v4734_v56 = vpack.c.bf16 %v4732_v46, %v4732_v46 }
 0xf11   : > { %v4735_v42 = vpack.c.bf16 %v4733_v48, %v4733_v48 }
 0xf13   : > { %4903 = vmatprep.mubr.bf16.mxu0 %v4735_v42 }
 0xf14   : > { %4904 = vmatmul.mubr.bf16.vlgmr.msra.gmra.mrb[48].mxu0 %v4734_v56 }
 0xf15   : > { %7698 = shalt.err (!%p7695_p9)
}
 0xf16   : > { %s7699_s7 = scalar_lea.hbm %s9093_s10, 128  ;;  %s7703_s27 = scalar_lea.hbm %s9299_s30, 256 }
 0xf17   : > { %p7700_p3 = scmp.ne.s32.totalorder %s9093_s10, %s7699_s7  ;;  %p7704_p8 = scmp.lt.u32.totalorder %s9093_s10, %s9299_s30 }
 0xf18   : > { %p7705_p4 = scmp.lt.u32.totalorder %s7703_s27, %s7699_s7  ;;  %p7707_p1 = scmp.lt.u32.totalorder %s7699_s7, %s9093_s10 }
 0xf19   : > { %p7701_p6 = pnand %p7700_p3, %p9300_p13 }
 0xf1a   : > { %p7706_p12 = por %p7705_p4, %p7704_p8 }
 0xf1b   : > { %p7702_p11 = pneg %p7701_p6 }
 0xf1c   : > { %p7708_p0 = por %p7707_p1, %p7706_p12 }
 0xf1e   : > { %p7709_p2 = pnand %p7708_p0, %p7702_p11 }
 0xf20   : > { %7712 = shalt.err (!%p7709_p2)
}
 0xf21   : > { %6675 = dma.vmem_to_hbm [thread:$0]  (%p9300_p13), %s4932_s12, 128, %s9093_s10, %s4913_s2   ;;  %v5548_v40 = vld [vmem:[#allocation31] ss:$0 sm:$0xff] }
 0xf22   : > { %s924_s22 = scalar_lea.vmem [#allocation33], %s8512_s13  ;;  %s9301_s9 = sld [smem:[#allocation72_spill]] }
 0xf23   : > { %s4944_s3 = sshll.u32 %s924_s22, 4  ;;  %s4918_s10 = scalar_lea.sflag [#allocation34], %s8500_s0  ;;  %s9121_s3 = int_to_ptr.vmem [resolvable:$true] %s4944_s3 }
 0xf24   : > { %s7713_s12 = scalar_lea.vmem %s9121_s3, 128  ;;  %s7859_s13 = smov [#allocation33]  }
 0xf25   : > { %p7714_p7 = scmp.ne.s32.totalorder %s9121_s3, %s7713_s12  ;;  %s7717_s2 = sshll.u32 %s7859_s13, 4  ;;  %s7718_s2 = int_to_ptr.vmem [resolvable:$false] %s7717_s2 }
 0xf26   : > { %s7719_s6 = scalar_lea.vmem %s7718_s2, 256  ;;  %p7720_p9 = scmp.lt.s32.totalorder %s9121_s3, %s7718_s2 }
 0xf27   : > { %p7715_p10 = pnand %p7714_p7, %p9300_p13  ;;  %p7721_p3 = scmp.lt.s32.totalorder %s7719_s6, %s7713_s12 }
 0xf28   : > { %s9119_s24 = scalar_lea.hbm %s9301_s9, %s5567_s26 }
 0xf29   : > { %p7716_p5 = pneg %p7715_p10  ;;  %p7722_p6 = por %p7721_p3, %p7720_p9 }
 0xf2b   : > { %p7723_p11 = pnand %p7722_p6, %p7716_p5 }
 0xfe7   : > { %v5767_v39 = vpop.f32.mrb[48].mxu0 }
 0xfe8   : > { %v5768_v58 = vpop.f32.mrb[49].mxu0 }
 0xfe9   : > { %v5769_v59 = vadd.f32 %v5768_v58, %v5767_v39  ;;  %v5770_v62 = vpop.f32.mrb[50].mxu0 }
 0xfea   : > { %v5771_v8 = vpop.f32.mrb[51].mxu0 }
 0xfeb   : > { %v4906_v19 = vadd.f32 %v5769_v59, %v5548_v40 }
 0xfed   : > { %4911 = vst [vmem:[%s924_s22] sm:$0xff] %v4906_v19 }
 0xfee   : > { %7726 = shalt.err (!%p7723_p11)
}
 0xfef   : > { %s7727_s0 = scalar_lea.hbm %s9119_s24, 128  ;;  %s7731_s5 = scalar_lea.hbm %s9301_s9, 256 }
 0xff0   : > { %p7728_p8 = scmp.ne.s32.totalorder %s9119_s24, %s7727_s0  ;;  %p7732_p1 = scmp.lt.u32.totalorder %s9119_s24, %s9301_s9 }
 0xff1   : > { %p7733_p0 = scmp.lt.u32.totalorder %s7731_s5, %s7727_s0  ;;  %p7735_p7 = scmp.lt.u32.totalorder %s7727_s0, %s9119_s24 }
 0xff2   : > { %p7729_p4 = pnand %p7728_p8, %p9300_p13 }
 0xff3   : > { %p7734_p2 = por %p7733_p0, %p7732_p1 }
 0xff4   : > { %p7730_p12 = pneg %p7729_p4 }
 0xff5   : > { %p7736_p10 = por %p7735_p7, %p7734_p2 }
 0xff7   : > { %p7737_p5 = pnand %p7736_p10, %p7730_p12 }
 0xff9   : > { %7740 = shalt.err (!%p7737_p5)
}
 0xffa   : > { %6676 = dma.vmem_to_hbm [thread:$0]  (%p9300_p13), %s9121_s3, 128, %s9119_s24, %s4918_s10  }
 0xffb PF: > { %s9302_s8 = sld [smem:[#allocation48_spill]]  ;;  %s9303_s23 = sld [smem:[#allocation51_spill]] }
 0xffc   : > { %p9304_p9 = scmp.ne.s32.totalorder %s9270_s28, 0 }
0x1001   : > { %s4956_s22 = sand.u32 1, %s9302_s8   ;;  %p9305_p3 = scmp.ge.s32.totalorder %s9303_s23, 2 }
0x1002   : > { %s4957_s21 = scalar_lea.sflag [#allocation4], %s4956_s22 }
0x1003   : > { %p6739_p6 = pnand %p9305_p3, %p9304_p9 }
0x1005   : > { %7802 = dma.done.wait (!%p6739_p6), %s4957_s21, 128  }
0x1006   : > { %7804 = vsyncadd (!%p6739_p6), %s4957_s21, 4294967168  ;;  %s4966_s14 = scalar_lea.sflag [#allocation34], %s4956_s22 }
0x1007   : > { %7806 = dma.done.wait (!%p6739_p6), %s4966_s14, 128  }
0x1008   : > { %7808 = vsyncadd (!%p6739_p6), %s4966_s14, 4294967168  ;;  %s9306_s1 = sld [smem:[#allocation49_spill]]  ;;  %s9307_s22 = sld [smem:[#allocation50_spill]] }
0x1009   : > { %p48_p13 = scmp.ge.s32.totalorder %s8390_s4, 4   ;;  %s9308_s23 = smov %s8402_s29 }
0x100a   : > { %s9309_s24 = smov %s8390_s4 }
0x100b   :  { %50 = sbr.rel (!%p48_p13) target bundleno = 37 (0x25), region = 239 }
0x1012   :  { %4971 = vsyncpa [#allocation3], 1 }
0x1013   :  { %4973 = vsyncpa [#allocation3 + $0x1], 1 }
0x1014   :  { %4974 = vsyncpa [#allocation6], 1 }
0x1015   :  { %4976 = vsyncpa [#allocation6 + $0x1], 1 }
0x1016   :  { %4977 = vsyncpa [#allocation9], 1 }
0x1017   :  { %4978 = vsyncpa [#allocation12], 1 }
0x1018   :  { %4979 = vsyncpa [#allocation15], 1 }
0x1019   :  { %4980 = vsyncpa [#allocation18], 1 }
0x101a   :  { %4981 = vsyncpa [#allocation21], 1 }
0x101b   :  { %4982 = vsyncpa [#allocation24], 1 }
0x101c   :  { %4983 = vsyncpa [#allocation27], 1 }
0x101d   :  { %4984 = vsyncpa [#allocation30], 1 }
0x101e   :  { %4985 = vsyncpa [#allocation4], 1 }
0x101f   :  { %4987 = vsyncpa [#allocation4 + $0x1], 1 }
0x1020   :  { %4988 = vsyncpa [#allocation34], 1 }
0x1021   :  { %4990 = vsyncpa [#allocation34 + $0x1], 1 }

</bundles_post_ra>
